<compile_context>
chip_gen: v7x
topology: tpu7x:2x2x1
jax: 0.10.0
libtpu: 0.0.40
codegen_flags: <defaults>
</compile_context>

<pallas_src>
from functools import partial

import jax
import jax.numpy as jnp
from jax.experimental import pallas as pl
from jax.experimental.pallas import tpu as pltpu

K = 8              # self.k in the module
S1, S2 = 256, 192  # flattened spatial sizes: x1 = 2*16*8, x2 = 6*8*4
T2 = 6             # x2 time steps


def _dotx(a, b):
    # Matmuls whose weight operand is an exact 0/1 (or 1/16, 1/4) constant:
    # default (single bf16 pass) precision only rounds the data operand.
    return jnp.dot(a, b, preferred_element_type=jnp.float32)


def _dotp(a, b):
    # Tiny per-batch matmuls carrying learned parameters / softmax
    # normalizers: keep full f32 accuracy (they are ~free).
    return jnp.dot(a, b, preferred_element_type=jnp.float32,
                   precision=jax.lax.Precision.HIGHEST)


def dao_kernel(x1_ref, x2_ref, p1_ref, p2_ref, red_ref, exp_ref, spw_ref,
               gg_ref, aux_ref, uu_ref, wb_ref, z1_ref, z2_ref, att_ref):
    expand = exp_ref[...]                     # [R, B]  0/1: row -> its batch
    bblk = expand.shape[1]

    gg = gg_ref[...]                          # [2, 48, 8]
    g1 = gg[0, :16, :2]                       # [16, 2]  group-sum over k (x1)
    g2 = gg[1, :, :6]                         # [48, 6]  group-sum over k (x2)
    aux = aux_ref[...]                        # [11, 48]
    m_avg = aux[0:1, :]                       # avg-branch column mask
    cb0, cb1 = aux[1:2, :], aux[2:3, :]       # folded + masked conv biases
    g2t = aux[3:9, :]                         # [6, 48]  group -> its 8 columns
    g1t = aux[9:11, :16]                      # [2, 16]
    uu = uu_ref[...]                          # [8, 256] packed U1 | U2
    wb = wb_ref[...]                          # [4, R, 8] W-BN scale/shift

    # ---- pooling: AvgPool3d(1,2,2)+mean(w) for x1, mean(w) for x2 ----------
    x1p = _dotx(x1_ref[...], p1_ref[...])     # [R, 16]  col = 8*t + k
    x2m = _dotx(x2_ref[...], p2_ref[...])     # [R, 48]  col = 8*t + h

    # ---- fused per-batch channel reductions (one MXU pass per tensor) ------
    # rows of RED: [0,B) mean/c | [B,2B) conv[0] weights | [2B,3B) conv[1]
    r1 = _dotp(red_ref[...], x1p)             # [3B, 16] (conv rows unused)
    r2 = _dotp(red_ref[...], x2m)             # [3B, 48]
    mu1 = r1[:bblk]                           # [B, 16] channel mean, pooled x1
    mu2 = r2[:bblk]                           # [B, 48] channel mean, pooled x2
    v0 = r2[bblk:2 * bblk]                    # [B, 48] Conv3d(c,1,1)[0] output
    v1 = r2[2 * bblk:3 * bblk]                # [B, 48] Conv3d(c,1,1)[1] output

    # ---- conv branch: Conv3d(8,8,1)+BN, block-diag over time, masks folded --
    sp0 = _dotp(v0, spw_ref[0]) + cb0         # nonzero only at t in {1, 4}
    sp1 = _dotp(v1, spw_ref[1]) + cb1         # nonzero only at t in {2, 5}
    logits2 = mu2 * m_avg + sp0 + sp1         # branch select (disjoint masks)

    # ---- grouped softmax over k=8 (shared per-row max: exact for softmax) ---
    e1 = jnp.exp(mu1 - jnp.max(mu1, axis=1, keepdims=True))
    e2 = jnp.exp(logits2 - jnp.max(logits2, axis=1, keepdims=True))
    s1 = e1 / _dotp(_dotp(e1, g1), g1t)       # [B, 16]
    s2 = e2 / _dotp(_dotp(e2, g2), g2t)       # [B, 48]

    # ---- expand per-batch softmax weights to per-(batch, channel) rows ------
    s1b = _dotx(expand, s1)                   # [R, 16]
    s2b = _dotx(expand, s2)                   # [R, 48]

    # ---- attention-weighted channel sums, one column per output time --------
    y1 = _dotx(x1p * s1b, g1)                 # [R, 2]
    y2 = _dotx(x2m * s2b, g2)                 # [R, 6]

    # ---- W BatchNorm (eval, folded to per-(row, time) scale/shift) ----------
    y1 = y1 * wb[0, :, 0:2] + wb[1, :, 0:2]
    y2 = y2 * wb[2, :, 0:6] + wb[3, :, 0:6]

    # ---- residual: broadcast each time column over its h*w lane range -------
    # (exact 0/1 constants; single-pass matmul only rounds y, ~2^-9 relative;
    # MXU is idle here anyway — the kernel is HBM-bound after batch blocking)
    z1_ref[...] = x1_ref[...] + _dotx(y1, uu[0:2, :])       # [R, 256]
    z2_ref[...] = x2_ref[...] + _dotx(y2, uu[2:8, :S2])     # [R, 192]
    att_ref[...] = s2                                       # packed attention


def _pick_bblk(b, c, max_rows=512, min_steps=4):
    """Batch elements per grid step.

    Blocks must keep the row block 8-aligned (Bblk % 8 == 0) unless they cover
    the whole batch.  Prefer the largest block whose row count stays <=
    max_rows (a few-hundred-KB/step working set, far under scoped VMEM on
    v5e/v6e/v7x) while still leaving >= min_steps grid steps so v7x's two
    TensorCores both get work.
    """
    cands = [d for d in range(1, b + 1) if b % d == 0 and (d == b or d % 8 == 0)]
    good = [d for d in cands if d * c <= max_rows and b // d >= min_steps]
    if not good:
        good = [d for d in cands if d * c <= max_rows]
    if not good:
        good = [min(cands)]
    return max(good)


def _build_consts(c, bblk, params):
    """Constant matrices and folded parameters (geometry fixed to the module's
    documented shapes: x1 [b,c,2,16,8], x2 [b,c,6,8,4])."""
    f32 = jnp.float32
    R = bblk * c

    def group_onehot(n, g, scale=1.0):
        return (jnp.arange(n)[:, None] // g ==
                jnp.arange(n // g)[None, :]).astype(f32) * scale

    # Pooling matrices (values exactly representable in bf16).
    P1 = group_onehot(S1, 16, 1.0 / 16.0)     # [256, 16]  col -> 8t + k
    P2 = group_onehot(S2, 4, 0.25)            # [192, 48]  col -> 8t + h

    # Fused per-batch channel reductions: mean | conv[0] | conv[1].
    row_b = jnp.arange(R) // c                # batch of each row
    row_c = jnp.arange(R) % c                 # channel of each row
    same_b = (row_b[None, :] == jnp.arange(bblk)[:, None]).astype(f32)  # [B, R]
    RED = jnp.concatenate([
        same_b / c,
        same_b * params['conv_w'][0][row_c][None, :],
        same_b * params['conv_w'][1][row_c][None, :]], axis=0)          # [3B, R]
    EXPAND = same_b.T                                                   # [R, B]

    # Grouped-softmax matrices, packed: GG[0] = G1 (16x2), GG[1] = G2 (48x6).
    G1 = group_onehot(16, K)                  # [16, 2]
    G2 = group_onehot(48, K)                  # [48, 6]
    GG = jnp.zeros((2, 48, 8), f32)
    GG = GG.at[0, :16, :2].set(G1)
    GG = GG.at[1, :, :6].set(G2)

    # Branch-select masks over original time {0,3}=avg {1,4}=conv0 {2,5}=conv1.
    t_of_col = jnp.arange(48) // K
    m_avg = ((t_of_col == 0) | (t_of_col == 3)).astype(f32)
    m_c0 = ((t_of_col == 1) | (t_of_col == 4)).astype(f32)
    m_c1 = ((t_of_col == 2) | (t_of_col == 5)).astype(f32)

    # Conv3d(8,8,1) + its BN scale, block-diagonal over time, branch-masked.
    c1w, c1b = params['c1_w'], params['c1_b']                 # [2,K,K], [2,K]
    c1sc, c1sh = params['c1_scale'], params['c1_shift']       # [2,K]
    blk = jnp.einsum('iok,io->iko', c1w, c1sc)                # [2, K_in, K_out]
    BD = jnp.einsum('tu,iko->itkuo', jnp.eye(T2, dtype=f32), blk).reshape(2, 48, 48)
    SPW = jnp.stack([BD[0] * m_c0[None, :], BD[1] * m_c1[None, :]])

    # Folded biases (conv bias through conv1+BN, conv1 bias through BN, BN
    # shift), tiled over time and branch-masked.
    cb_o = (params['conv_b'][:, None] * jnp.sum(c1w, axis=-1) * c1sc
            + c1b * c1sc + c1sh)                              # [2, K]
    CB = jnp.tile(cb_o, (1, T2))                              # [2, 48]
    cb0 = CB[0] * m_c0
    cb1 = CB[1] * m_c1

    # AUX pack: avg mask, masked biases, G2^T, G1^T (denominator broadcasts).
    G1T_pad = jnp.zeros((2, 48), f32).at[:, :16].set(G1.T)
    AUX = jnp.concatenate([m_avg[None, :], cb0[None, :], cb1[None, :],
                           G2.T, G1T_pad], axis=0)            # [11, 48]

    # Residual broadcast matrices packed: rows 0:2 = U1, rows 2:8 = U2.
    UU = jnp.zeros((8, S1), f32)
    UU = UU.at[0:2, :].set(group_onehot(S1, 128).T)           # [2, 256]
    UU = UU.at[2:8, :S2].set(group_onehot(S2, 32).T)          # [6, 192]

    # Eval-mode W BatchNorm (folded), tiled to the row block and packed:
    # WB[0]/WB[1] = scale/shift for y1 (cols 0:2), WB[2]/WB[3] for y2 (0:6).
    ws, wh = params['w_scale'], params['w_shift']             # [4, c]
    sel = jnp.array([1, 2, 3, 1, 2, 3])                       # W[1..3] per time
    wsc1 = jnp.stack([ws[0], ws[0]], axis=1)                  # [c, 2]
    wsh1 = jnp.stack([wh[0], wh[0]], axis=1)
    wsc2, wsh2 = ws[sel].T, wh[sel].T                         # [c, 6]

    def pad8(a):
        return jnp.pad(a, ((0, 0), (0, 8 - a.shape[1])))

    wb_chan = jnp.stack([pad8(wsc1), pad8(wsh1), pad8(wsc2), pad8(wsh2)])
    WB = jnp.tile(wb_chan, (1, bblk, 1))                      # [4, R, 8]

    return (P1, P2, RED, EXPAND, SPW, GG, AUX, UU, WB)


@partial(jax.jit, static_argnames=("block_batch",))
def dao_forward(x1, x2, params, block_batch=None):
    b, c, t1, h1, w1 = x1.shape
    _, _, t2, h2, w2 = x2.shape
    # The flattened-index pooling / broadcast constants assume this geometry.
    assert (t1, h1, w1) == (2, 16, 8) and (t2, h2, w2) == (6, 8, 4), \
        "DAO kernel expects x1:[b,c,2,16,8] and x2:[b,c,6,8,4]"

    bblk = block_batch if block_batch is not None else _pick_bblk(b, c)
    assert b % bblk == 0 and (bblk == b or bblk % 8 == 0), bblk
    R = bblk * c

    # NCDHW -> [b*c, t*h*w]: pure leading/trailing collapse (free reshape).
    x1k = x1.reshape(b * c, S1)
    x2k = x2.reshape(b * c, S2)
    consts = _build_consts(c, bblk, params)

    def row_spec(rows, cols):
        return pl.BlockSpec((rows, cols), lambda i: (i, 0))

    def const_spec(shape):
        return pl.BlockSpec(tuple(shape), lambda i, _z=(0,) * len(shape): _z)

    in_specs = ([row_spec(R, S1), row_spec(R, S2)]
                + [const_spec(a.shape) for a in consts])
    out_specs = (row_spec(R, S1), row_spec(R, S2), row_spec(bblk, 48))
    out_shape = (jax.ShapeDtypeStruct((b * c, S1), jnp.float32),
                 jax.ShapeDtypeStruct((b * c, S2), jnp.float32),
                 jax.ShapeDtypeStruct((b, 48), jnp.float32))

    z1k, z2k, att = pl.pallas_call(
        dao_kernel,
        grid=(b // bblk,),
        in_specs=in_specs,
        out_specs=out_specs,
        out_shape=out_shape,
        input_output_aliases={0: 0, 1: 1},     # z1/z2 reuse x1/x2 buffers
        compiler_params=pltpu.CompilerParams(
            dimension_semantics=("parallel",)),
    )(x1k, x2k, *consts)

    z1 = z1k.reshape(b, c, t1, h1, w1)          # free reshapes back to NCDHW
    z2 = z2k.reshape(b, c, t2, h2, w2)
    s2 = att.reshape(b, t2, K)                  # softmax per original time slice
    a2_1 = jnp.take(s2, jnp.array([0, 3]), axis=1).reshape(b * 2, K)
    a2_2 = jnp.take(s2, jnp.array([1, 4]), axis=1).reshape(b * 2, K)
    a2_3 = jnp.take(s2, jnp.array([2, 5]), axis=1).reshape(b * 2, K)
    return z1, z2, (a2_1, a2_2, a2_3)


def make_params(key, c):
    ks = jax.random.split(key, 8)

    def n(k, shape, scale):
        return scale * jax.random.normal(k, shape, dtype=jnp.float32)

    return {
        'conv_w':   n(ks[0], (2, c), 0.3),        # Conv3d(c, 1, 1) weights
        'conv_b':   n(ks[1], (2,), 0.1),          # Conv3d(c, 1, 1) biases
        'c1_w':     n(ks[2], (2, K, K), 0.3),     # ConvBlock Conv3d(8,8,1) [out, in]
        'c1_b':     n(ks[3], (2, K), 0.1),
        'c1_scale': 1.0 + n(ks[4], (2, K), 0.1),  # ConvBlock BatchNorm3d(8), folded (eval)
        'c1_shift': n(ks[5], (2, K), 0.1),
        'w_scale':  n(ks[6], (4, c), 0.2),        # W[0..3] BatchNorm3d(c), folded (eval);
        'w_shift':  n(ks[7], (4, c), 0.1),        # module inits to 0, non-zero on purpose
    }


def dao_reference(x1, x2, params):
    """Pure-JAX, PyTorch-literal (NCDHW) reference of DAO.forward (eval-mode BN)."""
    b, c, t1, h1, w1 = x1.shape

    def bn_w(y, i):  # y: [b, c, t]
        return y * params['w_scale'][i][None, :, None] + params['w_shift'][i][None, :, None]

    def forward_avg(x, i):
        bb, cc, tt, hh, ww = x.shape
        xm = x.mean(axis=1).reshape(bb, tt, hh * ww)
        s = jax.nn.softmax(xm, axis=-1)
        a = s.reshape(bb * tt, hh * ww)
        y = (x.reshape(bb, cc, tt, -1) * s[:, None]).sum(-1)
        return bn_w(y, i)[..., None, None], a

    def forward_conv(x, i):
        bb, cc, tt, hh, ww = x.shape
        y = jnp.einsum('bcthw,c->bthw', x, params['conv_w'][i]) + params['conv_b'][i]
        y = y.reshape(bb, tt, hh * ww)
        sp = jnp.einsum('bth,oh->bto', y, params['c1_w'][i]) + params['c1_b'][i]
        sp = sp * params['c1_scale'][i] + params['c1_shift'][i]
        s = jax.nn.softmax(sp, axis=-1)
        a = s.reshape(bb * tt, hh * ww)
        yy = (x.reshape(bb, cc, tt, -1) * s[:, None]).sum(-1)
        return bn_w(yy, i + 2)[..., None, None], a

    x1p = x1.reshape(b, c, t1, h1 // 2, 2, w1 // 2, 2).mean(axis=(4, 6))  # AvgPool3d((1,2,2))
    x1p = x1p.mean(-1, keepdims=True)                                     # [b, c, 2, 8, 1]
    x2m = x2.mean(-1, keepdims=True)                                      # [b, c, 6, 8, 1]
    x2_1 = jnp.stack((x2m[:, :, 0], x2m[:, :, 3]), axis=2)
    x2_2 = jnp.stack((x2m[:, :, 1], x2m[:, :, 4]), axis=2)
    x2_3 = jnp.stack((x2m[:, :, 2], x2m[:, :, 5]), axis=2)

    y1, _ = forward_avg(x1p, 0)
    y2_1, a2_1 = forward_avg(x2_1, 1)
    y2_2, a2_2 = forward_conv(x2_2, 0)
    y2_3, a2_3 = forward_conv(x2_3, 1)
    y2 = jnp.stack((y2_1[:, :, 0], y2_2[:, :, 0], y2_3[:, :, 0],
                    y2_1[:, :, 1], y2_2[:, :, 1], y2_3[:, :, 1]), axis=2)
    return y1 + x1, y2 + x2, (a2_1, a2_2, a2_3)


if __name__ == "__main__":
    b, c = 32, 16                     # -> Bblk = 8 (128-row blocks), 4 grid steps
    key = jax.random.PRNGKey(0)
    k1, k2, kp = jax.random.split(key, 3)
    x1 = jax.random.normal(k1, (b, c, 2, 16, 8), dtype=jnp.float32)
    x2 = jax.random.normal(k2, (b, c, 6, 8, 4), dtype=jnp.float32)
    params = make_params(kp, c)

    z1, z2, (a1, a2, a3) = jax.block_until_ready(dao_forward(x1, x2, params))

    rz1, rz2, (ra1, ra2, ra3) = dao_reference(x1, x2, params)
    # Tolerance 2e-3: the matmuls against exact 0/1 constants run at default
    # (single bf16 pass) MXU precision, which rounds the data operand by
    # <= 2^-9 relative; parameter-bearing matmuls stay at full f32.
    for got, ref in ((z1, rz1), (z2, rz2), (a1, ra1), (a2, ra2), (a3, ra3)):
        assert got.shape == ref.shape, (got.shape, ref.shape)
        err = float(jnp.max(jnp.abs(got - ref)))
        assert jnp.allclose(got, ref, atol=2e-3, rtol=2e-3), err

    print("KERNEL_OK")
</pallas_src>

<mosaic_0001>
module attributes {stable_mosaic.version = 11 : i64} {
  func.func @dao_kernel(%arg0: i32, %arg1: memref<128x256xf32, #tpu.memory_space<vmem>>, %arg2: memref<128x192xf32, #tpu.memory_space<vmem>>, %arg3: memref<256x16xf32, #tpu.memory_space<vmem>>, %arg4: memref<192x48xf32, #tpu.memory_space<vmem>>, %arg5: memref<24x128xf32, #tpu.memory_space<vmem>>, %arg6: memref<128x8xf32, #tpu.memory_space<vmem>>, %arg7: memref<2x48x48xf32, #tpu.memory_space<vmem>>, %arg8: memref<2x48x8xf32, #tpu.memory_space<vmem>>, %arg9: memref<11x48xf32, #tpu.memory_space<vmem>>, %arg10: memref<8x256xf32, #tpu.memory_space<vmem>>, %arg11: memref<4x128x8xf32, #tpu.memory_space<vmem>>, %arg12: memref<128x256xf32, #tpu.memory_space<vmem>>, %arg13: memref<128x192xf32, #tpu.memory_space<vmem>>, %arg14: memref<8x48xf32, #tpu.memory_space<vmem>>) attributes {dimension_semantics = [#tpu.dimension_semantics<parallel>], iteration_bounds = array<i64: 4>, scalar_prefetch = 0 : i64, scratch_operands = 0 : i64, tpu.core_type = #tpu.core_type<tc>, window_params = [{transform_indices = @transform_0, window_bounds = array<i64: 128, 256>}, {transform_indices = @transform_1, window_bounds = array<i64: 128, 192>}, {pipeline_mode = #tpu.pipeline_mode<synchronous>, transform_indices = @transform_2, window_bounds = array<i64: 256, 16>}, {pipeline_mode = #tpu.pipeline_mode<synchronous>, transform_indices = @transform_3, window_bounds = array<i64: 192, 48>}, {pipeline_mode = #tpu.pipeline_mode<synchronous>, transform_indices = @transform_4, window_bounds = array<i64: 24, 128>}, {pipeline_mode = #tpu.pipeline_mode<synchronous>, transform_indices = @transform_5, window_bounds = array<i64: 128, 8>}, {pipeline_mode = #tpu.pipeline_mode<synchronous>, transform_indices = @transform_6, window_bounds = array<i64: 2, 48, 48>}, {pipeline_mode = #tpu.pipeline_mode<synchronous>, transform_indices = @transform_7, window_bounds = array<i64: 2, 48, 8>}, {pipeline_mode = #tpu.pipeline_mode<synchronous>, transform_indices = @transform_8, window_bounds = array<i64: 11, 48>}, {pipeline_mode = #tpu.pipeline_mode<synchronous>, transform_indices = @transform_9, window_bounds = array<i64: 8, 256>}, {pipeline_mode = #tpu.pipeline_mode<synchronous>, transform_indices = @transform_10, window_bounds = array<i64: 4, 128, 8>}, {transform_indices = @transform_11, window_bounds = array<i64: 128, 256>}, {transform_indices = @transform_12, window_bounds = array<i64: 128, 192>}, {transform_indices = @transform_13, window_bounds = array<i64: 8, 48>}]} {
    %c0 = arith.constant 0 : index
    %c0_0 = arith.constant 0 : index
    %0 = vector.load %arg6[%c0, %c0_0] : memref<128x8xf32, #tpu.memory_space<vmem>>, vector<128x8xf32>
    %c0_1 = arith.constant 0 : index
    %c0_2 = arith.constant 0 : index
    %c0_3 = arith.constant 0 : index
    %1 = vector.load %arg8[%c0_1, %c0_2, %c0_3] : memref<2x48x8xf32, #tpu.memory_space<vmem>>, vector<2x48x8xf32>
    %2 = vector.extract_strided_slice %1 {offsets = [0, 0, 0], sizes = [1, 16, 2], strides = [1, 1, 1]} : vector<2x48x8xf32> to vector<1x16x2xf32>
    %3 = vector.shape_cast %2 : vector<1x16x2xf32> to vector<16x2xf32>
    %4 = vector.extract_strided_slice %1 {offsets = [1, 0, 0], sizes = [1, 48, 6], strides = [1, 1, 1]} : vector<2x48x8xf32> to vector<1x48x6xf32>
    %5 = vector.shape_cast %4 : vector<1x48x6xf32> to vector<48x6xf32>
    %c0_4 = arith.constant 0 : index
    %c0_5 = arith.constant 0 : index
    %6 = vector.load %arg9[%c0_4, %c0_5] : memref<11x48xf32, #tpu.memory_space<vmem>>, vector<11x48xf32>
    %7 = vector.extract_strided_slice %6 {offsets = [0, 0], sizes = [1, 48], strides = [1, 1]} : vector<11x48xf32> to vector<1x48xf32>
    %8 = vector.extract_strided_slice %6 {offsets = [1, 0], sizes = [1, 48], strides = [1, 1]} : vector<11x48xf32> to vector<1x48xf32>
    %9 = vector.extract_strided_slice %6 {offsets = [2, 0], sizes = [1, 48], strides = [1, 1]} : vector<11x48xf32> to vector<1x48xf32>
    %10 = vector.extract_strided_slice %6 {offsets = [3, 0], sizes = [6, 48], strides = [1, 1]} : vector<11x48xf32> to vector<6x48xf32>
    %11 = vector.extract_strided_slice %6 {offsets = [9, 0], sizes = [2, 16], strides = [1, 1]} : vector<11x48xf32> to vector<2x16xf32>
    %c0_6 = arith.constant 0 : index
    %c0_7 = arith.constant 0 : index
    %12 = vector.load %arg10[%c0_6, %c0_7] : memref<8x256xf32, #tpu.memory_space<vmem>>, vector<8x256xf32>
    %c0_8 = arith.constant 0 : index
    %c0_9 = arith.constant 0 : index
    %c0_10 = arith.constant 0 : index
    %13 = vector.load %arg11[%c0_8, %c0_9, %c0_10] : memref<4x128x8xf32, #tpu.memory_space<vmem>>, vector<4x128x8xf32>
    %c0_11 = arith.constant 0 : index
    %c0_12 = arith.constant 0 : index
    %14 = vector.load %arg1[%c0_11, %c0_12] : memref<128x256xf32, #tpu.memory_space<vmem>>, vector<128x256xf32>
    %c0_13 = arith.constant 0 : index
    %c0_14 = arith.constant 0 : index
    %15 = vector.load %arg3[%c0_13, %c0_14] : memref<256x16xf32, #tpu.memory_space<vmem>>, vector<256x16xf32>
    %cst = arith.constant dense<0.000000e+00> : vector<128x16xf32>
    %16 = tpu.matmul %14, %15, %cst {dimension_numbers = #tpu.dot_dimension_numbers<[1], [0], [0], [1], [0, 0, 1, 1], [], []>} : vector<128x256xf32>, vector<256x16xf32>, vector<128x16xf32> -> vector<128x16xf32>
    %c0_15 = arith.constant 0 : index
    %c0_16 = arith.constant 0 : index
    %17 = vector.load %arg2[%c0_15, %c0_16] : memref<128x192xf32, #tpu.memory_space<vmem>>, vector<128x192xf32>
    %c0_17 = arith.constant 0 : index
    %c0_18 = arith.constant 0 : index
    %18 = vector.load %arg4[%c0_17, %c0_18] : memref<192x48xf32, #tpu.memory_space<vmem>>, vector<192x48xf32>
    %cst_19 = arith.constant dense<0.000000e+00> : vector<128x48xf32>
    %19 = tpu.matmul %17, %18, %cst_19 {dimension_numbers = #tpu.dot_dimension_numbers<[1], [0], [0], [1], [0, 0, 1, 1], [], []>} : vector<128x192xf32>, vector<192x48xf32>, vector<128x48xf32> -> vector<128x48xf32>
    %c0_20 = arith.constant 0 : index
    %c0_21 = arith.constant 0 : index
    %20 = vector.load %arg5[%c0_20, %c0_21] : memref<24x128xf32, #tpu.memory_space<vmem>>, vector<24x128xf32>
    %cst_22 = arith.constant dense<0.000000e+00> : vector<24x16xf32>
    %21 = tpu.matmul %20, %16, %cst_22 {dimension_numbers = #tpu.dot_dimension_numbers<[1], [0], [0], [1], [0, 0, 1, 1], [], []>, precision = #tpu.contract_precision<fp32>} : vector<24x128xf32>, vector<128x16xf32>, vector<24x16xf32> -> vector<24x16xf32>
    %c0_23 = arith.constant 0 : index
    %c0_24 = arith.constant 0 : index
    %22 = vector.load %arg5[%c0_23, %c0_24] : memref<24x128xf32, #tpu.memory_space<vmem>>, vector<24x128xf32>
    %cst_25 = arith.constant dense<0.000000e+00> : vector<24x48xf32>
    %23 = tpu.matmul %22, %19, %cst_25 {dimension_numbers = #tpu.dot_dimension_numbers<[1], [0], [0], [1], [0, 0, 1, 1], [], []>, precision = #tpu.contract_precision<fp32>} : vector<24x128xf32>, vector<128x48xf32>, vector<24x48xf32> -> vector<24x48xf32>
    %24 = vector.extract_strided_slice %21 {offsets = [0, 0], sizes = [8, 16], strides = [1, 1]} : vector<24x16xf32> to vector<8x16xf32>
    %25 = vector.extract_strided_slice %23 {offsets = [0, 0], sizes = [8, 48], strides = [1, 1]} : vector<24x48xf32> to vector<8x48xf32>
    %26 = vector.extract_strided_slice %23 {offsets = [8, 0], sizes = [8, 48], strides = [1, 1]} : vector<24x48xf32> to vector<8x48xf32>
    %27 = vector.extract_strided_slice %23 {offsets = [16, 0], sizes = [8, 48], strides = [1, 1]} : vector<24x48xf32> to vector<8x48xf32>
    %c0_26 = arith.constant 0 : index
    %c0_27 = arith.constant 0 : index
    %c0_28 = arith.constant 0 : index
    %28 = vector.load %arg7[%c0_26, %c0_27, %c0_28] : memref<2x48x48xf32, #tpu.memory_space<vmem>>, vector<1x48x48xf32>
    %29 = vector.shape_cast %28 : vector<1x48x48xf32> to vector<48x48xf32>
    %cst_29 = arith.constant dense<0.000000e+00> : vector<8x48xf32>
    %30 = tpu.matmul %26, %29, %cst_29 {dimension_numbers = #tpu.dot_dimension_numbers<[1], [0], [0], [1], [0, 0, 1, 1], [], []>, precision = #tpu.contract_precision<fp32>} : vector<8x48xf32>, vector<48x48xf32>, vector<8x48xf32> -> vector<8x48xf32>
    %31 = vector.broadcast %8 : vector<1x48xf32> to vector<8x48xf32>
    %32 = arith.addf %30, %31 : vector<8x48xf32>
    %c1 = arith.constant 1 : index
    %c0_30 = arith.constant 0 : index
    %c0_31 = arith.constant 0 : index
    %33 = vector.load %arg7[%c1, %c0_30, %c0_31] : memref<2x48x48xf32, #tpu.memory_space<vmem>>, vector<1x48x48xf32>
    %34 = vector.shape_cast %33 : vector<1x48x48xf32> to vector<48x48xf32>
    %cst_32 = arith.constant dense<0.000000e+00> : vector<8x48xf32>
    %35 = tpu.matmul %27, %34, %cst_32 {dimension_numbers = #tpu.dot_dimension_numbers<[1], [0], [0], [1], [0, 0, 1, 1], [], []>, precision = #tpu.contract_precision<fp32>} : vector<8x48xf32>, vector<48x48xf32>, vector<8x48xf32> -> vector<8x48xf32>
    %36 = vector.broadcast %9 : vector<1x48xf32> to vector<8x48xf32>
    %37 = arith.addf %35, %36 : vector<8x48xf32>
    %38 = vector.broadcast %7 : vector<1x48xf32> to vector<8x48xf32>
    %39 = arith.mulf %25, %38 : vector<8x48xf32>
    %40 = arith.addf %39, %32 : vector<8x48xf32>
    %41 = arith.addf %40, %37 : vector<8x48xf32>
    %cst_33 = arith.constant dense<0xFF800000> : vector<8xf32>
    %42 = vector.multi_reduction <maximumf>, %24, %cst_33 [1] : vector<8x16xf32> to vector<8xf32>
    %43 = vector.shape_cast %42 : vector<8xf32> to vector<8x1xf32>
    %44 = vector.broadcast %43 : vector<8x1xf32> to vector<8x16xf32>
    %45 = arith.subf %24, %44 : vector<8x16xf32>
    %46 = math.exp %45 : vector<8x16xf32>
    %cst_34 = arith.constant dense<0xFF800000> : vector<8xf32>
    %47 = vector.multi_reduction <maximumf>, %41, %cst_34 [1] : vector<8x48xf32> to vector<8xf32>
    %48 = vector.shape_cast %47 : vector<8xf32> to vector<8x1xf32>
    %49 = vector.broadcast %48 : vector<8x1xf32> to vector<8x48xf32>
    %50 = arith.subf %41, %49 : vector<8x48xf32>
    %51 = math.exp %50 : vector<8x48xf32>
    %cst_35 = arith.constant dense<0.000000e+00> : vector<8x2xf32>
    %52 = tpu.matmul %46, %3, %cst_35 {dimension_numbers = #tpu.dot_dimension_numbers<[1], [0], [0], [1], [0, 0, 1, 1], [], []>, precision = #tpu.contract_precision<fp32>} : vector<8x16xf32>, vector<16x2xf32>, vector<8x2xf32> -> vector<8x2xf32>
    %cst_36 = arith.constant dense<0.000000e+00> : vector<8x16xf32>
    %53 = tpu.matmul %52, %11, %cst_36 {dimension_numbers = #tpu.dot_dimension_numbers<[1], [0], [0], [1], [0, 0, 1, 1], [], []>, precision = #tpu.contract_precision<fp32>} : vector<8x2xf32>, vector<2x16xf32>, vector<8x16xf32> -> vector<8x16xf32>
    %54 = arith.divf %46, %53 : vector<8x16xf32>
    %cst_37 = arith.constant dense<0.000000e+00> : vector<8x6xf32>
    %55 = tpu.matmul %51, %5, %cst_37 {dimension_numbers = #tpu.dot_dimension_numbers<[1], [0], [0], [1], [0, 0, 1, 1], [], []>, precision = #tpu.contract_precision<fp32>} : vector<8x48xf32>, vector<48x6xf32>, vector<8x6xf32> -> vector<8x6xf32>
    %cst_38 = arith.constant dense<0.000000e+00> : vector<8x48xf32>
    %56 = tpu.matmul %55, %10, %cst_38 {dimension_numbers = #tpu.dot_dimension_numbers<[1], [0], [0], [1], [0, 0, 1, 1], [], []>, precision = #tpu.contract_precision<fp32>} : vector<8x6xf32>, vector<6x48xf32>, vector<8x48xf32> -> vector<8x48xf32>
    %57 = arith.divf %51, %56 : vector<8x48xf32>
    %cst_39 = arith.constant dense<0.000000e+00> : vector<128x16xf32>
    %58 = tpu.matmul %0, %54, %cst_39 {dimension_numbers = #tpu.dot_dimension_numbers<[1], [0], [0], [1], [0, 0, 1, 1], [], []>} : vector<128x8xf32>, vector<8x16xf32>, vector<128x16xf32> -> vector<128x16xf32>
    %cst_40 = arith.constant dense<0.000000e+00> : vector<128x48xf32>
    %59 = tpu.matmul %0, %57, %cst_40 {dimension_numbers = #tpu.dot_dimension_numbers<[1], [0], [0], [1], [0, 0, 1, 1], [], []>} : vector<128x8xf32>, vector<8x48xf32>, vector<128x48xf32> -> vector<128x48xf32>
    %60 = arith.mulf %16, %58 : vector<128x16xf32>
    %cst_41 = arith.constant dense<0.000000e+00> : vector<128x2xf32>
    %61 = tpu.matmul %60, %3, %cst_41 {dimension_numbers = #tpu.dot_dimension_numbers<[1], [0], [0], [1], [0, 0, 1, 1], [], []>} : vector<128x16xf32>, vector<16x2xf32>, vector<128x2xf32> -> vector<128x2xf32>
    %62 = arith.mulf %19, %59 : vector<128x48xf32>
    %cst_42 = arith.constant dense<0.000000e+00> : vector<128x6xf32>
    %63 = tpu.matmul %62, %5, %cst_42 {dimension_numbers = #tpu.dot_dimension_numbers<[1], [0], [0], [1], [0, 0, 1, 1], [], []>} : vector<128x48xf32>, vector<48x6xf32>, vector<128x6xf32> -> vector<128x6xf32>
    %64 = vector.extract_strided_slice %13 {offsets = [0, 0, 0], sizes = [1, 128, 2], strides = [1, 1, 1]} : vector<4x128x8xf32> to vector<1x128x2xf32>
    %65 = vector.shape_cast %64 : vector<1x128x2xf32> to vector<128x2xf32>
    %66 = arith.mulf %61, %65 : vector<128x2xf32>
    %67 = vector.extract_strided_slice %13 {offsets = [1, 0, 0], sizes = [1, 128, 2], strides = [1, 1, 1]} : vector<4x128x8xf32> to vector<1x128x2xf32>
    %68 = vector.shape_cast %67 : vector<1x128x2xf32> to vector<128x2xf32>
    %69 = arith.addf %66, %68 : vector<128x2xf32>
    %70 = vector.extract_strided_slice %13 {offsets = [2, 0, 0], sizes = [1, 128, 6], strides = [1, 1, 1]} : vector<4x128x8xf32> to vector<1x128x6xf32>
    %71 = vector.shape_cast %70 : vector<1x128x6xf32> to vector<128x6xf32>
    %72 = arith.mulf %63, %71 : vector<128x6xf32>
    %73 = vector.extract_strided_slice %13 {offsets = [3, 0, 0], sizes = [1, 128, 6], strides = [1, 1, 1]} : vector<4x128x8xf32> to vector<1x128x6xf32>
    %74 = vector.shape_cast %73 : vector<1x128x6xf32> to vector<128x6xf32>
    %75 = arith.addf %72, %74 : vector<128x6xf32>
    %c0_43 = arith.constant 0 : index
    %c0_44 = arith.constant 0 : index
    %76 = vector.load %arg1[%c0_43, %c0_44] : memref<128x256xf32, #tpu.memory_space<vmem>>, vector<128x256xf32>
    %77 = vector.extract_strided_slice %12 {offsets = [0, 0], sizes = [2, 256], strides = [1, 1]} : vector<8x256xf32> to vector<2x256xf32>
    %cst_45 = arith.constant dense<0.000000e+00> : vector<128x256xf32>
    %78 = tpu.matmul %69, %77, %cst_45 {dimension_numbers = #tpu.dot_dimension_numbers<[1], [0], [0], [1], [0, 0, 1, 1], [], []>} : vector<128x2xf32>, vector<2x256xf32>, vector<128x256xf32> -> vector<128x256xf32>
    %79 = arith.addf %76, %78 : vector<128x256xf32>
    %c0_46 = arith.constant 0 : index
    %c0_47 = arith.constant 0 : index
    %80 = vector.load %arg12[%c0_46, %c0_47] : memref<128x256xf32, #tpu.memory_space<vmem>>, vector<128x256xf32>
    tpu.vector_store %arg12[%c0_46, %c0_47], %79 {strides = array<i32>} : memref<128x256xf32, #tpu.memory_space<vmem>>, vector<128x256xf32>,
    %c0_48 = arith.constant 0 : index
    %c0_49 = arith.constant 0 : index
    %81 = vector.load %arg2[%c0_48, %c0_49] : memref<128x192xf32, #tpu.memory_space<vmem>>, vector<128x192xf32>
    %82 = vector.extract_strided_slice %12 {offsets = [2, 0], sizes = [6, 192], strides = [1, 1]} : vector<8x256xf32> to vector<6x192xf32>
    %cst_50 = arith.constant dense<0.000000e+00> : vector<128x192xf32>
    %83 = tpu.matmul %75, %82, %cst_50 {dimension_numbers = #tpu.dot_dimension_numbers<[1], [0], [0], [1], [0, 0, 1, 1], [], []>} : vector<128x6xf32>, vector<6x192xf32>, vector<128x192xf32> -> vector<128x192xf32>
    %84 = arith.addf %81, %83 : vector<128x192xf32>
    %c0_51 = arith.constant 0 : index
    %c0_52 = arith.constant 0 : index
    %85 = vector.load %arg13[%c0_51, %c0_52] : memref<128x192xf32, #tpu.memory_space<vmem>>, vector<128x192xf32>
    tpu.vector_store %arg13[%c0_51, %c0_52], %84 {strides = array<i32>} : memref<128x192xf32, #tpu.memory_space<vmem>>, vector<128x192xf32>,
    %c0_53 = arith.constant 0 : index
    %c0_54 = arith.constant 0 : index
    %86 = vector.load %arg14[%c0_53, %c0_54] : memref<8x48xf32, #tpu.memory_space<vmem>>, vector<8x48xf32>
    tpu.vector_store %arg14[%c0_53, %c0_54], %57 {strides = array<i32>} : memref<8x48xf32, #tpu.memory_space<vmem>>, vector<8x48xf32>,
    return
  }
  func.func @transform_0(%arg0: i32) -> (i32, i32) {
    %c0_i32 = arith.constant 0 : i32
    %c0_i32_0 = arith.constant 0 : i32
    return %arg0, %c0_i32 : i32, i32
  }
  func.func @transform_1(%arg0: i32) -> (i32, i32) {
    %c0_i32 = arith.constant 0 : i32
    %c0_i32_0 = arith.constant 0 : i32
    return %arg0, %c0_i32 : i32, i32
  }
  func.func @transform_2(%arg0: i32) -> (i32, i32) {
    %c0_i32 = arith.constant 0 : i32
    %c0_i32_0 = arith.constant 0 : i32
    %c0_i32_1 = arith.constant 0 : i32
    return %c0_i32, %c0_i32_0 : i32, i32
  }
  func.func @transform_3(%arg0: i32) -> (i32, i32) {
    %c0_i32 = arith.constant 0 : i32
    %c0_i32_0 = arith.constant 0 : i32
    %c0_i32_1 = arith.constant 0 : i32
    return %c0_i32, %c0_i32_0 : i32, i32
  }
  func.func @transform_4(%arg0: i32) -> (i32, i32) {
    %c0_i32 = arith.constant 0 : i32
    %c0_i32_0 = arith.constant 0 : i32
    %c0_i32_1 = arith.constant 0 : i32
    return %c0_i32, %c0_i32_0 : i32, i32
  }
  func.func @transform_5(%arg0: i32) -> (i32, i32) {
    %c0_i32 = arith.constant 0 : i32
    %c0_i32_0 = arith.constant 0 : i32
    %c0_i32_1 = arith.constant 0 : i32
    return %c0_i32, %c0_i32_0 : i32, i32
  }
  func.func @transform_6(%arg0: i32) -> (i32, i32, i32) {
    %c0_i32 = arith.constant 0 : i32
    %c0_i32_0 = arith.constant 0 : i32
    %c0_i32_1 = arith.constant 0 : i32
    %c0_i32_2 = arith.constant 0 : i32
    return %c0_i32, %c0_i32_0, %c0_i32_1 : i32, i32, i32
  }
  func.func @transform_7(%arg0: i32) -> (i32, i32, i32) {
    %c0_i32 = arith.constant 0 : i32
    %c0_i32_0 = arith.constant 0 : i32
    %c0_i32_1 = arith.constant 0 : i32
    %c0_i32_2 = arith.constant 0 : i32
    return %c0_i32, %c0_i32_0, %c0_i32_1 : i32, i32, i32
  }
  func.func @transform_8(%arg0: i32) -> (i32, i32) {
    %c0_i32 = arith.constant 0 : i32
    %c0_i32_0 = arith.constant 0 : i32
    %c0_i32_1 = arith.constant 0 : i32
    return %c0_i32, %c0_i32_0 : i32, i32
  }
  func.func @transform_9(%arg0: i32) -> (i32, i32) {
    %c0_i32 = arith.constant 0 : i32
    %c0_i32_0 = arith.constant 0 : i32
    %c0_i32_1 = arith.constant 0 : i32
    return %c0_i32, %c0_i32_0 : i32, i32
  }
  func.func @transform_10(%arg0: i32) -> (i32, i32, i32) {
    %c0_i32 = arith.constant 0 : i32
    %c0_i32_0 = arith.constant 0 : i32
    %c0_i32_1 = arith.constant 0 : i32
    %c0_i32_2 = arith.constant 0 : i32
    return %c0_i32, %c0_i32_0, %c0_i32_1 : i32, i32, i32
  }
  func.func @transform_11(%arg0: i32) -> (i32, i32) {
    %c0_i32 = arith.constant 0 : i32
    %c0_i32_0 = arith.constant 0 : i32
    return %arg0, %c0_i32 : i32, i32
  }
  func.func @transform_12(%arg0: i32) -> (i32, i32) {
    %c0_i32 = arith.constant 0 : i32
    %c0_i32_0 = arith.constant 0 : i32
    return %arg0, %c0_i32 : i32, i32
  }
  func.func @transform_13(%arg0: i32) -> (i32, i32) {
    %c0_i32 = arith.constant 0 : i32
    %c0_i32_0 = arith.constant 0 : i32
    return %arg0, %c0_i32 : i32, i32
  }
}

</mosaic_0001>

<bundles_post_ra>
// kernel: tile.14
= control target key start
LH: loop header
LB: loop body
LE: loop exit
PB: predicated region body
PF: predicated region fallthrough
CT: control target
= control target key end

     0   :  { %s7_s6 = smov 3  ;;  %s21_s9 = smov 3  ;;  %vm4_vm0 = vcmask 64512   ;;  %vm11_vm1 = vcmask 392512   ;;  %vm18_vm2 = vcmask 326912   ;;  %vm25_vm3 = vcmask 261312   ;;  %s93_s0 = inlined_call_operand.vmem [shape: f32[2,6,8], index: 0, kind: input, shape index: {}]   ;;  %s94_s1 = inlined_call_operand.vmem [shape: f32[2,48], index: 1, kind: output, shape index: {}]  }
   0x1   :  { %v47_v0 = vld [vmem:[%s93_s0 + $0x5] ss:$8 sm:%s7_s6]   ;;  %s57_s10 = smov 40   ;;  %v49_v1 = vld [vmem:[%s93_s0 + $0x3] ss:$8 sm:%s21_s9]   ;;  %s14_s13 = smov 3 }
   0x2   :  { %9 = vrot.lane.b32.xlu0 %v47_v0, %s57_s10  ;;  %s58_s14 = smov 24   ;;  %v48_v2 = vld [vmem:[%s93_s0 + $0x4] ss:$8 sm:%s14_s13]   ;;  %s28_s17 = smov 3  ;;  %vm32_vm4 = vcmask 195712   ;;  %vm39_vm5 = vcmask 130112  }
   0x3   :  { %23 = vrot.lane.b32.xlu1 %v49_v1, %s58_s14  ;;  %v50_v3 = vld [vmem:[%s93_s0 + $0x2] ss:$8 sm:%s28_s17]   ;;  %s35_s20 = smov 3  ;;  %s2_s21 = smov 3 }
   0x4   :  { %s59_s22 = smov 32   ;;  %v3_v4 = vld [vmem:[%s93_s0] ss:$8 sm:%s2_s21]   ;;  %s60_s25 = smov 16   ;;  %v51_v5 = vld [vmem:[%s93_s0 + $0x1] ss:$8 sm:%s35_s20]  }
   0x5   :  { %5 = vst.msk [vmem:[#allocation0] sm:$0x3] %vm4_vm0, %v3_v4   ;;  %s61_s0 = smov 8  }
   0x6   :  { %16 = vrot.lane.b32.xlu0 %v48_v2, %s59_s22 }
   0x7   :  { %30 = vrot.lane.b32.xlu1 %v50_v3, %s60_s25 }
   0xa   :  { %37 = vrot.lane.b32.xlu0 %v51_v5, %s61_s0 }
  0x74   :  { %v10_v6 = vpop.permute.xlu0 %9  }
  0x75   :  { %12 = vst.msk [vmem:[#allocation0] sm:$0x3] %vm11_vm1, %v10_v6   ;;  %v24_v7 = vpop.permute.xlu1 %23  }
  0x78   :  { %v17_v8 = vpop.permute.xlu0 %16  }
  0x79   :  { %19 = vst.msk [vmem:[#allocation0] sm:$0x3] %vm18_vm2, %v17_v8   ;;  %v31_v9 = vpop.permute.xlu1 %30  }
  0x7a   :  { %26 = vst.msk [vmem:[#allocation0] sm:$0x3] %vm25_vm3, %v24_v7  }
  0x7b   :  { %33 = vst.msk [vmem:[#allocation0] sm:$0x3] %vm32_vm4, %v31_v9  }
  0x7c   :  { %v38_v10 = vpop.permute.xlu0 %37  }
  0x7d   :  { %40 = vst.msk [vmem:[#allocation0] sm:$0x3] %vm39_vm5, %v38_v10  }
  0x84   :  { %v44_v11 = vld [vmem:[#allocation0] sm:$0x3] }
  0x85   :  { %46 = vst [vmem:[%s94_s1] sm:$0x3] %v44_v11 }

// kernel: dao_forward.1
= control target key start
LH: loop header
LB: loop body
LE: loop exit
PB: predicated region body
PF: predicated region fallthrough
CT: control target
= control target key end

     0   :  { %s9441_s25 = smov 0   ;;  %s11753_s0 = inlined_call_operand.vmem [shape: f32[512,256], index: 0, kind: input, shape index: {}, may-alias: {0,11}]   ;;  %s11754_s1 = inlined_call_operand.vmem [shape: f32[512,192], index: 1, kind: input, shape index: {}, may-alias: {1,12}]   ;;  %s11755_s2 = inlined_call_operand.vmem [shape: f32[256,16], index: 2, kind: input, shape index: {}]   ;;  %s11756_s3 = inlined_call_operand.vmem [shape: f32[192,48], index: 3, kind: input, shape index: {}]   ;;  %s11757_s4 = inlined_call_operand.vmem [shape: f32[24,128], index: 4, kind: input, shape index: {}]   ;;  %s11758_s5 = inlined_call_operand.vmem [shape: f32[128,8], index: 5, kind: input, shape index: {}]   ;;  %s11759_s6 = inlined_call_operand.vmem [shape: f32[2,48,48], index: 6, kind: input, shape index: {}]   ;;  %s11760_s7 = inlined_call_operand.vmem [shape: f32[2,48,8], index: 7, kind: input, shape index: {}]   ;;  %s11761_s8 = inlined_call_operand.vmem [shape: f32[11,48], index: 8, kind: input, shape index: {}]   ;;  %s11762_s9 = inlined_call_operand.vmem [shape: f32[8,256], index: 9, kind: input, shape index: {}]   ;;  %s11763_s10 = inlined_call_operand.vmem [shape: f32[4,128,8], index: 10, kind: input, shape index: {}]   ;;  %s11764_s11 = inlined_call_operand.vmem [shape: f32[512,256], index: 11, kind: output, shape index: {0}, may-alias: {0,11}]   ;;  %s11765_s12 = inlined_call_operand.vmem [shape: f32[512,192], index: 12, kind: output, shape index: {1}, may-alias: {1,12}]   ;;  %s11766_s13 = inlined_call_operand.vmem [shape: f32[32,48], index: 13, kind: output, shape index: {2}]  }
   0x1 LB: > { %s9447_s26 = sadd.s32 4294967295, %s9366_s25   ;;  %p7012_p0 = scmp.ge.s32.totalorder %s9366_s25, 1  ;;  %s9366_s25 = sphi %s9441_s25, %s24_s25  }
   0x2   : > { %p406_p1 = scmp.lt.s32.totalorder %s9366_s25, 5 }
   0x4   : > { %p407_p2 = pnand %p7012_p0, %p406_p1 }
   0x6   : > { %410 = sbr.rel (%p407_p2) target bundleno = 2473 (0x9a9), region = 64 }
   0xd   : > { %v640_v0 = vld [vmem:[%s11755_s2 + $0x80] sm:$0xff]  ;;  %v641_v1 = vld [vmem:[%s11755_s2 + $0x88] sm:$0xff]  ;;  %s7013_s16 = sshll.u32 %s9447_s26, 4  ;;  %v11777_v3 = vmov 0.0|0.0   ;;  %v642_v10 = vld [vmem:[%s11755_s2 + $0x90] sm:$0xff]  ;;  %vm857_vm0 = vcmask 523264  }
   0xe   : > { %v833_v2 = vld [vmem:[%s11756_s3] sm:$0xff]  ;;  %8716 = vmatprep.subr.bf16.mxu1 %v11777_v3  ;;  %v8684_v4 = vpack.c.bf16 %v641_v1, %v640_v0  ;;  %v834_v5 = vld [vmem:[%s11756_s3 + $0x8] sm:$0xff]  ;;  %v643_v11 = vld [vmem:[%s11755_s2 + $0x98] sm:$0xff]  ;;  %p9482_p3 = scmp.lt.s32.totalorder %s7013_s16, 63  ;;  %vm9369_vm1 = vmmov 0   ;;  %vm3553_vm2 = vcmask 130048  }
   0xf   : > { %v624_v6 = vld [vmem:[%s11755_s2] sm:$0xff]  ;;  %v625_v7 = vld [vmem:[%s11755_s2 + $0x8] sm:$0xff]  ;;  %v8717_v8 = vpack.c.bf16 %v834_v5, %v833_v2  ;;  %v835_v12 = vld [vmem:[%s11756_s3 + $0x10] sm:$0xff]  ;;  %v8688_v13 = vpack.c.bf16 %v643_v11, %v642_v10  ;;  %vm2506_vm3 = vcmask 392192   ;;  %vm4034_vm4 = vcmask 1041408   ;;  %p496_p4 = scmp.lt.s32.totalorder %s9447_s26, 3 }
  0x10   : > { %v8686_v9 = vpack.c.bf16 %v625_v7, %v624_v6  ;;  %8685 = vmatprep.subr.bf16.mxu0 %v8684_v4  ;;  %v836_v14 = vld [vmem:[%s11756_s3 + $0x18] sm:$0xff]  ;;  %v626_v15 = vld [vmem:[%s11755_s2 + $0x10] sm:$0xff]  ;;  %v644_v19 = vld [vmem:[%s11755_s2 + $0xa0] sm:$0xff]  ;;  %s12120_s16 = smov (!%p9482_p3, %s7013_s16), 63  ;;  %vm4030_vm5 = vcmask 15360   ;;  %vm5000_vm6 = vcmask 1044480  }
  0x11   : > { %v627_v16 = vld [vmem:[%s11755_s2 + $0x18] sm:$0xff]  ;;  %8718 = vmatpush1.bf16.msra.mxu1 %v8717_v8  ;;  %v8720_v17 = vpack.c.bf16 %v836_v14, %v835_v12  ;;  %v645_v20 = vld [vmem:[%s11755_s2 + $0xa8] sm:$0xff]  ;;  %v837_v21 = vld [vmem:[%s11756_s3 + $0x20] sm:$0xff]  ;;  %s9543_s23 = sshll.u32 %s12120_s16, 4  ;;  %vm5008_vm7 = vcmask 1045504   ;;  %vm5004_vm8 = vcmask 48128  }
  0x12   : > { %8687 = vmatpush3.bf16.msra.mxu0 %v8686_v9  ;;  %v8690_v18 = vpack.c.bf16 %v627_v16, %v626_v15  ;;  %8719 = vmatprep.subr.bf16.mxu1 %v11777_v3  ;;  %v8692_v22 = vpack.c.bf16 %v645_v20, %v644_v19  ;;  %v838_v23 = vld [vmem:[%s11756_s3 + $0x28] sm:$0xff]  ;;  %v628_v24 = vld [vmem:[%s11755_s2 + $0x20] sm:$0xff]  ;;  %v646_v26 = vld [vmem:[%s11755_s2 + $0xb0] sm:$0xff]  ;;  %s9562_s19 = scalar_lea.vmem %s11753_s0, %s9543_s23  ;;  %s9594_s28 = scalar_lea.vmem %s11754_s1, %s9543_s23  ;;  %vm5459_vm9 = vcmask 64512  }
  0x13   : > { %8689 = vmatprep.subr.bf16.mxu0 %v8688_v13  ;;  %v629_v25 = vld [vmem:[%s11755_s2 + $0x28] sm:$0xff]  ;;  %v647_v27 = vld [vmem:[%s11755_s2 + $0xb8] sm:$0xff]  ;;  %v8723_v28 = vpack.c.bf16 %v838_v23, %v837_v21  ;;  %v839_v30 = vld [vmem:[%s11756_s3 + $0x30] sm:$0xff]  ;;  %s12122_s26 = smov (!%p496_p4, %s9447_s26), 3  ;;  %s11420_s18 = scalar_lea.vmem %s11764_s11, %s9543_s23 }
  0x14   : > { %v8694_v29 = vpack.c.bf16 %v629_v25, %v628_v24  ;;  %v8696_v31 = vpack.c.bf16 %v647_v27, %v646_v26  ;;  %v840_v32 = vld [vmem:[%s11756_s3 + $0x38] sm:$0xff]  ;;  %v630_v33 = vld [vmem:[%s11755_s2 + $0x30] sm:$0xff]  ;;  %v648_v35 = vld [vmem:[%s11755_s2 + $0xc0] sm:$0xff]  ;;  %s7025_s24 = sshll.u32 %s12122_s26, 3  ;;  %s11674_s14 = scalar_lea.vmem %s11765_s12, %s9543_s23 }
  0x15   : > { %8721 = vmatpush1.bf16.msra.mxu1 %v8720_v17  ;;  %v631_v34 = vld [vmem:[%s11755_s2 + $0x38] sm:$0xff]  ;;  %v649_v36 = vld [vmem:[%s11755_s2 + $0xc8] sm:$0xff]  ;;  %v8726_v37 = vpack.c.bf16 %v840_v32, %v839_v30  ;;  %v841_v39 = vld [vmem:[%s11756_s3 + $0x40] sm:$0xff]  ;;  %s499_s30 = scalar_lea.vmem %s11766_s13, %s7025_s24 }
  0x16   : > { %8691 = vmatpush3.bf16.msra.mxu0 %v8690_v18  ;;  %8722 = vmatprep.subr.bf16.mxu1 %v11777_v3  ;;  %v8698_v38 = vpack.c.bf16 %v631_v34, %v630_v33  ;;  %v8700_v40 = vpack.c.bf16 %v649_v36, %v648_v35  ;;  %v842_v41 = vld [vmem:[%s11756_s3 + $0x48] sm:$0xff]  ;;  %v632_v42 = vld [vmem:[%s11755_s2 + $0x40] sm:$0xff]  ;;  %v650_v44 = vld [vmem:[%s11755_s2 + $0xd0] sm:$0xff] }
  0x17   : > { %8693 = vmatprep.subr.bf16.mxu0 %v8692_v22  ;;  %v633_v43 = vld [vmem:[%s11755_s2 + $0x48] sm:$0xff]  ;;  %v651_v45 = vld [vmem:[%s11755_s2 + $0xd8] sm:$0xff]  ;;  %v8729_v46 = vpack.c.bf16 %v842_v41, %v841_v39  ;;  %v843_v48 = vld [vmem:[%s11756_s3 + $0x50] sm:$0xff] }
  0x18   : > { %v8702_v47 = vpack.c.bf16 %v633_v43, %v632_v42  ;;  %v593_v49 = vld [vmem:[%s9562_s19 + $0x8] sm:$0xff]  ;;  %v8704_v50 = vpack.c.bf16 %v651_v45, %v650_v44  ;;  %v844_v51 = vld [vmem:[%s11756_s3 + $0x58] sm:$0xff]  ;;  %v634_v52 = vld [vmem:[%s11755_s2 + $0x50] sm:$0xff] }
  0x19   : > { %8724 = vmatpush1.bf16.msra.mxu1 %v8723_v28  ;;  %v635_v53 = vld [vmem:[%s11755_s2 + $0x58] sm:$0xff]  ;;  %v652_v54 = vld [vmem:[%s11755_s2 + $0xe0] sm:$0xff]  ;;  %v653_v55 = vld [vmem:[%s11755_s2 + $0xe8] sm:$0xff]  ;;  %720 = vmatprep.mubr.f32.mxu0 %v593_v49  ;;  %v8732_v56 = vpack.c.bf16 %v844_v51, %v843_v48 }
  0x1a   : > { %8695 = vmatpush3.bf16.msra.mxu0 %v8694_v29  ;;  %8725 = vmatprep.subr.bf16.mxu1 %v11777_v3  ;;  %v8706_v57 = vpack.c.bf16 %v635_v53, %v634_v52  ;;  %v845_v58 = vld [vmem:[%s11756_s3 + $0x60] sm:$0xff]  ;;  %v846_v59 = vld [vmem:[%s11756_s3 + $0x68] sm:$0xff]  ;;  %v8708_v60 = vpack.c.bf16 %v653_v55, %v652_v54  ;;  %v654_v0 = vld [vmem:[%s11755_s2 + $0xf0] sm:$0xff] }
  0x1b   : > { %8697 = vmatprep.subr.bf16.mxu0 %v8696_v31  ;;  %v636_v61 = vld [vmem:[%s11755_s2 + $0x60] sm:$0xff]  ;;  %v637_v62 = vld [vmem:[%s11755_s2 + $0x68] sm:$0xff]  ;;  %v655_v1 = vld [vmem:[%s11755_s2 + $0xf8] sm:$0xff]  ;;  %v8735_v2 = vpack.c.bf16 %v846_v59, %v845_v58 }
  0x1c   : > { %v802_v63 = vld [vmem:[%s9594_s28 + $0x8] sm:$0xff]  ;;  %v8710_v4 = vpack.c.bf16 %v637_v62, %v636_v61  ;;  %v847_v5 = vld [vmem:[%s11756_s3 + $0x70] sm:$0xff]  ;;  %v8712_v6 = vpack.c.bf16 %v655_v1, %v654_v0  ;;  %v848_v7 = vld [vmem:[%s11756_s3 + $0x78] sm:$0xff] }
  0x1d   : > { %8727 = vmatpush1.bf16.msra.mxu1 %v8726_v37  ;;  %7026 = vmatprep.mubr.msk.f32.mxu1 %vm857_vm0, %v802_v63  ;;  %v638_v8 = vld [vmem:[%s11755_s2 + $0x70] sm:$0xff]  ;;  %v639_v9 = vld [vmem:[%s11755_s2 + $0x78] sm:$0xff]  ;;  %v8738_v10 = vpack.c.bf16 %v848_v7, %v847_v5  ;;  %v849_v12 = vld [vmem:[%s11756_s3 + $0x80] sm:$0xff] }
  0x1e   : > { %8699 = vmatpush3.bf16.msra.mxu0 %v8698_v38  ;;  %8728 = vmatprep.subr.bf16.mxu1 %v11777_v3  ;;  %v8714_v11 = vpack.c.bf16 %v639_v9, %v638_v8  ;;  %v850_v13 = vld [vmem:[%s11756_s3 + $0x88] sm:$0xff]  ;;  %v592_v14 = vld [vmem:[%s9562_s19] sm:$0xff]  ;;  %v9640_v16 = vld [vmem:[%s9562_s19 + $0x18] sm:$0xff] }
  0x1f   : > { %8701 = vmatprep.subr.bf16.mxu0 %v8700_v40  ;;  %v8741_v15 = vpack.c.bf16 %v850_v13, %v849_v12  ;;  %11883 = vst [vmem:[#allocation2_spill] sm:$0xff] %v9640_v16  ;;  %v851_v17 = vld [vmem:[%s11756_s3 + $0x90] sm:$0xff]  ;;  %v852_v18 = vld [vmem:[%s11756_s3 + $0x98] sm:$0xff]  ;;  %v9655_v21 = vld [vmem:[%s9562_s19 + $0x28] sm:$0xff] }
  0x20   : > { %v9651_v19 = vld [vmem:[%s9562_s19 + $0x10] sm:$0xff]  ;;  %v8744_v20 = vpack.c.bf16 %v852_v18, %v851_v17  ;;  %11885 = vst [vmem:[#allocation4_spill] sm:$0xff] %v9655_v21  ;;  %v853_v22 = vld [vmem:[%s11756_s3 + $0xa0] sm:$0xff]  ;;  %v854_v23 = vld [vmem:[%s11756_s3 + $0xa8] sm:$0xff] }
  0x21   : > { %8730 = vmatpush1.bf16.msra.mxu1 %v8729_v46  ;;  %11884 = vst [vmem:[#allocation3_spill] sm:$0xff] %v9651_v19  ;;  %v9666_v24 = vld [vmem:[%s9562_s19 + $0x20] sm:$0xff]  ;;  %v8747_v25 = vpack.c.bf16 %v854_v23, %v853_v22  ;;  %v9670_v26 = vld [vmem:[%s9562_s19 + $0x38] sm:$0xff]  ;;  %v855_v27 = vld [vmem:[%s11756_s3 + $0xb0] sm:$0xff] }
  0x22   : > { %8703 = vmatpush3.bf16.msra.mxu0 %v8702_v47  ;;  %8731 = vmatprep.subr.bf16.mxu1 %v11777_v3  ;;  %11886 = vst [vmem:[#allocation5_spill] sm:$0xff] %v9666_v24  ;;  %11887 = vst [vmem:[#allocation6_spill] sm:$0xff] %v9670_v26  ;;  %v856_v28 = vld [vmem:[%s11756_s3 + $0xb8] sm:$0xff]  ;;  %v9681_v29 = vld [vmem:[%s9562_s19 + $0x30] sm:$0xff] }
  0x23   : > { %8705 = vmatprep.subr.bf16.mxu0 %v8704_v50  ;;  %11888 = vst [vmem:[#allocation7_spill] sm:$0xff] %v9681_v29  ;;  %v8750_v30 = vpack.c.bf16 %v856_v28, %v855_v27  ;;  %v9685_v31 = vld [vmem:[%s9562_s19 + $0x48] sm:$0xff]  ;;  %v801_v32 = vld [vmem:[%s9594_s28] sm:$0xff]  ;;  %v804_v34 = vld [vmem:[%s9594_s28 + $0x18] sm:$0xff]  ;;  %v11767_v28 = vmov 0.0  }
  0x24   : > { %11889 = vst [vmem:[#allocation8_spill] sm:$0xff] %v9685_v31  ;;  %v9691_v33 = vld [vmem:[%s9562_s19 + $0x40] sm:$0xff]  ;;  %v9695_v35 = vld [vmem:[%s9562_s19 + $0x58] sm:$0xff]  ;;  %v803_v36 = vld [vmem:[%s9594_s28 + $0x10] sm:$0xff] }
  0x25   : > { %8733 = vmatpush1.bf16.msra.mxu1 %v8732_v56  ;;  %11890 = vst [vmem:[#allocation9_spill] sm:$0xff] %v9691_v33  ;;  %11891 = vst [vmem:[#allocation10_spill] sm:$0xff] %v9695_v35  ;;  %v9703_v37 = vld [vmem:[%s9562_s19 + $0x50] sm:$0xff]  ;;  %v806_v38 = vld [vmem:[%s9594_s28 + $0x28] sm:$0xff] }
  0x26   : > { %8707 = vmatpush3.bf16.msra.mxu0 %v8706_v57  ;;  %8734 = vmatprep.subr.bf16.mxu1 %v11777_v3  ;;  %11892 = vst [vmem:[#allocation11_spill] sm:$0xff] %v9703_v37  ;;  %v9707_v39 = vld [vmem:[%s9562_s19 + $0x68] sm:$0xff]  ;;  %v805_v40 = vld [vmem:[%s9594_s28 + $0x20] sm:$0xff]  ;;  %v808_v42 = vld [vmem:[%s9594_s28 + $0x38] sm:$0xff] }
  0x27   : > { %8709 = vmatprep.subr.bf16.mxu0 %v8708_v60  ;;  %11893 = vst [vmem:[#allocation12_spill] sm:$0xff] %v9707_v39  ;;  %v9714_v41 = vld [vmem:[%s9562_s19 + $0x60] sm:$0xff]  ;;  %v9718_v43 = vld [vmem:[%s9562_s19 + $0x78] sm:$0xff]  ;;  %v807_v44 = vld [vmem:[%s9594_s28 + $0x30] sm:$0xff] }
  0x28   : > { %11894 = vst [vmem:[#allocation13_spill] sm:$0xff] %v9714_v41  ;;  %11895 = vst [vmem:[#allocation14_spill] sm:$0xff] %v9718_v43  ;;  %v9725_v45 = vld [vmem:[%s9562_s19 + $0x70] sm:$0xff]  ;;  %v810_v46 = vld [vmem:[%s9594_s28 + $0x48] sm:$0xff] }
  0x29   : > { %8736 = vmatpush1.bf16.msra.mxu1 %v8735_v2  ;;  %11896 = vst [vmem:[#allocation15_spill] sm:$0xff] %v9725_v45  ;;  %v9729_v47 = vld [vmem:[%s9562_s19 + $0x88] sm:$0xff]  ;;  %v809_v48 = vld [vmem:[%s9594_s28 + $0x40] sm:$0xff]  ;;  %v812_v50 = vld [vmem:[%s9594_s28 + $0x58] sm:$0xff] }
  0x2a   : > { %8711 = vmatpush3.bf16.msra.mxu0 %v8710_v4  ;;  %8737 = vmatprep.subr.bf16.mxu1 %v11777_v3  ;;  %11897 = vst [vmem:[#allocation16_spill] sm:$0xff] %v9729_v47  ;;  %v9736_v49 = vld [vmem:[%s9562_s19 + $0x80] sm:$0xff]  ;;  %v9740_v51 = vld [vmem:[%s9562_s19 + $0x98] sm:$0xff]  ;;  %v811_v52 = vld [vmem:[%s9594_s28 + $0x50] sm:$0xff] }
  0x2b   : > { %8713 = vmatprep.subr.bf16.mxu0 %v8712_v6  ;;  %11898 = vst [vmem:[#allocation17_spill] sm:$0xff] %v9736_v49  ;;  %11899 = vst [vmem:[#allocation18_spill] sm:$0xff] %v9740_v51  ;;  %v9747_v53 = vld [vmem:[%s9562_s19 + $0x90] sm:$0xff]  ;;  %v814_v54 = vld [vmem:[%s9594_s28 + $0x68] sm:$0xff] }
  0x2c   : > { %11900 = vst [vmem:[#allocation19_spill] sm:$0xff] %v9747_v53  ;;  %v9751_v55 = vld [vmem:[%s9562_s19 + $0xa8] sm:$0xff]  ;;  %v813_v56 = vld [vmem:[%s9594_s28 + $0x60] sm:$0xff]  ;;  %v816_v58 = vld [vmem:[%s9594_s28 + $0x78] sm:$0xff] }
  0x2d   : > { %8739 = vmatpush1.bf16.msra.mxu1 %v8738_v10  ;;  %11901 = vst [vmem:[#allocation20_spill] sm:$0xff] %v9751_v55  ;;  %v9758_v57 = vld [vmem:[%s9562_s19 + $0xa0] sm:$0xff]  ;;  %v9762_v59 = vld [vmem:[%s9562_s19 + $0xb8] sm:$0xff]  ;;  %v815_v60 = vld [vmem:[%s9594_s28 + $0x70] sm:$0xff] }
  0x2e   : > { %8715 = vmatpush3.bf16.msra.mxu0 %v8714_v11  ;;  %8740 = vmatprep.subr.bf16.mxu1 %v11777_v3  ;;  %11902 = vst [vmem:[#allocation21_spill] sm:$0xff] %v9758_v57  ;;  %11903 = vst [vmem:[#allocation22_spill] sm:$0xff] %v9762_v59  ;;  %v9769_v61 = vld [vmem:[%s9562_s19 + $0xb0] sm:$0xff]  ;;  %v818_v62 = vld [vmem:[%s9594_s28 + $0x88] sm:$0xff] }
  0x2f   : > { %8752 = vmatprep.subr.bf16.mxu0 %v11777_v3  ;;  %11904 = vst [vmem:[#allocation23_spill] sm:$0xff] %v9769_v61  ;;  %v9773_v63 = vld [vmem:[%s9562_s19 + $0xc8] sm:$0xff]  ;;  %v817_v0 = vld [vmem:[%s9594_s28 + $0x80] sm:$0xff]  ;;  %v820_v2 = vld [vmem:[%s9594_s28 + $0x98] sm:$0xff] }
  0x30   : > { %11905 = vst [vmem:[#allocation24_spill] sm:$0xff] %v9773_v63  ;;  %v9780_v1 = vld [vmem:[%s9562_s19 + $0xc0] sm:$0xff]  ;;  %v9784_v4 = vld [vmem:[%s9562_s19 + $0xd8] sm:$0xff]  ;;  %v819_v5 = vld [vmem:[%s9594_s28 + $0x90] sm:$0xff] }
  0x31   : > { %721 = vmatmul.mubr.f32.vlgmr.msra.gmra.mrb[0].mxu0 %v592_v14  ;;  %8742 = vmatpush1.bf16.msra.mxu1 %v8741_v15  ;;  %11906 = vst [vmem:[#allocation25_spill] sm:$0xff] %v9780_v1  ;;  %11907 = vst [vmem:[#allocation26_spill] sm:$0xff] %v9784_v4  ;;  %v9791_v6 = vld [vmem:[%s9562_s19 + $0xd0] sm:$0xff]  ;;  %v822_v7 = vld [vmem:[%s9594_s28 + $0xa8] sm:$0xff] }
  0x32   : > { %725 = vmatprep.mubr.f32.mxu0 %v9640_v16  ;;  %8743 = vmatprep.subr.bf16.mxu1 %v11777_v3  ;;  %11908 = vst [vmem:[#allocation27_spill] sm:$0xff] %v9791_v6  ;;  %v9795_v8 = vld [vmem:[%s9562_s19 + $0xe8] sm:$0xff]  ;;  %v821_v9 = vld [vmem:[%s9594_s28 + $0xa0] sm:$0xff]  ;;  %v824_v11 = vld [vmem:[%s9594_s28 + $0xb8] sm:$0xff] }
  0x33   : > { %11909 = vst [vmem:[#allocation28_spill] sm:$0xff] %v9795_v8  ;;  %v9802_v10 = vld [vmem:[%s9562_s19 + $0xe0] sm:$0xff]  ;;  %v9806_v12 = vld [vmem:[%s9562_s19 + $0xf8] sm:$0xff]  ;;  %v823_v13 = vld [vmem:[%s9594_s28 + $0xb0] sm:$0xff] }
  0x34   : > { %11910 = vst [vmem:[#allocation29_spill] sm:$0xff] %v9802_v10  ;;  %11911 = vst [vmem:[#allocation30_spill] sm:$0xff] %v9806_v12  ;;  %v9813_v14 = vld [vmem:[%s9562_s19 + $0xf0] sm:$0xff]  ;;  %v826_v15 = vld [vmem:[%s9594_s28 + $0xc8] sm:$0xff] }
  0x35   : > { %726 = vmatmul.mubr.f32.gmra.mrb[2].mxu0 %v9651_v19  ;;  %8745 = vmatpush1.bf16.msra.mxu1 %v8744_v20  ;;  %11912 = vst [vmem:[#allocation31_spill] sm:$0xff] %v9813_v14  ;;  %v825_v17 = vld [vmem:[%s9594_s28 + $0xc0] sm:$0xff]  ;;  %v828_v18 = vld [vmem:[%s9594_s28 + $0xd8] sm:$0xff]  ;;  %v827_v20 = vld [vmem:[%s9594_s28 + $0xd0] sm:$0xff] }
  0x36   : > { %730 = vmatprep.mubr.f32.mxu0 %v9655_v21  ;;  %8746 = vmatprep.subr.bf16.mxu1 %v11777_v3  ;;  %v830_v22 = vld [vmem:[%s9594_s28 + $0xe8] sm:$0xff]  ;;  %v829_v23 = vld [vmem:[%s9594_s28 + $0xe0] sm:$0xff]  ;;  %v831_v27 = vld [vmem:[%s9594_s28 + $0xf0] sm:$0xff] }
  0x39   : > { %731 = vmatmul.mubr.f32.gmra.mrb[4].mxu0 %v9666_v24  ;;  %8748 = vmatpush1.bf16.msra.mxu1 %v8747_v25  ;;  %v832_v25 = vld [vmem:[%s9594_s28 + $0xf8] sm:$0xff] }
  0x3a   : > { %735 = vmatprep.mubr.f32.mxu0 %v9670_v26  ;;  %8749 = vmatprep.subr.bf16.mxu1 %v11777_v3 }
  0x3d   : > { %736 = vmatmul.mubr.f32.gmra.mrb[6].mxu0 %v9681_v29  ;;  %8751 = vmatpush1.bf16.msra.mxu1 %v8750_v30 }
  0x3e   : > { %740 = vmatprep.mubr.f32.mxu0 %v9685_v31  ;;  %8896 = vmatprep.subr.bf16.mxu1 %v11777_v3 }
  0x40   : > { %971 = vmatmul.mubr.f32.vlgmr.msra.gmra.mrb[0].mxu1 %v801_v32 }
  0x41   : > { %741 = vmatmul.mubr.f32.gmra.mrb[8].mxu0 %v9691_v33  ;;  %7027 = vmatprep.mubr.msk.f32.mxu1 %vm857_vm0, %v804_v34 }
  0x42   : > { %745 = vmatprep.mubr.f32.mxu0 %v9695_v35 }
  0x44   : > { %976 = vmatmul.mubr.f32.gmra.mrb[2].mxu1 %v803_v36 }
  0x45   : > { %746 = vmatmul.mubr.f32.gmra.mrb[10].mxu0 %v9703_v37  ;;  %7028 = vmatprep.mubr.msk.f32.mxu1 %vm857_vm0, %v806_v38 }
  0x46   : > { %750 = vmatprep.mubr.f32.mxu0 %v9707_v39 }
  0x48   : > { %981 = vmatmul.mubr.f32.gmra.mrb[4].mxu1 %v805_v40 }
  0x49   : > { %751 = vmatmul.mubr.f32.gmra.mrb[12].mxu0 %v9714_v41  ;;  %7029 = vmatprep.mubr.msk.f32.mxu1 %vm857_vm0, %v808_v42 }
  0x4a   : > { %755 = vmatprep.mubr.f32.mxu0 %v9718_v43 }
  0x4c   : > { %986 = vmatmul.mubr.f32.gmra.mrb[6].mxu1 %v807_v44 }
  0x4d   : > { %756 = vmatmul.mubr.f32.gmra.mrb[14].mxu0 %v9725_v45  ;;  %7030 = vmatprep.mubr.msk.f32.mxu1 %vm857_vm0, %v810_v46 }
  0x4e   : > { %760 = vmatprep.mubr.f32.mxu0 %v9729_v47 }
  0x50   : > { %991 = vmatmul.mubr.f32.gmra.mrb[8].mxu1 %v809_v48 }
  0x51   : > { %761 = vmatmul.mubr.f32.gmra.mrb[16].mxu0 %v9736_v49  ;;  %7031 = vmatprep.mubr.msk.f32.mxu1 %vm857_vm0, %v812_v50 }
  0x52   : > { %765 = vmatprep.mubr.f32.mxu0 %v9740_v51 }
  0x54   : > { %996 = vmatmul.mubr.f32.gmra.mrb[10].mxu1 %v811_v52 }
  0x55   : > { %766 = vmatmul.mubr.f32.gmra.mrb[18].mxu0 %v9747_v53  ;;  %7032 = vmatprep.mubr.msk.f32.mxu1 %vm857_vm0, %v814_v54 }
  0x56   : > { %770 = vmatprep.mubr.f32.mxu0 %v9751_v55 }
  0x58   : > { %1001 = vmatmul.mubr.f32.gmra.mrb[12].mxu1 %v813_v56 }
  0x59   : > { %771 = vmatmul.mubr.f32.gmra.mrb[20].mxu0 %v9758_v57  ;;  %7033 = vmatprep.mubr.msk.f32.mxu1 %vm857_vm0, %v816_v58 }
  0x5a   : > { %775 = vmatprep.mubr.f32.mxu0 %v9762_v59 }
  0x5c   : > { %1006 = vmatmul.mubr.f32.gmra.mrb[14].mxu1 %v815_v60 }
  0x5d   : > { %776 = vmatmul.mubr.f32.gmra.mrb[22].mxu0 %v9769_v61  ;;  %7034 = vmatprep.mubr.msk.f32.mxu1 %vm857_vm0, %v818_v62 }
  0x5e   : > { %780 = vmatprep.mubr.f32.mxu0 %v9773_v63 }
  0x60   : > { %1011 = vmatmul.mubr.f32.gmra.mrb[16].mxu1 %v817_v0 }
  0x61   : > { %781 = vmatmul.mubr.f32.gmra.mrb[24].mxu0 %v9780_v1  ;;  %7035 = vmatprep.mubr.msk.f32.mxu1 %vm857_vm0, %v820_v2  ;;  %v11930_v1 = vmov 0.0|0.0  }
  0x62   : > { %785 = vmatprep.mubr.f32.mxu0 %v9784_v4 }
  0x64   : > { %1016 = vmatmul.mubr.f32.gmra.mrb[18].mxu1 %v819_v5 }
  0x65   : > { %786 = vmatmul.mubr.f32.gmra.mrb[26].mxu0 %v9791_v6  ;;  %7036 = vmatprep.mubr.msk.f32.mxu1 %vm857_vm0, %v822_v7 }
  0x66   : > { %790 = vmatprep.mubr.f32.mxu0 %v9795_v8 }
  0x68   : > { %1021 = vmatmul.mubr.f32.gmra.mrb[20].mxu1 %v821_v9 }
  0x69   : > { %791 = vmatmul.mubr.f32.gmra.mrb[28].mxu0 %v9802_v10  ;;  %7037 = vmatprep.mubr.msk.f32.mxu1 %vm857_vm0, %v824_v11 }
  0x6a   : > { %795 = vmatprep.mubr.f32.mxu0 %v9806_v12 }
  0x6c   : > { %1026 = vmatmul.mubr.f32.gmra.mrb[22].mxu1 %v823_v13 }
  0x6d   : > { %796 = vmatmul.mubr.f32.gmra.mrb[30].mxu0 %v9813_v14  ;;  %7038 = vmatprep.mubr.msk.f32.mxu1 %vm857_vm0, %v826_v15 }
  0x6e   : > { %7736 = vmatprep.mubr.msk.f32.mxu0 %vm9369_vm1, %v11767_v28 }
  0x70   : > { %1031 = vmatmul.mubr.f32.gmra.mrb[24].mxu1 %v825_v17 }
  0x71   : > { %7039 = vmatprep.mubr.msk.f32.mxu1 %vm857_vm0, %v828_v18 }
  0x74   : > { %1036 = vmatmul.mubr.f32.gmra.mrb[26].mxu1 %v827_v20 }
  0x75   : > { %7040 = vmatprep.mubr.msk.f32.mxu1 %vm857_vm0, %v830_v22 }
  0x78   : > { %1041 = vmatmul.mubr.f32.gmra.mrb[28].mxu1 %v829_v23 }
  0x79   : > { %7041 = vmatprep.mubr.msk.f32.mxu1 %vm857_vm0, %v832_v25 }
  0x7c   : > { %1046 = vmatmul.mubr.f32.gmra.mrb[30].mxu1 %v831_v27 }
  0x7d   : > { %7982 = vmatprep.mubr.msk.f32.mxu1 %vm9369_vm1, %v11767_v28 }
 0x104   : > { %v7186_v30 = vpop.f32.mrb[0].mxu0 }
 0x105   : > { %v7187_v32 = vpop.f32.mrb[1].mxu0 }
 0x106   : > { %v9832_v34 = vadd.f32 %v7187_v32, %v7186_v30 }
 0x108   : > { %11913 = vst [vmem:[#allocation32_spill] sm:$0xff] %v9832_v34  ;;  %v7189_v36 = vpop.f32.mrb[2].mxu0  ;;  %v1055_v40 = vand.u32 4294901760, %v9832_v34 }
 0x109   : > { %v7190_v38 = vpop.f32.mrb[3].mxu0 }
 0x10a   : > { %v9835_v42 = vadd.f32 %v7190_v38, %v7189_v36  ;;  %v9838_v44 = vsub.f32 %v9832_v34, %v1055_v40 }
 0x10c   : > { %11914 = vst [vmem:[#allocation33_spill] sm:$0xff] %v9835_v42  ;;  %v1058_v46 = vand.u32 4294901760, %v9835_v42  ;;  %v7192_v48 = vpop.f32.mrb[4].mxu0  ;;  %v11772_v58 = vand.u32 4294901760, %v9838_v44 }
 0x10d   : > { %v7193_v50 = vpop.f32.mrb[5].mxu0 }
 0x10e   : > { %v9841_v52 = vpack.c.bf16 %v1058_v46, %v1055_v40  ;;  %v9844_v54 = vsub.f32 %v9835_v42, %v1058_v46  ;;  %v9846_v56 = vadd.f32 %v7193_v50, %v7192_v48 }
 0x110   : > { %11915 = vst [vmem:[#allocation34_spill] sm:$0xff] %v9846_v56  ;;  %v11771_v60 = vand.u32 4294901760, %v9844_v54  ;;  %v7195_v62 = vpop.f32.mrb[6].mxu0  ;;  %8754 = vmatpush3.bf16.msra.mxu0 %v9841_v52  ;;  %v1061_v2 = vand.u32 4294901760, %v9846_v56 }
 0x111   : > { %v7196_v0 = vpop.f32.mrb[7].mxu0  ;;  %8755 = vmatprep.subr.bf16.mxu0 %v11777_v3 }
 0x112   : > { %v9853_v5 = vadd.f32 %v7196_v0, %v7195_v62  ;;  %v9859_v7 = vpack.c.bf16 %v11771_v60, %v11772_v58  ;;  %v9864_v11 = vsub.f32 %v9846_v56, %v1061_v2 }
 0x113   : > { %v9861_v9 = vpop.f32.mrb[0].mxu1 }
 0x114   : > { %11916 = vst [vmem:[#allocation35_spill] sm:$0xff] %v9853_v5  ;;  %11917 = vst [vmem:[#allocation36_spill] sm:$0xff] %v9859_v7  ;;  %v1064_v13 = vand.u32 4294901760, %v9853_v5  ;;  %v7198_v15 = vpop.f32.mrb[8].mxu0  ;;  %v1770_v17 = vand.u32 4294901760, %v9861_v9  ;;  %v974_v18 = vpop.f32.mrb[1].mxu1 }
 0x115   : > { %11918 = vst [vmem:[#allocation37_spill] sm:$0xff] %v9861_v9  ;;  %v7199_v20 = vpop.f32.mrb[9].mxu0  ;;  %v11770_v32 = vand.u32 4294901760, %v9864_v11  ;;  %v11970_v7 = vand.u32 4294901760, %v9838_v44 }
 0x116   : > { %v9868_v22 = vpack.c.bf16 %v1064_v13, %v1061_v2  ;;  %v9871_v23 = vsub.f32 %v9853_v5, %v1064_v13  ;;  %v9873_v25 = vadd.f32 %v7199_v20, %v7198_v15  ;;  %v9876_v27 = vsub.f32 %v9861_v9, %v1770_v17 }
 0x117   : > { %v9878_v30 = vpop.f32.mrb[2].mxu1 }
 0x118   : > { %11919 = vst [vmem:[#allocation38_spill] sm:$0xff] %v9868_v22  ;;  %11920 = vst [vmem:[#allocation39_spill] sm:$0xff] %v9873_v25  ;;  %v11769_v36 = vand.u32 4294901760, %v9871_v23  ;;  %v7201_v38 = vpop.f32.mrb[10].mxu0  ;;  %8757 = vmatpush3.bf16.msra.mxu0 %v9868_v22  ;;  %v1883_v40 = vand.u32 4294901760, %v9876_v27  ;;  %v1773_v46 = vand.u32 4294901760, %v9878_v30 }
 0x119   : > { %11921 = vst [vmem:[#allocation40_spill] sm:$0xff] %v9878_v30  ;;  %v979_v48 = vpop.f32.mrb[3].mxu1  ;;  %v7202_v50 = vpop.f32.mrb[11].mxu0  ;;  %8758 = vmatprep.subr.bf16.mxu0 %v11777_v3  ;;  %v1067_v62 = vand.u32 4294901760, %v9873_v25 }
 0x11a   : > { %v9887_v0 = vadd.f32 %v7202_v50, %v7201_v38  ;;  %v9893_v2 = vpack.c.bf16 %v11769_v36, %v11770_v32  ;;  %v9895_v13 = vpack.c.bf16 %v1773_v46, %v1770_v17  ;;  %v9898_v15 = vsub.f32 %v9878_v30, %v1773_v46 }
 0x11b   : > { %v9900_v18 = vpop.f32.mrb[4].mxu1  ;;  %v9903_v20 = vsub.f32 %v9873_v25, %v1067_v62  ;;  %v1884_v50 = vsub.f32 %v9876_v27, %v1883_v40 }
 0x11c   : > { %11922 = vst [vmem:[#allocation41_spill] sm:$0xff] %v9887_v0  ;;  %11923 = vst [vmem:[#allocation42_spill] sm:$0xff] %v9893_v2  ;;  %v1070_v48 = vand.u32 4294901760, %v9887_v0  ;;  %v7204_v38 = vpop.f32.mrb[12].mxu0  ;;  %v1890_v28 = vand.u32 4294901760, %v9898_v15  ;;  %v1776_v36 = vand.u32 4294901760, %v9900_v18  ;;  %8898 = vmatpush3.bf16.msra.mxu1 %v9895_v13 }
 0x11d   : > { %11924 = vst [vmem:[#allocation43_spill] sm:$0xff] %v9895_v13  ;;  %11925 = vst [vmem:[#allocation44_spill] sm:$0xff] %v9900_v18  ;;  %v984_v32 = vpop.f32.mrb[5].mxu1  ;;  %v7205_v17 = vpop.f32.mrb[13].mxu0  ;;  %8899 = vmatprep.subr.bf16.mxu1 %v11777_v3  ;;  %v11788_v46 = vand.u32 4294901760, %v9903_v20 }
 0x11e   : > { %v9913_v60 = vpack.c.bf16 %v1070_v48, %v1067_v62  ;;  %v9916_v58 = vsub.f32 %v9887_v0, %v1070_v48  ;;  %v9918_v12 = vadd.f32 %v7205_v17, %v7204_v38  ;;  %v1891_v14 = vsub.f32 %v9898_v15, %v1890_v28 }
 0x11f   : > { %v9922_v8 = vsub.f32 %v9900_v18, %v1776_v36  ;;  %v9924_v32 = vpack.c.bf16 %v1890_v28, %v1883_v40  ;;  %v9926_v10 = vpop.f32.mrb[6].mxu1  ;;  %v1885_v48 = vand.u32 4294901760, %v1884_v50 }
 0x120   : > { %11926 = vst [vmem:[#allocation45_spill] sm:$0xff] %v9913_v60  ;;  %11927 = vst [vmem:[#allocation46_spill] sm:$0xff] %v9918_v12  ;;  %v11787_v3 = vand.u32 4294901760, %v9916_v58  ;;  %v7207_v62 = vpop.f32.mrb[14].mxu0  ;;  %8760 = vmatpush3.bf16.msra.mxu0 %v9913_v60  ;;  %v1892_v4 = vand.u32 4294901760, %v1891_v14  ;;  %v1779_v17 = vand.u32 4294901760, %v9926_v10 }
 0x121   : > { %11928 = vst [vmem:[#allocation47_spill] sm:$0xff] %v9924_v32  ;;  %11929 = vst [vmem:[#allocation48_spill] sm:$0xff] %v9926_v10  ;;  %v1897_v38 = vand.u32 4294901760, %v9922_v8  ;;  %v989_v6 = vpop.f32.mrb[7].mxu1  ;;  %v7208_v63 = vpop.f32.mrb[15].mxu0  ;;  %8761 = vmatprep.subr.bf16.mxu0 %v11930_v1  ;;  %v1073_v28 = vand.u32 4294901760, %v9918_v12 }
 0x122   : > { %v9935_v40 = vadd.f32 %v7208_v63, %v7207_v62  ;;  %v9941_v59 = vpack.c.bf16 %v11787_v3, %v11788_v46  ;;  %v9943_v50 = vpack.c.bf16 %v1779_v17, %v1776_v36  ;;  %v9946_v14 = vsub.f32 %v9926_v10, %v1779_v17 }
 0x123   : > { %v9948_v61 = vpack.c.bf16 %v1892_v4, %v1885_v48  ;;  %v9950_v6 = vpop.f32.mrb[8].mxu1  ;;  %v9953_v55 = vsub.f32 %v9918_v12, %v1073_v28  ;;  %v1898_v57 = vsub.f32 %v9922_v8, %v1897_v38 }
 0x124   : > { %11931 = vst [vmem:[#allocation49_spill] sm:$0xff] %v9935_v40  ;;  %11932 = vst [vmem:[#allocation50_spill] sm:$0xff] %v9941_v59  ;;  %v1076_v63 = vand.u32 4294901760, %v9935_v40  ;;  %v7210_v62 = vpop.f32.mrb[16].mxu0  ;;  %v1904_v3 = vand.u32 4294901760, %v9946_v14  ;;  %v1782_v36 = vand.u32 4294901760, %v9950_v6  ;;  %8901 = vmatpush3.bf16.msra.mxu1 %v9943_v50 }
 0x125   : > { %11933 = vst [vmem:[#allocation51_spill] sm:$0xff] %v9943_v50  ;;  %11934 = vst [vmem:[#allocation52_spill] sm:$0xff] %v9950_v6  ;;  %v994_v46 = vpop.f32.mrb[9].mxu1  ;;  %v7211_v17 = vpop.f32.mrb[17].mxu0  ;;  %8902 = vmatprep.subr.bf16.mxu1 %v11930_v1  ;;  %v11940_v35 = vand.u32 4294901760, %v9953_v55 }
 0x126   : > { %v9963_v48 = vpack.c.bf16 %v1076_v63, %v1073_v28  ;;  %v9966_v51 = vsub.f32 %v9935_v40, %v1076_v63  ;;  %v9968_v53 = vadd.f32 %v7211_v17, %v7210_v62  ;;  %v1905_v47 = vsub.f32 %v9946_v14, %v1904_v3  ;;  %v1051_v63 = vld [vmem:[%s11757_s4] sm:$0xff] }
 0x127   : > { %v9972_v49 = vsub.f32 %v9950_v6, %v1782_v36  ;;  %v9974_v46 = vpack.c.bf16 %v1904_v3, %v1897_v38  ;;  %v9976_v43 = vpop.f32.mrb[10].mxu1  ;;  %v1899_v62 = vand.u32 4294901760, %v1898_v57  ;;  %v10009_v29 = vand.u32 4294901760, %v1051_v63 }
 0x128   : > { %11935 = vst [vmem:[#allocation53_spill] sm:$0xff] %v9963_v48  ;;  %11936 = vst [vmem:[#allocation54_spill] sm:$0xff] %v9968_v53  ;;  %v7213_v28 = vpop.f32.mrb[18].mxu0  ;;  %8763 = vmatpush3.bf16.msra.mxu0 %v9963_v48  ;;  %v1906_v17 = vand.u32 4294901760, %v1905_v47  ;;  %v1785_v3 = vand.u32 4294901760, %v9976_v43  ;;  %v999_v38 = vpop.f32.mrb[11].mxu1 }
 0x129   : > { %11937 = vst [vmem:[#allocation55_spill] sm:$0xff] %v9974_v46  ;;  %11938 = vst [vmem:[#allocation56_spill] sm:$0xff] %v9976_v43  ;;  %v1911_v39 = vand.u32 4294901760, %v9972_v49  ;;  %v7214_v41 = vpop.f32.mrb[19].mxu0  ;;  %8764 = vmatprep.subr.bf16.mxu0 %v11930_v1  ;;  %v1079_v4 = vand.u32 4294901760, %v9968_v53  ;;  %v11941_v37 = vand.u32 4294901760, %v9966_v51 }
 0x12a   : > { %v9988_v45 = vadd.f32 %v7214_v41, %v7213_v28  ;;  %v9996_v57 = vpack.c.bf16 %v1785_v3, %v1782_v36  ;;  %v9999_v47 = vsub.f32 %v9976_v43, %v1785_v3  ;;  %v10001_v33 = vpack.c.bf16 %v1906_v17, %v1899_v62 }
 0x12b   : > { %v9994_v31 = vpack.c.bf16 %v11941_v37, %v11940_v35  ;;  %v10003_v38 = vpop.f32.mrb[12].mxu1  ;;  %v10006_v26 = vsub.f32 %v9968_v53, %v1079_v4  ;;  %v1912_v35 = vsub.f32 %v9972_v49, %v1911_v39 }
 0x12c   : > { %11939 = vst [vmem:[#allocation57_spill] sm:$0xff] %v9988_v45  ;;  %11943 = vst [vmem:[#allocation59_spill] sm:$0xff] %v9996_v57  ;;  %v1082_v41 = vand.u32 4294901760, %v9988_v45  ;;  %v7216_v28 = vpop.f32.mrb[20].mxu0  ;;  %v1918_v37 = vand.u32 4294901760, %v9999_v47  ;;  %v1788_v36 = vand.u32 4294901760, %v10003_v38  ;;  %8904 = vmatpush3.bf16.msra.mxu1 %v9996_v57 }
 0x12d   : > { %11942 = vst [vmem:[#allocation58_spill] sm:$0xff] %v9994_v31  ;;  %11944 = vst [vmem:[#allocation60_spill] sm:$0xff] %v10003_v38  ;;  %v1004_v3 = vpop.f32.mrb[13].mxu1  ;;  %v7217_v62 = vpop.f32.mrb[21].mxu0  ;;  %8905 = vmatprep.subr.bf16.mxu1 %v11930_v1 }
 0x12e   : > { %v10018_v21 = vpack.c.bf16 %v1082_v41, %v1079_v4  ;;  %v10021_v24 = vsub.f32 %v9988_v45, %v1082_v41  ;;  %v10023_v16 = vadd.f32 %v7217_v62, %v7216_v28  ;;  %v1919_v19 = vsub.f32 %v9999_v47, %v1918_v37  ;;  %v1052_v28 = vld [vmem:[%s11757_s4 + $0x8] sm:$0xff] }
 0x12f   : > { %v10027_v6 = vsub.f32 %v10003_v38, %v1788_v36  ;;  %v10029_v3 = vpack.c.bf16 %v1918_v37, %v1911_v39  ;;  %v10031_v43 = vpop.f32.mrb[14].mxu1  ;;  %v10037_v41 = vsub.f32 %v1051_v63, %v10009_v29  ;;  %v1913_v62 = vand.u32 4294901760, %v1912_v35 }
 0x130   : > { %11945 = vst [vmem:[#allocation61_spill] sm:$0xff] %v10018_v21  ;;  %11946 = vst [vmem:[#allocation62_spill] sm:$0xff] %v10023_v16  ;;  %v7219_v4 = vpop.f32.mrb[22].mxu0  ;;  %8766 = vmatpush3.bf16.msra.mxu0 %v10018_v21  ;;  %v1920_v38 = vand.u32 4294901760, %v1919_v19  ;;  %v1791_v37 = vand.u32 4294901760, %v10031_v43  ;;  %v1009_v10 = vpop.f32.mrb[15].mxu1 }
 0x131   : > { %11947 = vst [vmem:[#allocation63_spill] sm:$0xff] %v10029_v3  ;;  %11948 = vst [vmem:[#allocation64_spill] sm:$0xff] %v10031_v43  ;;  %v1925_v39 = vand.u32 4294901760, %v10027_v6  ;;  %v7220_v17 = vpop.f32.mrb[23].mxu0  ;;  %8767 = vmatprep.subr.bf16.mxu0 %v11930_v1  ;;  %v1085_v18 = vand.u32 4294901760, %v10023_v16  ;;  %v11950_v63 = vand.u32 4294901760, %v10006_v26 }
 0x132   : > { %v10046_v9 = vadd.f32 %v7220_v17, %v7219_v4  ;;  %v11951_v30 = vand.u32 4294901760, %v10021_v24  ;;  %v10054_v35 = vpack.c.bf16 %v1791_v37, %v1788_v36  ;;  %v10057_v19 = vsub.f32 %v10031_v43, %v1791_v37 }
 0x133   : > { %v10059_v53 = vpack.c.bf16 %v1920_v38, %v1913_v62  ;;  %v10061_v10 = vpop.f32.mrb[16].mxu1  ;;  %v10064_v40 = vsub.f32 %v10023_v16, %v1085_v18  ;;  %v10068_v12 = vand.u32 4294901760, %v10037_v41  ;;  %v1926_v36 = vsub.f32 %v10027_v6, %v1925_v39 }
 0x134   : > { %11949 = vst [vmem:[#allocation65_spill] sm:$0xff] %v10046_v9  ;;  %v10052_v45 = vpack.c.bf16 %v11951_v30, %v11950_v63  ;;  %11953 = vst [vmem:[#allocation67_spill] sm:$0xff] %v10054_v35  ;;  %v1088_v17 = vand.u32 4294901760, %v10046_v9  ;;  %v7222_v4 = vpop.f32.mrb[24].mxu0  ;;  %v10070_v30 = vand.u32 4294901760, %v1052_v28  ;;  %v1932_v37 = vand.u32 4294901760, %v10057_v19  ;;  %8907 = vmatpush3.bf16.msra.mxu1 %v10054_v35 }
 0x135   : > { %11954 = vst [vmem:[#allocation68_spill] sm:$0xff] %v10061_v10  ;;  %11955 = vst [vmem:[#allocation69_spill] sm:$0xff] %v10068_v12  ;;  %v1794_v38 = vand.u32 4294901760, %v10061_v10  ;;  %v1014_v62 = vpop.f32.mrb[17].mxu1  ;;  %v7223_v63 = vpop.f32.mrb[25].mxu0  ;;  %8908 = vmatprep.subr.bf16.mxu1 %v11930_v1  ;;  %v11962_v3 = vand.u32 4294901760, %v10064_v40 }
 0x136   : > { %11952 = vst [vmem:[#allocation66_spill] sm:$0xff] %v10052_v45  ;;  %v10078_v16 = vpack.c.bf16 %v1088_v17, %v1085_v18  ;;  %v10081_v0 = vsub.f32 %v10046_v9, %v1088_v17  ;;  %v10083_v25 = vadd.f32 %v7223_v63, %v7222_v4  ;;  %v1933_v5 = vsub.f32 %v10057_v19, %v1932_v37 }
 0x137   : > { %v10088_v56 = vsub.f32 %v10061_v10, %v1794_v38  ;;  %v10090_v62 = vpack.c.bf16 %v1932_v37, %v1925_v39  ;;  %v10093_v34 = vpop.f32.mrb[18].mxu1  ;;  %v1138_v17 = vsub.f32 %v10037_v41, %v10068_v12  ;;  %v10100_v4 = vsub.f32 %v1052_v28, %v10070_v30 }
 0x138   : > { %11956 = vst [vmem:[#allocation70_spill] sm:$0xff] %v10078_v16  ;;  %11957 = vst [vmem:[#allocation71_spill] sm:$0xff] %v10083_v25  ;;  %v7225_v43 = vpop.f32.mrb[26].mxu0  ;;  %8769 = vmatpush3.bf16.msra.mxu0 %v10078_v16  ;;  %v1927_v63 = vand.u32 4294901760, %v1926_v36  ;;  %v1934_v10 = vand.u32 4294901760, %v1933_v5  ;;  %v1797_v37 = vand.u32 4294901760, %v10093_v34 }
 0x139   : > { %11958 = vst [vmem:[#allocation72_spill] sm:$0xff] %v10090_v62  ;;  %11959 = vst [vmem:[#allocation73_spill] sm:$0xff] %v10093_v34  ;;  %v1939_v39 = vand.u32 4294901760, %v10088_v56  ;;  %v1019_v42 = vpop.f32.mrb[19].mxu1  ;;  %v7226_v9 = vpop.f32.mrb[27].mxu0  ;;  %8770 = vmatprep.subr.bf16.mxu0 %v11930_v1  ;;  %v1091_v18 = vand.u32 4294901760, %v10083_v25 }
 0x13a   : > { %11960 = vst [vmem:[#allocation74_spill] sm:$0xff] %v10100_v4  ;;  %v10106_v62 = vadd.f32 %v7226_v9, %v7225_v43  ;;  %v11963_v46 = vand.u32 4294901760, %v10081_v0  ;;  %v10114_v36 = vpack.c.bf16 %v1797_v37, %v1794_v38  ;;  %v10117_v5 = vsub.f32 %v10093_v34, %v1797_v37  ;;  %v1053_v42 = vld [vmem:[%s11757_s4 + $0x10] sm:$0xff] }
 0x13b   : > { %v10119_v45 = vpack.c.bf16 %v1934_v10, %v1927_v63  ;;  %v10125_v43 = vsub.f32 %v10083_v25, %v1091_v18  ;;  %v10127_v9 = vpop.f32.mrb[20].mxu1  ;;  %v10133_v38 = vand.u32 4294901760, %v10100_v4  ;;  %v1940_v10 = vsub.f32 %v10088_v56, %v1939_v39 }
 0x13c   : > { %11961 = vst [vmem:[#allocation75_spill] sm:$0xff] %v10106_v62  ;;  %v10112_v28 = vpack.c.bf16 %v11963_v46, %v11962_v3  ;;  %11965 = vst [vmem:[#allocation77_spill] sm:$0xff] %v10114_v36  ;;  %v1094_v32 = vand.u32 4294901760, %v10106_v62  ;;  %v7228_v46 = vpop.f32.mrb[28].mxu0  ;;  %v10130_v3 = vand.u32 4294901760, %v1138_v17  ;;  %v1946_v63 = vand.u32 4294901760, %v10117_v5  ;;  %8910 = vmatpush3.bf16.msra.mxu1 %v10114_v36 }
 0x13d   : > { %11966 = vst [vmem:[#allocation78_spill] sm:$0xff] %v10127_v9  ;;  %11967 = vst [vmem:[#allocation79_spill] sm:$0xff] %v10133_v38  ;;  %v1800_v37 = vand.u32 4294901760, %v10127_v9  ;;  %v1024_v34 = vpop.f32.mrb[21].mxu1  ;;  %v7229_v25 = vpop.f32.mrb[29].mxu0  ;;  %8911 = vmatprep.subr.bf16.mxu1 %v11930_v1  ;;  %v10149_v2 = vand.u32 4294901760, %v1053_v42 }
 0x13e   : > { %11964 = vst [vmem:[#allocation76_spill] sm:$0xff] %v10112_v28  ;;  %v10141_v31 = vpack.c.bf16 %v1094_v32, %v1091_v18  ;;  %v10144_v17 = vsub.f32 %v10106_v62, %v1094_v32  ;;  %v10146_v59 = vadd.f32 %v7229_v25, %v7228_v46  ;;  %v1167_v34 = vsub.f32 %v9838_v44, %v11970_v7 }
 0x13f   : > { %v1947_v12 = vsub.f32 %v10117_v5, %v1946_v63  ;;  %v10156_v36 = vsub.f32 %v10127_v9, %v1800_v37  ;;  %v10158_v18 = vpack.c.bf16 %v1946_v63, %v1939_v39  ;;  %v11973_v32 = vand.u32 4294901760, %v9844_v54  ;;  %v10165_v62 = vpop.f32.mrb[22].mxu1 }
 0x140   : > { %11968 = vst [vmem:[#allocation80_spill] sm:$0xff] %v10141_v31  ;;  %11969 = vst [vmem:[#allocation81_spill] sm:$0xff] %v10146_v59  ;;  %v7231_v35 = vpop.f32.mrb[30].mxu0  ;;  %8772 = vmatpush3.bf16.msra.mxu0 %v10141_v31  ;;  %v1148_v7 = vsub.f32 %v10100_v4, %v10133_v38  ;;  %v1941_v9 = vand.u32 4294901760, %v1940_v10  ;;  %v1803_v63 = vand.u32 4294901760, %v10165_v62  ;;  %v1097_v28 = vand.u32 4294901760, %v10146_v59 }
 0x141   : > { %11971 = vst [vmem:[#allocation82_spill] sm:$0xff] %v10156_v36  ;;  %11972 = vst [vmem:[#allocation83_spill] sm:$0xff] %v10158_v18  ;;  %v1174_v25 = vsub.f32 %v9844_v54, %v11973_v32  ;;  %v1948_v57 = vand.u32 4294901760, %v1947_v12  ;;  %v1953_v39 = vand.u32 4294901760, %v10156_v36  ;;  %v1029_v18 = vpop.f32.mrb[23].mxu1  ;;  %v7232_v32 = vpop.f32.mrb[31].mxu0  ;;  %8773 = vmatprep.subr.bf16.mxu0 %v11930_v1  ;;  %v10177_v16 = vsub.f32 %v1053_v42, %v10149_v2 }
 0x142   : > { %11974 = vst [vmem:[#allocation84_spill] sm:$0xff] %v10165_v62  ;;  %v10174_v46 = vadd.f32 %v7232_v32, %v7231_v35  ;;  %v11977_v31 = vand.u32 4294901760, %v10125_v43  ;;  %v11978_v10 = vand.u32 4294901760, %v10144_v17  ;;  %v10185_v38 = vpack.c.bf16 %v1803_v63, %v1800_v37 }
 0x143   : > { %11976 = vst [vmem:[#allocation86_spill] sm:$0xff] %v10177_v16  ;;  %v10188_v18 = vsub.f32 %v10165_v62, %v1803_v63  ;;  %v1168_v50 = vand.u32 4294901760, %v1167_v34  ;;  %v10190_v21 = vpack.c.bf16 %v1948_v57, %v1941_v9  ;;  %v11982_v35 = vand.u32 4294901760, %v9864_v11  ;;  %v10199_v48 = vpop.f32.mrb[24].mxu1 }
 0x144   : > { %11975 = vst [vmem:[#allocation85_spill] sm:$0xff] %v10174_v46  ;;  %v10183_v12 = vpack.c.bf16 %v11978_v10, %v11977_v31  ;;  %11980 = vst [vmem:[#allocation88_spill] sm:$0xff] %v10185_v38  ;;  %v10196_v42 = vsub.f32 %v10146_v59, %v1097_v28  ;;  %v1100_v13 = vand.u32 4294901760, %v10174_v46  ;;  %v1175_v31 = vand.u32 4294901760, %v1174_v25  ;;  %v1034_v57 = vpop.f32.mrb[25].mxu1  ;;  %8913 = vmatpush3.bf16.msra.mxu1 %v10185_v38 }
 0x145   : > { %11981 = vst [vmem:[#allocation89_spill] sm:$0xff] %v10188_v18  ;;  %v1181_v32 = vsub.f32 %v9864_v11, %v11982_v35  ;;  %11983 = vst [vmem:[#allocation90_spill] sm:$0xff] %v10199_v48  ;;  %v1954_v37 = vsub.f32 %v10156_v36, %v1953_v39  ;;  %v1960_v63 = vand.u32 4294901760, %v10188_v18  ;;  %v1806_v34 = vand.u32 4294901760, %v10199_v48  ;;  %8914 = vmatprep.subr.bf16.mxu1 %v11930_v1 }
 0x146   : > { %11979 = vst [vmem:[#allocation87_spill] sm:$0xff] %v10183_v12  ;;  %v11984_v10 = vand.u32 4294901760, %v9871_v23  ;;  %v10210_v62 = vpack.c.bf16 %v1100_v13, %v1097_v28  ;;  %v10213_v25 = vsub.f32 %v10174_v46, %v1100_v13  ;;  %v10216_v59 = vand.u32 4294901760, %v1148_v7 }
 0x147   : > { %v1961_v57 = vsub.f32 %v10188_v18, %v1960_v63  ;;  %v10220_v12 = vsub.f32 %v10199_v48, %v1806_v34  ;;  %v10223_v9 = vand.u32 4294901760, %v10177_v16  ;;  %v10225_v38 = vpack.c.bf16 %v1960_v63, %v1953_v39  ;;  %v10229_v13 = vpop.f32.mrb[26].mxu1 }
 0x148   : > { %v1188_v35 = vsub.f32 %v9871_v23, %v11984_v10  ;;  %11985 = vst [vmem:[#allocation91_spill] sm:$0xff] %v10210_v62  ;;  %11989 = vst [vmem:[#allocation95_spill] sm:$0xff] %v10229_v13  ;;  %8775 = vmatpush3.bf16.msra.mxu0 %v10210_v62  ;;  %v8777_v7 = vpack.c.bf16 %v1175_v31, %v1168_v50  ;;  %v1182_v46 = vand.u32 4294901760, %v1181_v32  ;;  %v1955_v60 = vand.u32 4294901760, %v1954_v37  ;;  %v1039_v36 = vpop.f32.mrb[27].mxu1 }
 0x149   : > { %11986 = vst [vmem:[#allocation92_spill] sm:$0xff] %v10220_v12  ;;  %11987 = vst [vmem:[#allocation93_spill] sm:$0xff] %v10223_v9  ;;  %v1962_v22 = vand.u32 4294901760, %v1961_v57  ;;  %v1967_v48 = vand.u32 4294901760, %v10220_v12  ;;  %v1809_v4 = vand.u32 4294901760, %v10229_v13  ;;  %8776 = vmatprep.subr.bf16.mxu0 %v11930_v1  ;;  %v11990_v39 = vand.u32 4294901760, %v9903_v20 }
 0x14a   : > { %11988 = vst [vmem:[#allocation94_spill] sm:$0xff] %v10225_v38  ;;  %v11991_v10 = vand.u32 4294901760, %v9916_v58  ;;  %v1189_v38 = vand.u32 4294901760, %v1188_v35  ;;  %v11992_v50 = vand.u32 4294901760, %v10196_v42  ;;  %v11993_v32 = vand.u32 4294901760, %v10213_v25 }
 0x14b   : > { %v1195_v63 = vsub.f32 %v9903_v20, %v11990_v39  ;;  %v10247_v37 = vpack.c.bf16 %v1809_v4, %v1806_v34  ;;  %v10250_v36 = vsub.f32 %v10229_v13, %v1809_v4  ;;  %7737 = vmatmul.mubr.f32.vlgmr.msra.gmra.mrb[32].mxu0 %v10130_v3  ;;  %v1157_v57 = vsub.f32 %v10177_v16, %v10223_v9  ;;  %v10263_v34 = vpop.f32.mrb[28].mxu1 }
 0x14c   : > { %v1202_v28 = vsub.f32 %v9916_v58, %v11991_v10  ;;  %v10245_v31 = vpack.c.bf16 %v11993_v32, %v11992_v50  ;;  %v10255_v39 = vpack.c.bf16 %v1962_v22, %v1955_v60  ;;  %v11996_v35 = vand.u32 4294901760, %v9953_v55  ;;  %11998 = vst [vmem:[#allocation98_spill] sm:$0xff] %v10263_v34  ;;  %8778 = vmatpush3.bf16.msra.mxu0 %v8777_v7  ;;  %v1044_v22 = vpop.f32.mrb[29].mxu1 }
 0x14d   : > { %11995 = vst [vmem:[#allocation97_spill] sm:$0xff] %v10247_v37  ;;  %v11997_v62 = vand.u32 4294901760, %v9966_v51  ;;  %v11999_v4 = vmov 0.0   ;;  %v1968_v32 = vsub.f32 %v10220_v12, %v1967_v48  ;;  %v1974_v13 = vand.u32 4294901760, %v10250_v36  ;;  %8916 = vmatpush3.bf16.msra.mxu1 %v10247_v37  ;;  %8779 = vmatprep.subr.bf16.mxu0 %v11930_v1 }
 0x14e   : > { %11994 = vst [vmem:[#allocation96_spill] sm:$0xff] %v10245_v31  ;;  %v1209_v10 = vsub.f32 %v9953_v55, %v11996_v35  ;;  %7739 = vmatprep.mubr.msk.f32.mxu0 %vm9369_vm1, %v11999_v4  ;;  %v1812_v60 = vand.u32 4294901760, %v10263_v34  ;;  %v8780_v35 = vpack.c.bf16 %v1189_v38, %v1182_v46  ;;  %8917 = vmatprep.subr.bf16.mxu1 %v11930_v1  ;;  %v1196_v7 = vand.u32 4294901760, %v1195_v63 }
 0x14f   : > { %v1216_v50 = vsub.f32 %v9966_v51, %v11997_v62  ;;  %v1203_v31 = vand.u32 4294901760, %v1202_v28  ;;  %v1975_v9 = vsub.f32 %v10250_v36, %v1974_v13  ;;  %7740 = vmatmul.mubr.f32.gmra.mrb[34].mxu0 %v10216_v59  ;;  %v10280_v22 = vand.u32 4294901760, %v1157_v57  ;;  %v10284_v18 = vpop.f32.mrb[30].mxu1 }
 0x150   : > { %v10277_v16 = vsub.f32 %v10263_v34, %v1812_v60  ;;  %v10282_v37 = vpack.c.bf16 %v1974_v13, %v1967_v48  ;;  %12001 = vst [vmem:[#allocation100_spill] sm:$0xff] %v10284_v18  ;;  %8781 = vmatpush3.bf16.msra.mxu0 %v8780_v35  ;;  %v1210_v62 = vand.u32 4294901760, %v1209_v10  ;;  %7742 = vmatprep.mubr.msk.f32.mxu0 %vm9369_vm1, %v11999_v4  ;;  %v1969_v46 = vand.u32 4294901760, %v1968_v32  ;;  %v1049_v12 = vpop.f32.mrb[31].mxu1 }
 0x151   : > { %v1217_v38 = vand.u32 4294901760, %v1216_v50  ;;  %v1976_v28 = vand.u32 4294901760, %v1975_v9  ;;  %v1815_v34 = vand.u32 4294901760, %v10284_v18  ;;  %8782 = vmatprep.subr.bf16.mxu0 %v11930_v1  ;;  %v12002_v48 = vand.u32 4294901760, %v10006_v26 }
 0x152   : > { %12000 = vst [vmem:[#allocation99_spill] sm:$0xff] %v10282_v37  ;;  %v1981_v63 = vand.u32 4294901760, %v10277_v16  ;;  %v12003_v57 = vand.u32 4294901760, %v10021_v24  ;;  %v8783_v50 = vpack.c.bf16 %v1203_v31, %v1196_v7 }
 0x153   : > { %v1223_v13 = vsub.f32 %v10006_v26, %v12002_v48  ;;  %v10297_v35 = vpack.c.bf16 %v1815_v34, %v1812_v60  ;;  %v10300_v9 = vsub.f32 %v10284_v18, %v1815_v34  ;;  %7743 = vmatmul.mubr.f32.gmra.mrb[36].mxu0 %v10280_v22  ;;  %v10303_v32 = vpack.c.bf16 %v1976_v28, %v1969_v46 }
 0x154   : > { %v1230_v10 = vsub.f32 %v10021_v24, %v12003_v57  ;;  %8784 = vmatpush3.bf16.msra.mxu0 %v8783_v50  ;;  %7777 = vmatprep.mubr.msk.f32.mxu0 %vm9369_vm1, %v11999_v4  ;;  %v1982_v12 = vsub.f32 %v10277_v16, %v1981_v63  ;;  %v8786_v31 = vpack.c.bf16 %v1217_v38, %v1210_v62  ;;  %v12005_v60 = vand.u32 4294901760, %v10064_v40 }
 0x155   : > { %12004 = vst [vmem:[#allocation101_spill] sm:$0xff] %v10297_v35  ;;  %v1988_v48 = vand.u32 4294901760, %v10300_v9  ;;  %8919 = vmatpush3.bf16.msra.mxu1 %v10297_v35  ;;  %8785 = vmatprep.subr.bf16.mxu0 %v11930_v1  ;;  %v12006_v46 = vand.u32 4294901760, %v10081_v0  ;;  %v1224_v57 = vand.u32 4294901760, %v1223_v13  ;;  %v12007_v62 = vand.u32 4294901760, %v10125_v43 }
 0x156   : > { %v1237_v7 = vsub.f32 %v10064_v40, %v12005_v60  ;;  %8920 = vmatprep.subr.bf16.mxu1 %v11930_v1  ;;  %v1231_v50 = vand.u32 4294901760, %v1230_v10  ;;  %v12008_v34 = vand.u32 4294901760, %v10144_v17 }
 0x157   : > { %v1244_v28 = vsub.f32 %v10081_v0, %v12006_v46  ;;  %v1989_v18 = vsub.f32 %v10300_v9, %v1988_v48  ;;  %v10321_v37 = vpack.c.bf16 %v1988_v48, %v1981_v63  ;;  %v1251_v38 = vsub.f32 %v10125_v43, %v12007_v62  ;;  %v12041_v62 = vld [vmem:[#allocation97_spill] sm:$0xff] }
 0x158   : > { %v1258_v60 = vsub.f32 %v10144_v17, %v12008_v34  ;;  %8787 = vmatpush3.bf16.msra.mxu0 %v8786_v31  ;;  %7983 = vmatmul.mubr.f32.vlgmr.msra.gmra.mrb[32].mxu1 %v10130_v3  ;;  %v1983_v46 = vand.u32 4294901760, %v1982_v12  ;;  %v8789_v63 = vpack.c.bf16 %v1231_v50, %v1224_v57  ;;  %v1238_v13 = vand.u32 4294901760, %v1237_v7  ;;  %v12040_v50 = vld [vmem:[#allocation42_spill] sm:$0xff] }
 0x159   : > { %v1990_v35 = vand.u32 4294901760, %v1989_v18  ;;  %8922 = vmatpush3.bf16.msra.mxu1 %v9948_v61  ;;  %8788 = vmatprep.subr.bf16.mxu0 %v11930_v1  ;;  %v1245_v10 = vand.u32 4294901760, %v1244_v28  ;;  %v12009_v34 = vand.u32 4294901760, %v10196_v42  ;;  %v12010_v3 = vand.u32 4294901760, %v10213_v25 }
 0x15a   : > { %8923 = vmatprep.subr.bf16.mxu1 %v11930_v1  ;;  %7985 = vmatprep.mubr.msk.f32.mxu1 %vm9369_vm1, %v11999_v4  ;;  %v1252_v61 = vand.u32 4294901760, %v1251_v38  ;;  %v1259_v12 = vand.u32 4294901760, %v1258_v60  ;;  %v12042_v38 = vld [vmem:[#allocation93_spill] sm:$0xff]  ;;  %v12043_v60 = vld [vmem:[#allocation50_spill] sm:$0xff] }
 0x15b   : > { %v8942_v48 = vpack.c.bf16 %v1990_v35, %v1983_v46  ;;  %v1265_v31 = vsub.f32 %v10196_v42, %v12009_v34  ;;  %v1272_v18 = vsub.f32 %v10213_v25, %v12010_v3  ;;  %v8792_v35 = vpack.c.bf16 %v1245_v10, %v1238_v13  ;;  %v12046_v13 = vld [vmem:[#allocation47_spill] sm:$0xff]  ;;  %v12047_v10 = vld [vmem:[#allocation66_spill] sm:$0xff]  ;;  %v12049_v34 = vld [vmem:[#allocation76_spill] sm:$0xff] }
 0x15c   : > { %8790 = vmatpush3.bf16.msra.mxu0 %v8789_v63  ;;  %7986 = vmatmul.mubr.f32.gmra.mrb[34].mxu1 %v10216_v59  ;;  %v8795_v7 = vpack.c.bf16 %v1259_v12, %v1252_v61  ;;  %v8810_v59 = vpack.c.bf16 %v9966_v51, %v9953_v55  ;;  %v12012_v51 = vpack.c.bf16 %v9946_v14, %v9922_v8  ;;  %v12024_v14 = vld [vmem:[#allocation45_spill] sm:$0xff]  ;;  %v12045_v63 = vld [vmem:[#allocation58_spill] sm:$0xff]  ;;  %v12051_v3 = vld [vmem:[#allocation87_spill] sm:$0xff] }
 0x15d   : > { %8925 = vmatpush3.bf16.msra.mxu1 %v10001_v33  ;;  %8791 = vmatprep.subr.bf16.mxu0 %v11930_v1  ;;  %v1266_v28 = vand.u32 4294901760, %v1265_v31  ;;  %v1273_v57 = vand.u32 4294901760, %v1272_v18  ;;  %v8816_v55 = vpack.c.bf16 %v10081_v0, %v10064_v40  ;;  %v12014_v8 = vpack.c.bf16 %v10057_v19, %v10027_v6  ;;  %v12020_v0 = vld [vmem:[#allocation38_spill] sm:$0xff]  ;;  %v12027_v19 = vld [vmem:[#allocation43_spill] sm:$0xff]  ;;  %v12044_v46 = vld [vmem:[#allocation101_spill] sm:$0xff] }
 0x15e   : > { %8926 = vmatprep.subr.bf16.mxu1 %v11930_v1  ;;  %7988 = vmatprep.mubr.msk.f32.mxu1 %vm9369_vm1, %v11999_v4  ;;  %v12023_v40 = vld [vmem:[#allocation86_spill] sm:$0xff]  ;;  %v12025_v6 = vpack.c.bf16 %v10300_v9, %v10277_v16  ;;  %v12029_v16 = vld [vmem:[#allocation51_spill] sm:$0xff]  ;;  %v12038_v9 = vld [vmem:[#allocation88_spill] sm:$0xff] }
 0x15f   : > { %v8798_v33 = vpack.c.bf16 %v1273_v57, %v1266_v28  ;;  %v12050_v31 = vld [vmem:[#allocation63_spill] sm:$0xff]  ;;  %v12052_v18 = vld [vmem:[#allocation72_spill] sm:$0xff] }
 0x160   : > { %8793 = vmatpush3.bf16.msra.mxu0 %v8792_v35  ;;  %7989 = vmatmul.mubr.f32.gmra.mrb[36].mxu1 %v10280_v22  ;;  %v12037_v22 = vld [vmem:[#allocation36_spill] sm:$0xff]  ;;  %v12054_v12 = vld [vmem:[#allocation83_spill] sm:$0xff]  ;;  %v12055_v35 = vld [vmem:[#allocation94_spill] sm:$0xff] }
 0x161   : > { %8928 = vmatpush3.bf16.msra.mxu1 %v10059_v53  ;;  %8794 = vmatprep.subr.bf16.mxu0 %v11930_v1  ;;  %v8801_v53 = vpack.c.bf16 %v9844_v54, %v9838_v44  ;;  %v12011_v44 = vpack.c.bf16 %v9898_v15, %v9876_v27  ;;  %v8813_v54 = vpack.c.bf16 %v10021_v24, %v10006_v26  ;;  %v12021_v15 = vld [vmem:[#allocation92_spill] sm:$0xff] }
 0x162   : > { %8929 = vmatprep.subr.bf16.mxu1 %v11930_v1  ;;  %8023 = vmatprep.mubr.msk.f32.mxu1 %vm9369_vm1, %v11999_v4  ;;  %v12013_v24 = vpack.c.bf16 %v9999_v47, %v9972_v49  ;;  %v8819_v26 = vpack.c.bf16 %v10144_v17, %v10125_v43  ;;  %v8822_v49 = vpack.c.bf16 %v10213_v25, %v10196_v42  ;;  %v12026_v47 = vld [vmem:[#allocation53_spill] sm:$0xff]  ;;  %v12031_v43 = vld [vmem:[#allocation59_spill] sm:$0xff]  ;;  %v12032_v17 = vld [vmem:[#allocation80_spill] sm:$0xff] }
 0x163   : > { %v12033_v42 = vld [vmem:[#allocation67_spill] sm:$0xff]  ;;  %v12053_v61 = vld [vmem:[#allocation96_spill] sm:$0xff] }
 0x164   : > { %8796 = vmatpush3.bf16.msra.mxu0 %v8795_v7  ;;  %v12034_v25 = vld [vmem:[#allocation91_spill] sm:$0xff] }
 0x165   : > { %8931 = vmatpush3.bf16.msra.mxu1 %v10119_v45  ;;  %8797 = vmatprep.subr.bf16.mxu0 %v11930_v1  ;;  %v8807_v45 = vpack.c.bf16 %v9916_v58, %v9903_v20  ;;  %v12015_v58 = vpack.c.bf16 %v10117_v5, %v10088_v56  ;;  %v12019_v56 = vld [vmem:[#allocation74_spill] sm:$0xff]  ;;  %v12022_v20 = vpack.c.bf16 %v10250_v36, %v12021_v15  ;;  %v12028_v5 = vld [vmem:[#allocation61_spill] sm:$0xff]  ;;  %v12056_v7 = vld [vmem:[#allocation99_spill] sm:$0xff] }
 0x166   : > { %8932 = vmatprep.subr.bf16.mxu1 %v11930_v1  ;;  %v12035_v36 = vld [vmem:[#allocation77_spill] sm:$0xff] }
 0x168   : > { %8799 = vmatpush3.bf16.msra.mxu0 %v8798_v33 }
 0x169   : > { %8934 = vmatpush3.bf16.msra.mxu1 %v10190_v21  ;;  %8800 = vmatprep.subr.bf16.mxu0 %v11930_v1  ;;  %v8804_v21 = vpack.c.bf16 %v9871_v23, %v9864_v11  ;;  %v12016_v11 = vld [vmem:[#allocation89_spill] sm:$0xff]  ;;  %v12017_v23 = vld [vmem:[#allocation82_spill] sm:$0xff] }
 0x16a   : > { %8935 = vmatprep.subr.bf16.mxu1 %v11930_v1  ;;  %v12018_v27 = vpack.c.bf16 %v12016_v11, %v12017_v23  ;;  %v2500_v11 = vld [vmem:[%s11759_s6 + $0x20] sm:$0xff]  ;;  %v2501_v23 = vld [vmem:[%s11759_s6 + $0x28] sm:$0xff] }
 0x16b   : > { %7778 = vmatmul.mubr.f32.vlgmr.msra.gmra.mrb[32].mxu0 %v10009_v29 }
 0x16c   : > { %8802 = vmatpush3.bf16.msra.mxu0 %v8801_v53  ;;  %7780 = vmatprep.mubr.msk.f32.mxu0 %vm9369_vm1, %v11999_v4 }
 0x16d   : > { %8937 = vmatpush3.bf16.msra.mxu1 %v10255_v39  ;;  %8803 = vmatprep.subr.bf16.mxu0 %v11930_v1  ;;  %v12036_v39 = vld [vmem:[#allocation69_spill] sm:$0xff] }
 0x16e   : > { %8938 = vmatprep.subr.bf16.mxu1 %v11930_v1 }
 0x16f   : > { %7781 = vmatmul.mubr.f32.gmra.mrb[38].mxu0 %v10070_v30 }
 0x170   : > { %8805 = vmatpush3.bf16.msra.mxu0 %v8804_v21  ;;  %7783 = vmatprep.mubr.msk.f32.mxu0 %vm9369_vm1, %v11999_v4 }
 0x171   : > { %8940 = vmatpush3.bf16.msra.mxu1 %v10303_v32  ;;  %8806 = vmatprep.subr.bf16.mxu0 %v11930_v1  ;;  %v12039_v32 = vld [vmem:[#allocation79_spill] sm:$0xff] }
 0x172   : > { %8941 = vmatprep.subr.bf16.mxu1 %v11930_v1 }
 0x173   : > { %7784 = vmatmul.mubr.f32.gmra.mrb[40].mxu0 %v10149_v2 }
 0x174   : > { %8808 = vmatpush3.bf16.msra.mxu0 %v8807_v45  ;;  %7818 = vmatprep.mubr.msk.f32.mxu0 %vm9369_vm1, %v11999_v4  ;;  %v2498_v45 = vld [vmem:[%s11759_s6 + $0x10] sm:$0xff] }
 0x175   : > { %8943 = vmatpush3.bf16.msra.mxu1 %v8942_v48  ;;  %8809 = vmatprep.subr.bf16.mxu0 %v11930_v1  ;;  %v12048_v48 = vld [vmem:[#allocation55_spill] sm:$0xff] }
 0x176   : > { %8944 = vmatprep.subr.bf16.mxu1 %v11930_v1 }
 0x178   : > { %8811 = vmatpush3.bf16.msra.mxu0 %v8810_v59  ;;  %8024 = vmatmul.mubr.f32.vlgmr.msra.gmra.mrb[32].mxu1 %v10009_v29  ;;  %v2499_v59 = vld [vmem:[%s11759_s6 + $0x18] sm:$0xff] }
 0x179   : > { %8946 = vmatpush3.bf16.msra.mxu1 %v12011_v44  ;;  %8812 = vmatprep.subr.bf16.mxu0 %v11930_v1 }
 0x17a   : > { %8947 = vmatprep.subr.bf16.mxu1 %v11930_v1  ;;  %8026 = vmatprep.mubr.msk.f32.mxu1 %vm9369_vm1, %v11999_v4 }
 0x17c   : > { %8814 = vmatpush3.bf16.msra.mxu0 %v8813_v54  ;;  %8027 = vmatmul.mubr.f32.gmra.mrb[34].mxu1 %v10070_v30 }
 0x17d   : > { %8949 = vmatpush3.bf16.msra.mxu1 %v12012_v51  ;;  %8815 = vmatprep.subr.bf16.mxu0 %v11930_v1  ;;  %v2517_v51 = vand.u32 4294901760, %v2498_v45 }
 0x17e   : > { %8950 = vmatprep.subr.bf16.mxu1 %v11930_v1  ;;  %8029 = vmatprep.mubr.msk.f32.mxu1 %vm9369_vm1, %v11999_v4 }
 0x180   : > { %8817 = vmatpush3.bf16.msra.mxu0 %v8816_v55  ;;  %8030 = vmatmul.mubr.f32.gmra.mrb[36].mxu1 %v10149_v2  ;;  %v2520_v55 = vand.u32 4294901760, %v2499_v59 }
 0x181   : > { %8952 = vmatpush3.bf16.msra.mxu1 %v12013_v24  ;;  %8818 = vmatprep.subr.bf16.mxu0 %v11930_v1 }
 0x182   : > { %8953 = vmatprep.subr.bf16.mxu1 %v11930_v1  ;;  %8064 = vmatprep.mubr.msk.f32.mxu1 %vm9369_vm1, %v11999_v4 }
 0x184   : > { %8820 = vmatpush3.bf16.msra.mxu0 %v8819_v26 }
 0x185   : > { %8955 = vmatpush3.bf16.msra.mxu1 %v12014_v8  ;;  %8821 = vmatprep.subr.bf16.mxu0 %v11930_v1  ;;  %v10626_v8 = vsub.f32 %v2498_v45, %v2517_v51 }
 0x186   : > { %8956 = vmatprep.subr.bf16.mxu1 %v11930_v1 }
 0x187   : > { %v2608_v15 = vand.u32 4294901760, %v10626_v8 }
 0x188   : > { %8823 = vmatpush3.bf16.msra.mxu0 %v8822_v49 }
 0x189   : > { %8958 = vmatpush3.bf16.msra.mxu1 %v12015_v58  ;;  %8824 = vmatprep.subr.bf16.mxu0 %v11930_v1  ;;  %v10628_v58 = vsub.f32 %v2499_v59, %v2520_v55 }
 0x18a   : > { %8959 = vmatprep.subr.bf16.mxu1 %v11930_v1 }
 0x18b   : > { %7819 = vmatmul.mubr.f32.vlgmr.msra.gmra.mrb[32].mxu0 %v10037_v41 }
 0x18c   : > { %8826 = vmatpush3.bf16.msra.mxu0 %v9841_v52  ;;  %7821 = vmatprep.mubr.msk.f32.mxu0 %vm9369_vm1, %v11999_v4 }
 0x18d   : > { %8961 = vmatpush3.bf16.msra.mxu1 %v12018_v27  ;;  %8827 = vmatprep.subr.bf16.mxu0 %v11930_v1 }
 0x18e   : > { %8962 = vmatprep.subr.bf16.mxu1 %v11930_v1 }
 0x18f   : > { %7822 = vmatmul.mubr.f32.gmra.mrb[42].mxu0 %v12019_v56 }
 0x190   : > { %8829 = vmatpush3.bf16.msra.mxu0 %v12020_v0  ;;  %7824 = vmatprep.mubr.msk.f32.mxu0 %vm9369_vm1, %v11999_v4 }
 0x191   : > { %8964 = vmatpush3.bf16.msra.mxu1 %v12022_v20  ;;  %8830 = vmatprep.subr.bf16.mxu0 %v11930_v1  ;;  %v2523_v20 = vand.u32 4294901760, %v2500_v11 }
 0x192   : > { %8965 = vmatprep.subr.bf16.mxu1 %v11930_v1 }
 0x193   : > { %7825 = vmatmul.mubr.f32.gmra.mrb[44].mxu0 %v12023_v40 }
 0x194   : > { %8832 = vmatpush3.bf16.msra.mxu0 %v12024_v14  ;;  %7859 = vmatprep.mubr.msk.f32.mxu0 %vm9369_vm1, %v11999_v4 }
 0x195   : > { %8967 = vmatpush3.bf16.msra.mxu1 %v12025_v6  ;;  %8833 = vmatprep.subr.bf16.mxu0 %v11930_v1 }
 0x196   : > { %8968 = vmatprep.subr.bf16.mxu1 %v11930_v1 }
 0x198   : > { %8835 = vmatpush3.bf16.msra.mxu0 %v12026_v47  ;;  %8065 = vmatmul.mubr.f32.vlgmr.msra.gmra.mrb[32].mxu1 %v10037_v41  ;;  %v12030_v41 = vld [vmem:[#allocation70_spill] sm:$0xff] }
 0x199   : > { %8970 = vmatpush3.bf16.msra.mxu1 %v12027_v19  ;;  %8836 = vmatprep.subr.bf16.mxu0 %v11930_v1 }
 0x19a   : > { %8971 = vmatprep.subr.bf16.mxu1 %v11930_v1  ;;  %8067 = vmatprep.mubr.msk.f32.mxu1 %vm9369_vm1, %v11999_v4 }
 0x19c   : > { %8838 = vmatpush3.bf16.msra.mxu0 %v12028_v5  ;;  %8068 = vmatmul.mubr.f32.gmra.mrb[34].mxu1 %v12019_v56 }
 0x19d   : > { %8973 = vmatpush3.bf16.msra.mxu1 %v12029_v16  ;;  %8839 = vmatprep.subr.bf16.mxu0 %v11930_v1 }
 0x19e   : > { %8974 = vmatprep.subr.bf16.mxu1 %v11930_v1  ;;  %8070 = vmatprep.mubr.msk.f32.mxu1 %vm9369_vm1, %v11999_v4 }
 0x1a0   : > { %8841 = vmatpush3.bf16.msra.mxu0 %v12030_v41  ;;  %8071 = vmatmul.mubr.f32.gmra.mrb[36].mxu1 %v12023_v40  ;;  %v2615_v40 = vand.u32 4294901760, %v10628_v58 }
 0x1a1   : > { %8976 = vmatpush3.bf16.msra.mxu1 %v12031_v43  ;;  %8842 = vmatprep.subr.bf16.mxu0 %v11930_v1 }
 0x1a2   : > { %8977 = vmatprep.subr.bf16.mxu1 %v11930_v1  ;;  %8105 = vmatprep.mubr.msk.f32.mxu1 %vm9369_vm1, %v11999_v4 }
 0x1a4   : > { %8844 = vmatpush3.bf16.msra.mxu0 %v12032_v17 }
 0x1a5   : > { %8979 = vmatpush3.bf16.msra.mxu1 %v12033_v42  ;;  %8845 = vmatprep.subr.bf16.mxu0 %v11930_v1 }
 0x1a6   : > { %8980 = vmatprep.subr.bf16.mxu1 %v11930_v1 }
 0x1a8   : > { %8847 = vmatpush3.bf16.msra.mxu0 %v12034_v25 }
 0x1a9   : > { %8982 = vmatpush3.bf16.msra.mxu1 %v12035_v36  ;;  %8848 = vmatprep.subr.bf16.mxu0 %v11930_v1 }
 0x1aa   : > { %8983 = vmatprep.subr.bf16.mxu1 %v11930_v1 }
 0x1ab   : > { %7860 = vmatmul.mubr.f32.vlgmr.msra.gmra.mrb[32].mxu0 %v12036_v39 }
 0x1ac   : > { %8850 = vmatpush3.bf16.msra.mxu0 %v12037_v22  ;;  %7862 = vmatprep.mubr.msk.f32.mxu0 %vm9369_vm1, %v11999_v4 }
 0x1ad   : > { %8985 = vmatpush3.bf16.msra.mxu1 %v12038_v9  ;;  %8851 = vmatprep.subr.bf16.mxu0 %v11930_v1 }
 0x1ae   : > { %8986 = vmatprep.subr.bf16.mxu1 %v11930_v1 }
 0x1af   : > { %7863 = vmatmul.mubr.f32.gmra.mrb[46].mxu0 %v12039_v32 }
 0x1b0   : > { %8853 = vmatpush3.bf16.msra.mxu0 %v12040_v50  ;;  %7865 = vmatprep.mubr.msk.f32.mxu0 %vm9369_vm1, %v11999_v4 }
 0x1b1   : > { %8988 = vmatpush3.bf16.msra.mxu1 %v12041_v62  ;;  %8854 = vmatprep.subr.bf16.mxu0 %v11930_v1 }
 0x1b2   : > { %8989 = vmatprep.subr.bf16.mxu1 %v11930_v1 }
 0x1b3   : > { %7866 = vmatmul.mubr.f32.gmra.mrb[48].mxu0 %v12042_v38 }
 0x1b4   : > { %8856 = vmatpush3.bf16.msra.mxu0 %v12043_v60  ;;  %7900 = vmatprep.mubr.msk.f32.mxu0 %vm9369_vm1, %v11999_v4 }
 0x1b5   : > { %8991 = vmatpush3.bf16.msra.mxu1 %v12044_v46  ;;  %8857 = vmatprep.subr.bf16.mxu0 %v11930_v1 }
 0x1b6   : > { %8992 = vmatprep.subr.bf16.mxu1 %v11930_v1 }
 0x1b8   : > { %8859 = vmatpush3.bf16.msra.mxu0 %v12045_v63  ;;  %8106 = vmatmul.mubr.f32.vlgmr.msra.gmra.mrb[32].mxu1 %v12036_v39  ;;  %v9062_v63 = vpack.c.bf16 %v10628_v58, %v10626_v8 }
 0x1b9   : > { %8994 = vmatpush3.bf16.msra.mxu1 %v12046_v13  ;;  %8860 = vmatprep.subr.bf16.mxu0 %v11930_v1 }
 0x1ba   : > { %8995 = vmatprep.subr.bf16.mxu1 %v11930_v1  ;;  %8108 = vmatprep.mubr.msk.f32.mxu1 %vm9369_vm1, %v11999_v4 }
 0x1bc   : > { %8862 = vmatpush3.bf16.msra.mxu0 %v12047_v10  ;;  %8109 = vmatmul.mubr.f32.gmra.mrb[34].mxu1 %v12039_v32 }
 0x1bd   : > { %8997 = vmatpush3.bf16.msra.mxu1 %v12048_v48  ;;  %8863 = vmatprep.subr.bf16.mxu0 %v11930_v1 }
 0x1be   : > { %8998 = vmatprep.subr.bf16.mxu1 %v11930_v1  ;;  %8111 = vmatprep.mubr.msk.f32.mxu1 %vm9369_vm1, %v11999_v4 }
 0x1c0   : > { %8865 = vmatpush3.bf16.msra.mxu0 %v12049_v34  ;;  %8112 = vmatmul.mubr.f32.gmra.mrb[36].mxu1 %v12042_v38 }
 0x1c1   : > { %9000 = vmatpush3.bf16.msra.mxu1 %v12050_v31  ;;  %8866 = vmatprep.subr.bf16.mxu0 %v11930_v1 }
 0x1c2   : > { %9001 = vmatprep.subr.bf16.mxu1 %v11930_v1  ;;  %8146 = vmatprep.mubr.msk.f32.mxu1 %vm9369_vm1, %v11999_v4 }
 0x1c4   : > { %8868 = vmatpush3.bf16.msra.mxu0 %v12051_v3 }
 0x1c5   : > { %9003 = vmatpush3.bf16.msra.mxu1 %v12052_v18  ;;  %8869 = vmatprep.subr.bf16.mxu0 %v11930_v1 }
 0x1c6   : > { %9004 = vmatprep.subr.bf16.mxu1 %v11930_v1 }
 0x1c8   : > { %8871 = vmatpush3.bf16.msra.mxu0 %v12053_v61  ;;  %v10671_v61 = vpack.c.bf16 %v2615_v40, %v2608_v15 }
 0x1c9   : > { %9006 = vmatpush3.bf16.msra.mxu1 %v12054_v12  ;;  %8872 = vmatprep.subr.bf16.mxu0 %v11930_v1 }
 0x1ca   : > { %9007 = vmatprep.subr.bf16.mxu1 %v11930_v1 }
 0x1cb   : > { %7901 = vmatmul.mubr.f32.vlgmr.msra.gmra.mrb[32].mxu0 %v10009_v29 }
 0x1cc   : > { %8874 = vmatpush3.bf16.msra.mxu0 %v9841_v52  ;;  %7903 = vmatprep.mubr.msk.f32.mxu0 %vm9369_vm1, %v11999_v4 }
 0x1cd   : > { %9009 = vmatpush3.bf16.msra.mxu1 %v12055_v35  ;;  %8875 = vmatprep.subr.bf16.mxu0 %v11930_v1 }
 0x1ce   : > { %9010 = vmatprep.subr.bf16.mxu1 %v11930_v1 }
 0x1cf   : > { %7904 = vmatmul.mubr.f32.gmra.mrb[50].mxu0 %v10070_v30 }
 0x1d0   : > { %8877 = vmatpush3.bf16.msra.mxu0 %v12020_v0  ;;  %7906 = vmatprep.mubr.msk.f32.mxu0 %vm9369_vm1, %v11999_v4 }
 0x1d1   : > { %9012 = vmatpush3.bf16.msra.mxu1 %v12056_v7  ;;  %8878 = vmatprep.subr.bf16.mxu0 %v11930_v1 }
 0x1d2   : > { %9013 = vmatprep.subr.bf16.mxu1 %v11930_v1 }
 0x1d3   : > { %7907 = vmatmul.mubr.f32.gmra.mrb[52].mxu0 %v10149_v2 }
 0x1d4   : > { %8880 = vmatpush3.bf16.msra.mxu0 %v12024_v14  ;;  %7941 = vmatprep.mubr.msk.f32.mxu0 %vm9369_vm1, %v11999_v4  ;;  %v2526_v14 = vand.u32 4294901760, %v2501_v23 }
 0x1d5   : > { %9015 = vmatpush3.bf16.msra.mxu1 %v10321_v37  ;;  %8881 = vmatprep.subr.bf16.mxu0 %v11930_v1 }
 0x1d6   : > { %9016 = vmatprep.subr.bf16.mxu1 %v11930_v1  ;;  %v10663_v13 = vpack.c.bf16 %v2526_v14, %v2523_v20 }
 0x1d8   : > { %8883 = vmatpush3.bf16.msra.mxu0 %v12026_v47  ;;  %8147 = vmatmul.mubr.f32.vlgmr.msra.gmra.mrb[32].mxu1 %v10009_v29  ;;  %v2609_v47 = vsub.f32 %v10626_v8, %v2608_v15  ;;  %v10701_v15 = vld [vmem:[%s11760_s7 + $0x8] sm:$0xff] }
 0x1d9   : > { %9018 = vmatpush3.bf16.msra.mxu1 %v12027_v19  ;;  %8884 = vmatprep.subr.bf16.mxu0 %v11930_v1  ;;  %v10639_v19 = vsub.f32 %v2500_v11, %v2523_v20 }
 0x1da   : > { %9019 = vmatprep.subr.bf16.mxu1 %v11930_v1  ;;  %8149 = vmatprep.mubr.msk.f32.mxu1 %vm9369_vm1, %v11999_v4 }
 0x1dc   : > { %8886 = vmatpush3.bf16.msra.mxu0 %v12028_v5  ;;  %8150 = vmatmul.mubr.f32.gmra.mrb[34].mxu1 %v10070_v30 }
 0x1dd   : > { %9021 = vmatpush3.bf16.msra.mxu1 %v12029_v16  ;;  %8887 = vmatprep.subr.bf16.mxu0 %v11930_v1  ;;  %v2616_v16 = vsub.f32 %v10628_v58, %v2615_v40  ;;  %v3573_v40 = vand.u32 4294901760, %v10701_v15 }
 0x1de   : > { %9022 = vmatprep.subr.bf16.mxu1 %v11930_v1  ;;  %8152 = vmatprep.mubr.msk.f32.mxu1 %vm9369_vm1, %v11999_v4 }
 0x1e0   : > { %8889 = vmatpush3.bf16.msra.mxu0 %v12030_v41  ;;  %8153 = vmatmul.mubr.f32.gmra.mrb[36].mxu1 %v10149_v2  ;;  %v10642_v41 = vsub.f32 %v2501_v23, %v2526_v14 }
 0x1e1   : > { %9024 = vmatpush3.bf16.msra.mxu1 %v12031_v43  ;;  %8890 = vmatprep.subr.bf16.mxu0 %v11930_v1 }
 0x1e2   : > { %9025 = vmatprep.subr.bf16.mxu1 %v11930_v1  ;;  %8187 = vmatprep.mubr.msk.f32.mxu1 %vm9369_vm1, %v11999_v4  ;;  %v9065_v10 = vpack.c.bf16 %v10642_v41, %v10639_v19 }
 0x1e4   : > { %8892 = vmatpush3.bf16.msra.mxu0 %v12032_v17  ;;  %v2610_v17 = vand.u32 4294901760, %v2609_v47  ;;  %v10716_v47 = vsub.f32 %v10701_v15, %v3573_v40 }
 0x1e5   : > { %9027 = vmatpush3.bf16.msra.mxu1 %v12033_v42  ;;  %8893 = vmatprep.subr.bf16.mxu0 %v11930_v1  ;;  %v2622_v42 = vand.u32 4294901760, %v10639_v19 }
 0x1e6   : > { %9028 = vmatprep.subr.bf16.mxu1 %v11930_v1 }
 0x1e7   : > { %v2623_v39 = vsub.f32 %v10639_v19, %v2622_v42 }
 0x1e8   : > { %8895 = vmatpush3.bf16.msra.mxu0 %v12034_v25  ;;  %v2617_v25 = vand.u32 4294901760, %v2616_v16 }
 0x1e9   : > { %9030 = vmatpush3.bf16.msra.mxu1 %v12035_v36  ;;  %9049 = vmatprep.subr.bf16.mxu0 %v11930_v1  ;;  %v2629_v36 = vand.u32 4294901760, %v10642_v41  ;;  %v2624_v32 = vand.u32 4294901760, %v2623_v39  ;;  %v7043_v39 = vld [vmem:[%s11759_s6 + $0x38] sm:$0xff] }
 0x1ea   : > { %9031 = vmatprep.subr.bf16.mxu1 %v11930_v1  ;;  %v9053_v22 = vpack.c.bf16 %v2617_v25, %v2610_v17 }
 0x1eb   : > { %7942 = vmatmul.mubr.f32.vlgmr.msra.gmra.mrb[32].mxu0 %v10009_v29  ;;  %v10673_v12 = vpack.c.bf16 %v2629_v36, %v2622_v42 }
 0x1ec   : > { %7944 = vmatprep.mubr.msk.f32.mxu0 %vm9369_vm1, %v11999_v4 }
 0x1ed   : > { %9033 = vmatpush3.bf16.msra.mxu1 %v12038_v9  ;;  %v2630_v9 = vsub.f32 %v10642_v41, %v2629_v36  ;;  %v7042_v36 = vld [vmem:[%s11759_s6 + $0x30] sm:$0xff] }
 0x1ee   : > { %9034 = vmatprep.subr.bf16.mxu1 %v11930_v1 }
 0x1ef   : > { %7945 = vmatmul.mubr.f32.gmra.mrb[54].mxu0 %v10070_v30  ;;  %v2631_v50 = vand.u32 4294901760, %v2630_v9  ;;  %v3039_v9 = vand.u32 4294901760, %v7043_v39 }
 0x1f0   : > { %7947 = vmatprep.mubr.msk.f32.mxu0 %vm9369_vm1, %v11999_v4 }
 0x1f1   : > { %9036 = vmatpush3.bf16.msra.mxu1 %v12041_v62  ;;  %v9056_v62 = vpack.c.bf16 %v2631_v50, %v2624_v32 }
 0x1f2   : > { %9037 = vmatprep.subr.bf16.mxu1 %v11930_v1 }
 0x1f3   : > { %7948 = vmatmul.mubr.f32.gmra.mrb[56].mxu0 %v10149_v2 }
 0x1f4   : > { %8223 = vmatprep.mubr.msk.f32.mxu0 %vm9369_vm1, %v11999_v4 }
 0x1f5   : > { %9039 = vmatpush3.bf16.msra.mxu1 %v12044_v46  ;;  %v10657_v46 = vpack.c.bf16 %v2520_v55, %v2517_v51 }
 0x1f6   : > { %9040 = vmatprep.subr.bf16.mxu1 %v11930_v1 }
 0x1f8   : > { %8188 = vmatmul.mubr.f32.vlgmr.msra.gmra.mrb[32].mxu1 %v10009_v29  ;;  %v2496_v29 = vld [vmem:[%s11759_s6] sm:$0xff] }
 0x1f9   : > { %8190 = vmatprep.mubr.msk.f32.mxu1 %vm9369_vm1, %v11999_v4  ;;  %v2511_v33 = vand.u32 4294901760, %v2496_v29 }
 0x1fb   : > { %v10612_v21 = vsub.f32 %v2496_v29, %v2511_v33 }
 0x1fc   : > { %8191 = vmatmul.mubr.f32.gmra.mrb[34].mxu1 %v10070_v30  ;;  %v2497_v30 = vld [vmem:[%s11759_s6 + $0x8] sm:$0xff] }
 0x1fd   : > { %8193 = vmatprep.mubr.msk.f32.mxu1 %vm9369_vm1, %v11999_v4  ;;  %v2514_v53 = vand.u32 4294901760, %v2497_v30  ;;  %v2594_v44 = vand.u32 4294901760, %v10612_v21 }
 0x1ff   : > { %v2595_v24 = vsub.f32 %v10612_v21, %v2594_v44  ;;  %v10650_v38 = vpack.c.bf16 %v2514_v53, %v2511_v33 }
 0x200   : > { %8194 = vmatmul.mubr.f32.gmra.mrb[36].mxu1 %v10149_v2  ;;  %v10614_v2 = vsub.f32 %v2497_v30, %v2514_v53 }
 0x201   : > { %8208 = vmatprep.mubr.msk.f32.mxu1 %vm9369_vm1, %v11999_v4  ;;  %v2596_v56 = vand.u32 4294901760, %v2595_v24  ;;  %9042 = vmatpush3.bf16.msra.mxu1 %v10650_v38 }
 0x202   : > { %v2601_v54 = vand.u32 4294901760, %v10614_v2  ;;  %9043 = vmatprep.subr.bf16.mxu1 %v11930_v1  ;;  %v9059_v60 = vpack.c.bf16 %v10614_v2, %v10612_v21 }
 0x204   : > { %v2602_v26 = vsub.f32 %v10614_v2, %v2601_v54  ;;  %v10669_v18 = vpack.c.bf16 %v2601_v54, %v2594_v44 }
 0x205   : > { %9045 = vmatpush3.bf16.msra.mxu1 %v10657_v46 }
 0x206   : > { %v2603_v0 = vand.u32 4294901760, %v2602_v26  ;;  %9046 = vmatprep.subr.bf16.mxu1 %v11930_v1 }
 0x208   : > { %v9050_v6 = vpack.c.bf16 %v2603_v0, %v2596_v56  ;;  %v10696_v0 = vld [vmem:[%s11760_s7] sm:$0xff] }
 0x209   : > { %9048 = vmatpush3.bf16.msra.mxu1 %v10663_v13  ;;  %v3570_v20 = vand.u32 4294901760, %v10696_v0 }
 0x20a   : > { %9051 = vmatpush3.bf16.msra.mxu0 %v9050_v6  ;;  %9148 = vmatprep.subr.bf16.mxu1 %v11930_v1 }
 0x20b   : > { %9052 = vmatprep.subr.bf16.mxu0 %v11930_v1  ;;  %v10709_v14 = vpack.c.bf16 %v3573_v40, %v3570_v20  ;;  %v10713_v6 = vsub.f32 %v10696_v0, %v3570_v20 }
 0x20d   : > { %v3649_v19 = vand.u32 4294901760, %v10713_v6  ;;  %v9155_v25 = vpack.c.bf16 %v10716_v47, %v10713_v6 }
 0x20e   : > { %9054 = vmatpush3.bf16.msra.mxu0 %v9053_v22  ;;  %v3036_v22 = vand.u32 4294901760, %v7042_v36 }
 0x20f   : > { %9055 = vmatprep.subr.bf16.mxu0 %v11930_v1  ;;  %v3650_v16 = vsub.f32 %v10713_v6, %v3649_v19 }
 0x210   : > { %v10751_v50 = vsub.f32 %v7042_v36, %v3036_v22 }
 0x212   : > { %9057 = vmatpush3.bf16.msra.mxu0 %v9056_v62  ;;  %v10753_v62 = vsub.f32 %v7043_v39, %v3039_v9 }
 0x213   : > { %9058 = vmatprep.subr.bf16.mxu0 %v11930_v1 }
 0x222   : > { %v1151_v52 = vpop.f32.mrb[34].mxu0 }
 0x223   : > { %v7741_v37 = vpop.f32.mrb[35].mxu0 }
 0x226   : > { %v1160_v28 = vpop.f32.mrb[36].mxu0 }
 0x227   : > { %v7744_v57 = vpop.f32.mrb[37].mxu0 }
 0x242   : > { %v1316_v49 = vpop.f32.mrb[38].mxu0 }
 0x243   : > { %v7782_v27 = vpop.f32.mrb[39].mxu0 }
 0x246   : > { %v1321_v5 = vpop.f32.mrb[40].mxu0 }
 0x247   : > { %v7785_v43 = vpop.f32.mrb[41].mxu0  ;;  %v3656_v5 = vand.u32 4294901760, %v10716_v47 }
 0x248   : > { %v3651_v43 = vand.u32 4294901760, %v3650_v16  ;;  %v9113_v16 = vpack.c.bf16 %v10753_v62, %v10751_v50 }
 0x249   : > { %v3657_v41 = vsub.f32 %v10716_v47, %v3656_v5  ;;  %v10898_v47 = vld [vmem:[%s11761_s8 + $0x8] sm:$0x7] }
 0x24b   : > { %v3658_v17 = vand.u32 4294901760, %v3657_v41 }
 0x24d   : > { %v10731_v42 = vpack.c.bf16 %v3658_v17, %v3651_v43 }
 0x262   : > { %v1431_v48 = vpop.f32.mrb[42].mxu0 }
 0x263   : > { %v7823_v34 = vpop.f32.mrb[43].mxu0 }
 0x264   : > { %v7046_v34 = vld [vmem:[%s11759_s6 + $0x50] sm:$0xff] }
 0x266   : > { %v1437_v31 = vpop.f32.mrb[44].mxu0 }
 0x267   : > { %v7826_v3 = vpop.f32.mrb[45].mxu0  ;;  %v7047_v31 = vld [vmem:[%s11759_s6 + $0x58] sm:$0xff] }
 0x268   : > { %v3119_v3 = vand.u32 4294901760, %v10751_v50 }
 0x282   : > { %v1533_v35 = vpop.f32.mrb[46].mxu0 }
 0x283   : > { %v7864_v7 = vpop.f32.mrb[47].mxu0  ;;  %v10780_v35 = vpack.c.bf16 %v3656_v5, %v3649_v19 }
 0x286   : > { %v1540_v52 = vpop.f32.mrb[48].mxu0 }
 0x287   : > { %v7867_v37 = vpop.f32.mrb[49].mxu0  ;;  %v3048_v52 = vand.u32 4294901760, %v7046_v34 }
 0x288   : > { %v3051_v37 = vand.u32 4294901760, %v7047_v31 }
 0x2a2   : > { %v1664_v28 = vpop.f32.mrb[50].mxu0 }
 0x2a3   : > { %v7905_v57 = vpop.f32.mrb[51].mxu0 }
 0x2a6   : > { %v1669_v29 = vpop.f32.mrb[52].mxu0 }
 0x2a7   : > { %v7908_v30 = vpop.f32.mrb[53].mxu0  ;;  %v10796_v29 = vsub.f32 %v7046_v34, %v3048_v52 }
 0x2a8   : > { %v10798_v30 = vsub.f32 %v7047_v31, %v3051_v37 }
 0x2aa   : > { %v9119_v43 = vpack.c.bf16 %v10798_v30, %v10796_v29 }
 0x2be   : > { %v10675_v33 = vpop.f32.mrb[32].mxu0 }
 0x2bf   : > { %v7943_v53 = vpop.f32.mrb[33].mxu0  ;;  %v3554_v21 = vsel %vm3553_vm2, %v10675_v33, -inf }
 0x2c0   : > { %3555 = vmax.xlane.f32.xlu0 %v3554_v21 }
 0x2c2   : > { %v1761_v2 = vpop.f32.mrb[54].mxu0 }
 0x2c3   : > { %v7946_v45 = vpop.f32.mrb[55].mxu0 }
 0x2c4   : > { %v10806_v45 = vpack.c.bf16 %v3051_v37, %v3048_v52 }
 0x2c6   : > { %v1766_v59 = vpop.f32.mrb[56].mxu0 }
 0x2c7   : > { %v7949_v44 = vpop.f32.mrb[57].mxu0 }
 0x2cb   : > { %v10679_v54 = vpop.f32.mrb[32].mxu1 }
 0x2cc   : > { %v8189_v51 = vpop.f32.mrb[33].mxu1 }
 0x2cf   : > { %v2486_v55 = vpop.f32.mrb[34].mxu1 }
 0x2d0   : > { %v2508_v24 = vsel %vm2506_vm3, %v2486_v55, 0  ;;  %v8192_v26 = vpop.f32.mrb[35].mxu1 }
 0x2d1   : > { %v10682_v8 = vand.u32 4294901760, %v2508_v24  ;;  %v3154_v26 = vand.u32 4294901760, %v10798_v30 }
 0x2d3   : > { %v2582_v49 = vsub.f32 %v2508_v24, %v10682_v8  ;;  %v2492_v58 = vpop.f32.mrb[36].mxu1  ;;  %8224 = vmatmul.mubr.f32.vlgmr.msra.gmra.mrb[58].mxu0 %v10682_v8  ;;  %v3147_v24 = vand.u32 4294901760, %v10796_v29 }
 0x2d4   : > { %9060 = vmatpush3.bf16.msra.mxu0 %v9059_v60  ;;  %v8195_v11 = vpop.f32.mrb[37].mxu1  ;;  %8238 = vmatprep.mubr.msk.f32.mxu0 %vm9369_vm1, %v11999_v4  ;;  %v3033_v32 = vsel %vm2506_vm3, %v2492_v58, 0  ;;  %v7044_v60 = vld [vmem:[%s11759_s6 + $0x40] sm:$0xff] }
 0x2d5   : > { %v2583_v23 = vand.u32 4294901760, %v2582_v49  ;;  %9061 = vmatprep.subr.bf16.mxu0 %v11930_v1  ;;  %v9137_v39 = vpack.c.bf16 %v3154_v26, %v3147_v24 }
 0x2d7   : > { %v2584_v27 = vsub.f32 %v2582_v49, %v2583_v23 }
 0x2d8   : > { %9063 = vmatpush3.bf16.msra.mxu0 %v9062_v63  ;;  %v10762_v63 = vand.u32 4294901760, %v3033_v32 }
 0x2d9   : > { %v2585_v56 = vand.u32 4294901760, %v2584_v27  ;;  %9064 = vmatprep.subr.bf16.mxu0 %v11930_v1  ;;  %v3155_v27 = vsub.f32 %v10798_v30, %v3154_v26 }
 0x2da   : > { %v10783_v7 = vsub.f32 %v3033_v32, %v10762_v63 }
 0x2db   : > { %8209 = vmatmul.mubr.f32.vlgmr.msra.gmra.mrb[38].mxu1 %v2585_v56  ;;  %v3156_v19 = vand.u32 4294901760, %v3155_v27 }
 0x2dc   : > { %9066 = vmatpush3.bf16.msra.mxu0 %v9065_v10  ;;  %8380 = vmatprep.mubr.msk.f32.mxu1 %vm9369_vm1, %v11999_v4  ;;  %v3042_v10 = vand.u32 4294901760, %v7044_v60  ;;  %v3108_v2 = vand.u32 4294901760, %v10783_v7 }
 0x2dd   : > { %9067 = vmatprep.subr.bf16.mxu0 %v11930_v1  ;;  %9150 = vmatpush3.bf16.msra.mxu1 %v10709_v14 }
 0x2de   : > { %9151 = vmatprep.subr.bf16.mxu1 %v11930_v1 }
 0x2df   : > { %8239 = vmatmul.mubr.f32.vlgmr.msra.gmra.mrb[58].mxu0 %v2582_v49 }
 0x2e0   : > { %9069 = vmatpush3.bf16.msra.mxu0 %v10650_v38  ;;  %8253 = vmatprep.mubr.msk.f32.mxu0 %vm9369_vm1, %v11999_v4 }
 0x2e1   : > { %9070 = vmatprep.subr.bf16.mxu0 %v11930_v1 }
 0x2e4   : > { %9072 = vmatpush3.bf16.msra.mxu0 %v10657_v46 }
 0x2e5   : > { %9073 = vmatprep.subr.bf16.mxu0 %v11930_v1 }
 0x2e8   : > { %9075 = vmatpush3.bf16.msra.mxu0 %v10663_v13 }
 0x2e9   : > { %9076 = vmatprep.subr.bf16.mxu0 %v11930_v1 }
 0x2eb   : > { %8254 = vmatmul.mubr.f32.vlgmr.msra.gmra.mrb[58].mxu0 %v2583_v23  ;;  %v3148_v23 = vsub.f32 %v10796_v29, %v3147_v24 }
 0x2ec   : > { %9078 = vmatpush3.bf16.msra.mxu0 %v10669_v18  ;;  %8268 = vmatprep.mubr.msk.f32.mxu0 %vm9369_vm1, %v11999_v4  ;;  %v3126_v18 = vand.u32 4294901760, %v10753_v62 }
 0x2ed   : > { %9079 = vmatprep.subr.bf16.mxu0 %v11930_v1  ;;  %v3149_v40 = vand.u32 4294901760, %v3148_v23 }
 0x2ee   : > { %v3127_v57 = vsub.f32 %v10753_v62, %v3126_v18  ;;  %v9131_v17 = vpack.c.bf16 %v3126_v18, %v3119_v3  ;;  %v10906_v18 = vld [vmem:[%s11761_s8] sm:$0xff] }
 0x2ef   : > { %v9110_v5 = vpack.c.bf16 %v3156_v19, %v3149_v40 }
 0x2f0   : > { %9081 = vmatpush3.bf16.msra.mxu0 %v10671_v61  ;;  %v10776_v61 = vsub.f32 %v7044_v60, %v3042_v10  ;;  %v3128_v44 = vand.u32 4294901760, %v3127_v57 }
 0x2f1   : > { %9082 = vmatprep.subr.bf16.mxu0 %v11930_v1 }
 0x2f2   : > { %v3133_v53 = vand.u32 4294901760, %v10776_v61 }
 0x2f4   : > { %9084 = vmatpush3.bf16.msra.mxu0 %v10673_v12  ;;  %v3134_v51 = vsub.f32 %v10776_v61, %v3133_v53 }
 0x2f5   : > { %9085 = vmatprep.subr.bf16.mxu0 %v11930_v1 }
 0x2f6   : > { %v3135_v58 = vand.u32 4294901760, %v3134_v51 }
 0x2f7   : > { %8269 = vmatmul.mubr.f32.vlgmr.msra.gmra.mrb[58].mxu0 %v10682_v8 }
 0x2f8   : > { %9087 = vmatpush3.bf16.msra.mxu0 %v10650_v38  ;;  %8283 = vmatprep.mubr.msk.f32.mxu0 %vm9369_vm1, %v11999_v4  ;;  %v7045_v38 = vld [vmem:[%s11759_s6 + $0x48] sm:$0xff] }
 0x2f9   : > { %9088 = vmatprep.subr.bf16.mxu0 %v11930_v1  ;;  %v3045_v48 = vand.u32 4294901760, %v7045_v38 }
 0x2fb   : > { %v10778_v12 = vsub.f32 %v7045_v38, %v3045_v48  ;;  %v10787_v28 = vpack.c.bf16 %v3045_v48, %v3042_v10 }
 0x2fc   : > { %9090 = vmatpush3.bf16.msra.mxu0 %v10657_v46  ;;  %v10774_v46 = vpack.c.bf16 %v3039_v9, %v3036_v22 }
 0x2fd   : > { %9091 = vmatprep.subr.bf16.mxu0 %v11930_v1  ;;  %v3140_v21 = vand.u32 4294901760, %v10778_v12  ;;  %v9116_v41 = vpack.c.bf16 %v10778_v12, %v10776_v61 }
 0x2ff   : > { %v3141_v55 = vsub.f32 %v10778_v12, %v3140_v21  ;;  %v9134_v36 = vpack.c.bf16 %v3140_v21, %v3133_v53 }
 0x300   : > { %9093 = vmatpush3.bf16.msra.mxu0 %v10663_v13  ;;  %v3120_v13 = vsub.f32 %v10751_v50, %v3119_v3 }
 0x301   : > { %9094 = vmatprep.subr.bf16.mxu0 %v11930_v1  ;;  %v3142_v11 = vand.u32 4294901760, %v3141_v55 }
 0x302   : > { %v3121_v59 = vand.u32 4294901760, %v3120_v13 }
 0x303   : > { %8284 = vmatmul.mubr.f32.vlgmr.msra.gmra.mrb[58].mxu0 %v10682_v8  ;;  %v3109_v8 = vsub.f32 %v10783_v7, %v3108_v2  ;;  %v9107_v20 = vpack.c.bf16 %v3142_v11, %v3135_v58  ;;  %v10929_v58 = vld [vmem:[%s11760_s7 + $0x30] sm:$0xff]  ;;  %v10934_v11 = vld [vmem:[%s11760_s7 + $0x38] sm:$0xff] }
 0x304   : > { %9096 = vmatpush3.bf16.msra.mxu0 %v10774_v46  ;;  %8298 = vmatprep.mubr.msk.f32.mxu0 %vm9369_vm1, %v11999_v4  ;;  %v9104_v49 = vpack.c.bf16 %v3128_v44, %v3121_v59  ;;  %v4489_v23 = vand.u32 4294901760, %v10929_v58  ;;  %v4492_v27 = vand.u32 4294901760, %v10934_v11 }
 0x305   : > { %9097 = vmatprep.subr.bf16.mxu0 %v11930_v1  ;;  %v3110_v56 = vand.u32 4294901760, %v3109_v8 }
 0x306   : > { %v10951_v40 = vpack.c.bf16 %v4492_v27, %v4489_v23 }
 0x308   : > { %9099 = vmatpush3.bf16.msra.mxu0 %v10787_v28 }
 0x309   : > { %9100 = vmatprep.subr.bf16.mxu0 %v11930_v1 }
 0x30c   : > { %9102 = vmatpush3.bf16.msra.mxu0 %v10806_v45 }
 0x30d   : > { %9103 = vmatprep.subr.bf16.mxu0 %v11930_v1 }
 0x30f   : > { %8299 = vmatmul.mubr.f32.vlgmr.msra.gmra.mrb[58].mxu0 %v3110_v56  ;;  %v10944_v56 = vld [vmem:[%s11760_s7 + $0x40] sm:$0xff] }
 0x310   : > { %9105 = vmatpush3.bf16.msra.mxu0 %v9104_v49  ;;  %8313 = vmatprep.mubr.msk.f32.mxu0 %vm9369_vm1, %v11999_v4  ;;  %v4495_v19 = vand.u32 4294901760, %v10944_v56 }
 0x311   : > { %9106 = vmatprep.subr.bf16.mxu0 %v11930_v1 }
 0x314   : > { %9108 = vmatpush3.bf16.msra.mxu0 %v9107_v20  ;;  %v10949_v20 = vld [vmem:[%s11760_s7 + $0x48] sm:$0xff] }
 0x315   : > { %9109 = vmatprep.subr.bf16.mxu0 %v11930_v1 }
 0x318   : > { %9111 = vmatpush3.bf16.msra.mxu0 %v9110_v5  ;;  %v4498_v5 = vand.u32 4294901760, %v10949_v20 }
 0x319   : > { %9112 = vmatprep.subr.bf16.mxu0 %v11930_v1 }
 0x31b   : > { %8314 = vmatmul.mubr.f32.vlgmr.msra.gmra.mrb[58].mxu0 %v10762_v63 }
 0x31c   : > { %9114 = vmatpush3.bf16.msra.mxu0 %v9113_v16  ;;  %8328 = vmatprep.mubr.msk.f32.mxu0 %vm9369_vm1, %v11999_v4  ;;  %v10958_v16 = vld [vmem:[%s11760_s7 + $0x50] sm:$0xff] }
 0x31d   : > { %9115 = vmatprep.subr.bf16.mxu0 %v11930_v1 }
 0x320   : > { %9117 = vmatpush3.bf16.msra.mxu0 %v9116_v41  ;;  %v10963_v41 = vld [vmem:[%s11760_s7 + $0x58] sm:$0xff] }
 0x321   : > { %9118 = vmatprep.subr.bf16.mxu0 %v11930_v1 }
 0x324   : > { %9120 = vmatpush3.bf16.msra.mxu0 %v9119_v43  ;;  %v10966_v43 = vpack.c.bf16 %v4498_v5, %v4495_v19 }
 0x325   : > { %9121 = vmatprep.subr.bf16.mxu0 %v11930_v1 }
 0x327   : > { %8329 = vmatmul.mubr.f32.vlgmr.msra.gmra.mrb[58].mxu0 %v10783_v7 }
 0x328   : > { %9123 = vmatpush3.bf16.msra.mxu0 %v10774_v46  ;;  %8343 = vmatprep.mubr.msk.f32.mxu0 %vm9369_vm1, %v11999_v4 }
 0x329   : > { %9124 = vmatprep.subr.bf16.mxu0 %v11930_v1 }
 0x32c   : > { %9126 = vmatpush3.bf16.msra.mxu0 %v10787_v28 }
 0x32d   : > { %9127 = vmatprep.subr.bf16.mxu0 %v11930_v1 }
 0x330   : > { %9129 = vmatpush3.bf16.msra.mxu0 %v10806_v45 }
 0x331   : > { %9130 = vmatprep.subr.bf16.mxu0 %v11930_v1 }
 0x333   : > { %8344 = vmatmul.mubr.f32.vlgmr.msra.gmra.mrb[58].mxu0 %v3108_v2 }
 0x334   : > { %9132 = vmatpush3.bf16.msra.mxu0 %v9131_v17  ;;  %8358 = vmatprep.mubr.msk.f32.mxu0 %vm9369_vm1, %v11999_v4  ;;  %v4501_v17 = vand.u32 4294901760, %v10958_v16 }
 0x335   : > { %9133 = vmatprep.subr.bf16.mxu0 %v11930_v1 }
 0x338   : > { %9135 = vmatpush3.bf16.msra.mxu0 %v9134_v36  ;;  %v4504_v36 = vand.u32 4294901760, %v10963_v41 }
 0x339   : > { %9136 = vmatprep.subr.bf16.mxu0 %v11930_v1 }
 0x33c   : > { %9138 = vmatpush3.bf16.msra.mxu0 %v9137_v39  ;;  %v10974_v39 = vpack.c.bf16 %v4504_v36, %v4501_v17 }
 0x33d   : > { %9139 = vmatprep.subr.bf16.mxu0 %v11930_v1 }
 0x33f   : > { %8359 = vmatmul.mubr.f32.vlgmr.msra.gmra.mrb[58].mxu0 %v10762_v63 }
 0x340   : > { %9141 = vmatpush3.bf16.msra.mxu0 %v10774_v46  ;;  %8373 = vmatprep.mubr.msk.f32.mxu0 %vm9369_vm1, %v11999_v4 }
 0x341   : > { %9142 = vmatprep.subr.bf16.mxu0 %v11930_v1 }
 0x344   : > { %9144 = vmatpush3.bf16.msra.mxu0 %v10787_v28 }
 0x345   : > { %9145 = vmatprep.subr.bf16.mxu0 %v11930_v1 }
 0x348   : > { %9147 = vmatpush3.bf16.msra.mxu0 %v10806_v45 }
 0x349   : > { %8543 = vmatprep.subr.mxu0 %v11999_v4 }
 0x34b   : > { %8374 = vmatmul.mubr.f32.vlgmr.msra.gmra.mrb[58].mxu0 %v10762_v63  ;;  %v2502_v63 = vlaneseq }
 0x34c   : > { %8545 = vmatprep.mubr.msk.f32.mxu0 %vm9369_vm1, %v11999_v4 }
 0x34d   : > { %v3556_v22 = vpop.xlane.xlu0 %3555  ;;  %v2503_v31 = vshrl.u32 %v2502_v63, 7  ;;  %v4606_v63 = vsub.f32 %v10963_v41, %v4504_v36 }
 0x34e   : > { %v3557_v9 = vsub.f32 %v10675_v33, %v3556_v22 }
 0x34f   : > { %v2504_v3 = vsub.s32 1, %v2503_v31  ;;  %v3030_v61 = vsub.s32 2, %v2503_v31  ;;  %v3548_v12 = vsub.s32 0, %v2503_v31 }
 0x350   : > { %v3558_v32 = vmul.f32 1.442695, %v3557_v9 }
 0x351   : > { %v2505_v46 = vrot.slane %v10906_v18, %v2504_v3  ;;  %v3031_v7 = vrot.slane %v10906_v18, %v3030_v61  ;;  %v3549_v52 = vrot.slane %v10906_v18, %v3548_v12 }
 0x352   : > { %9350 = vpow2.f32 %v3558_v32 }
 0x353   : > { %v3550_v13 = vmul.f32 %v3549_v52, %v10679_v54 }
 0x35c   : > { %v10867_v50 = vpop.eup %9350 }
 0x35d   : > { %v3567_v62 = vsel %vm3553_vm2, %v10867_v50, 0 }
 0x35e   : > { %v3636_v60 = vand.u32 4294901760, %v3567_v62 }
 0x360   : > { %v3637_v38 = vsub.f32 %v3567_v62, %v3636_v60  ;;  %v4571_v62 = vsub.f32 %v10929_v58, %v4489_v23 }
 0x362   : > { %v3638_v10 = vand.u32 4294901760, %v3637_v38 }
 0x364   : > { %v3639_v48 = vsub.f32 %v3637_v38, %v3638_v10 }
 0x366   : > { %v3640_v34 = vand.u32 4294901760, %v3639_v48  ;;  %v4585_v48 = vsub.f32 %v10944_v56, %v4495_v19  ;;  %v5002_v19 = vrot.slane %v10898_v47, 3 }
 0x368   : > { %8381 = vmatmul.mubr.f32.vlgmr.msra.gmra.mrb[40].mxu1 %v3640_v34  ;;  %v4592_v34 = vsub.f32 %v10949_v20, %v4498_v5  ;;  %v4586_v31 = vand.u32 4294901760, %v4585_v48 }
 0x369   : > { %9153 = vmatpush3.bf16.msra.mxu1 %v10731_v42  ;;  %8387 = vmatprep.mubr.msk.f32.mxu1 %vm9369_vm1, %v11999_v4  ;;  %v4029_v42 = vrot.slane %v10898_v47, 1 }
 0x36a   : > { %9154 = vmatprep.subr.bf16.mxu1 %v11930_v1  ;;  %v4593_v3 = vand.u32 4294901760, %v4592_v34 }
 0x36c   : > { %v4594_v52 = vsub.f32 %v4592_v34, %v4593_v3 }
 0x370   : > { %8388 = vmatmul.mubr.f32.vlgmr.msra.gmra.mrb[40].mxu1 %v3636_v60 }
 0x371   : > { %9156 = vmatpush3.bf16.msra.mxu1 %v9155_v25  ;;  %8394 = vmatprep.mubr.msk.f32.mxu1 %vm9369_vm1, %v11999_v4 }
 0x372   : > { %9157 = vmatprep.subr.bf16.mxu1 %v11930_v1 }
 0x378   : > { %8395 = vmatmul.mubr.f32.vlgmr.msra.gmra.mrb[40].mxu1 %v3637_v38  ;;  %v4572_v38 = vand.u32 4294901760, %v4571_v62 }
 0x379   : > { %9159 = vmatpush3.bf16.msra.mxu1 %v10709_v14  ;;  %8401 = vmatprep.mubr.msk.f32.mxu1 %vm9369_vm1, %v11999_v4 }
 0x37a   : > { %9160 = vmatprep.subr.bf16.mxu1 %v11930_v1 }
 0x380   : > { %8402 = vmatmul.mubr.f32.vlgmr.msra.gmra.mrb[40].mxu1 %v3638_v10 }
 0x381   : > { %9162 = vmatpush3.bf16.msra.mxu1 %v10780_v35  ;;  %8408 = vmatprep.mubr.msk.f32.mxu1 %vm9369_vm1, %v11999_v4 }
 0x382   : > { %9163 = vmatprep.subr.bf16.mxu1 %v11930_v1 }
 0x388   : > { %8409 = vmatmul.mubr.f32.vlgmr.msra.gmra.mrb[40].mxu1 %v3636_v60 }
 0x389   : > { %9165 = vmatpush3.bf16.msra.mxu1 %v10709_v14  ;;  %8415 = vmatprep.mubr.msk.f32.mxu1 %vm9369_vm1, %v11999_v4  ;;  %v4035_v14 = vsel %vm4034_vm4, %v4029_v42, 0  ;;  %v4573_v42 = vsub.f32 %v4571_v62, %v4572_v38 }
 0x38a   : > { %8418 = vmatprep.subr.mxu1 %v11999_v4  ;;  %v4038_v25 = vand.u32 4294901760, %v4035_v14 }
 0x38b   : > { %v4574_v12 = vand.u32 4294901760, %v4573_v42  ;;  %v11044_v42 = vld [vmem:[%s11758_s5 + $0x8] sm:$0xff] }
 0x38c   : > { %v4115_v21 = vsub.f32 %v4035_v14, %v4038_v25 }
 0x38e   : > { %v4116_v44 = vand.u32 4294901760, %v4115_v21 }
 0x390   : > { %8416 = vmatmul.mubr.f32.vlgmr.msra.gmra.mrb[40].mxu1 %v3636_v60  ;;  %v4117_v24 = vsub.f32 %v4115_v21, %v4116_v44  ;;  %v4578_v60 = vsub.f32 %v10934_v11, %v4492_v27  ;;  %v5001_v27 = vrot.slane %v10906_v18, 3 }
 0x391   : > { %8420 = vmatprep.mubr.msk.f32.mxu1 %vm9369_vm1, %v11999_v4  ;;  %8419 = vmatpush3.msra.mxu1 %v4038_v25 }
 0x392   : > { %8423 = vmatprep.subr.mxu1 %v11999_v4  ;;  %v4118_v49 = vand.u32 4294901760, %v4117_v24  ;;  %v4579_v10 = vand.u32 4294901760, %v4578_v60  ;;  %v9185_v24 = vpack.c.bf16 %v4578_v60, %v4571_v62  ;;  %v5003_v5 = vsel %vm5000_vm6, %v5001_v27, %v5002_v19  ;;  %v12062_v27 = vld [vmem:[#allocation41_spill] sm:$0xff] }
 0x393   : > { %v5009_v18 = vsel %vm5008_vm7, %v5003_v5, 0 }
 0x394   : > { %v4580_v14 = vsub.f32 %v4578_v60, %v4579_v10  ;;  %v5012_v47 = vand.u32 4294901760, %v5009_v18 }
 0x3ae   : > { %v2587_v33 = vpop.f32.mrb[38].mxu1 }
 0x3af   : > { %v8210_v6 = vpop.f32.mrb[39].mxu1  ;;  %v2588_v35 = vadd.f32 %v2587_v33, %v2505_v46 }
 0x3b0   : > { %v4599_v6 = vsub.f32 %v10958_v16, %v4501_v17 }
 0x3b1   : > { %v9237_v37 = vadd.f32 %v3031_v7, %v2588_v35  ;;  %v4581_v35 = vand.u32 4294901760, %v4580_v14  ;;  %v4587_v7 = vsub.f32 %v4585_v48, %v4586_v31  ;;  %v11051_v14 = vld [vmem:[%s11758_s5 + $0x10] sm:$0xff] }
 0x41e   : > { %v3542_v28 = vpop.f32.mrb[58].mxu0 }
 0x41f   : > { %v9238_v57 = vadd.f32 %v9237_v37, %v3542_v28  ;;  %v8375_v29 = vpop.f32.mrb[59].mxu0  ;;  %v4600_v37 = vand.u32 4294901760, %v4599_v6  ;;  %v4607_v28 = vand.u32 4294901760, %v4606_v63 }
 0x420   : > { %v9176_v29 = vpack.c.bf16 %v4581_v35, %v4574_v12  ;;  %v11106_v12 = vld [vmem:[%s11758_s5 + $0x48] sm:$0xff]  ;;  %v11113_v35 = vld [vmem:[%s11758_s5 + $0x50] sm:$0xff] }
 0x421   : > { %v9239_v30 = vadd.f32 %v9238_v57, %v3550_v13  ;;  %v9209_v23 = vpack.c.bf16 %v4607_v28, %v4600_v37 }
 0x423   : > { %v3560_v53 = vsel %vm2506_vm3, %v9239_v30, -inf }
 0x424   : > { %3561 = vmax.xlane.f32.xlu0 %v3560_v53  ;;  %v4595_v53 = vand.u32 4294901760, %v4594_v52  ;;  %v11127_v52 = vld [vmem:[%s11758_s5 + $0x60] sm:$0xff] }
 0x463   : > { %v4024_v2 = vpop.f32.mrb[40].mxu1 }
 0x464   : > { %v4032_v45 = vsel %vm4030_vm5, %v4024_v2, 0  ;;  %v8417_v59 = vpop.f32.mrb[41].mxu1  ;;  %v4608_v2 = vsub.f32 %v4606_v63, %v4607_v28  ;;  %v11142_v28 = vld [vmem:[%s11758_s5 + $0x70] sm:$0xff] }
 0x465   : > { %v4103_v51 = vand.u32 4294901760, %v4032_v45 }
 0x467   : > { %v4104_v55 = vsub.f32 %v4032_v45, %v4103_v51 }
 0x469   : > { %v4105_v26 = vand.u32 4294901760, %v4104_v55 }
 0x46b   : > { %v4106_v8 = vsub.f32 %v4104_v55, %v4105_v26 }
 0x46d   : > { %v4107_v54 = vand.u32 4294901760, %v4106_v8  ;;  %v9191_v8 = vpack.c.bf16 %v4606_v63, %v4599_v6  ;;  %v11066_v63 = vld [vmem:[%s11758_s5 + $0x20] sm:$0xff] }
 0x46f   : > { %8421 = vmatmul.mubr.f32.vlgmr.msra.gmra.mrb[42].mxu1 %v4107_v54  ;;  %v9206_v54 = vpack.c.bf16 %v4593_v3, %v4586_v31  ;;  %v11075_v31 = vld [vmem:[%s11758_s5 + $0x28] sm:$0xff]  ;;  %v11082_v3 = vld [vmem:[%s11758_s5 + $0x30] sm:$0xff] }
 0x470   : > { %8424 = vmatpush3.msra.mxu1 %v4118_v49  ;;  %8425 = vmatprep.mubr.msk.f32.mxu1 %vm9369_vm1, %v11999_v4  ;;  %v9203_v49 = vpack.c.bf16 %v4579_v10, %v4572_v38 }
 0x471   : > { %8428 = vmatprep.subr.mxu1 %v11999_v4 }
 0x477   : > { %8426 = vmatmul.mubr.f32.vlgmr.msra.gmra.mrb[42].mxu1 %v4103_v51 }
 0x478   : > { %8429 = vmatpush3.msra.mxu1 %v4115_v21  ;;  %8430 = vmatprep.mubr.msk.f32.mxu1 %vm9369_vm1, %v11999_v4  ;;  %v4601_v21 = vsub.f32 %v4599_v6, %v4600_v37  ;;  %v11136_v37 = vld [vmem:[%s11758_s5 + $0x68] sm:$0xff] }
 0x479   : > { %8433 = vmatprep.subr.mxu1 %v11999_v4 }
 0x47f   : > { %8431 = vmatmul.mubr.f32.vlgmr.msra.gmra.mrb[42].mxu1 %v4104_v55 }
 0x480   : > { %8434 = vmatpush3.msra.mxu1 %v4038_v25  ;;  %8435 = vmatprep.mubr.msk.f32.mxu1 %vm9369_vm1, %v11999_v4 }
 0x481   : > { %8438 = vmatprep.subr.mxu1 %v11999_v4 }
 0x487   : > { %8436 = vmatmul.mubr.f32.vlgmr.msra.gmra.mrb[42].mxu1 %v4105_v26  ;;  %v9188_v26 = vpack.c.bf16 %v4592_v34, %v4585_v48 }
 0x488   : > { %8439 = vmatpush3.msra.mxu1 %v4116_v44  ;;  %8440 = vmatprep.mubr.msk.f32.mxu1 %vm9369_vm1, %v11999_v4  ;;  %v4602_v44 = vand.u32 4294901760, %v4601_v21 }
 0x489   : > { %8443 = vmatprep.subr.mxu1 %v11999_v4 }
 0x48f   : > { %8441 = vmatmul.mubr.f32.vlgmr.msra.gmra.mrb[42].mxu1 %v4103_v51 }
 0x490   : > { %8444 = vmatpush3.msra.mxu1 %v4038_v25  ;;  %8445 = vmatprep.mubr.msk.f32.mxu1 %vm9369_vm1, %v11999_v4 }
 0x491   : > { %9166 = vmatprep.subr.bf16.mxu1 %v11930_v1 }
 0x497   : > { %8446 = vmatmul.mubr.f32.vlgmr.msra.gmra.mrb[42].mxu1 %v4103_v51  ;;  %v4609_v51 = vand.u32 4294901760, %v4608_v2  ;;  %v12057_v2 = vld [vmem:[#allocation32_spill] sm:$0xff] }
 0x498   : > { %9168 = vmatpush3.bf16.msra.mxu1 %v10951_v40  ;;  %8460 = vmatprep.mubr.msk.f32.mxu1 %vm9369_vm1, %v11999_v4 }
 0x499   : > { %9169 = vmatprep.subr.bf16.mxu1 %v11930_v1  ;;  %v9182_v55 = vpack.c.bf16 %v4609_v51, %v4602_v44 }
 0x49c   : > { %9171 = vmatpush3.bf16.msra.mxu1 %v10966_v43 }
 0x49d   : > { %9172 = vmatprep.subr.bf16.mxu1 %v11930_v1 }
 0x4a0   : > { %9174 = vmatpush3.bf16.msra.mxu1 %v10974_v39 }
 0x4a1   : > { %9175 = vmatprep.subr.bf16.mxu1 %v11930_v1 }
 0x4b1   : > { %v3562_v22 = vpop.xlane.xlu0 %3561 }
 0x4b2   : > { %v3563_v9 = vsub.f32 %v9239_v30, %v3562_v22  ;;  %v4588_v30 = vand.u32 4294901760, %v4587_v7  ;;  %v11122_v7 = vld [vmem:[%s11758_s5 + $0x58] sm:$0xff] }
 0x4b4   : > { %v3564_v32 = vmul.f32 1.442695, %v3563_v9  ;;  %v9179_v59 = vpack.c.bf16 %v4595_v53, %v4588_v30 }
 0x4b6   : > { %9352 = vpow2.f32 %v3564_v32 }
 0x4c0   : > { %v10983_v33 = vpop.eup %9352 }
 0x4c1   : > { %v4486_v25 = vsel %vm2506_vm3, %v10983_v33, 0 }
 0x4c2   : > { %v10989_v46 = vand.u32 4294901760, %v4486_v25 }
 0x4c4   : > { %v4560_v61 = vsub.f32 %v4486_v25, %v10989_v46  ;;  %v11061_v25 = vld [vmem:[%s11758_s5 + $0x18] sm:$0xff] }
 0x4c6   : > { %v4561_v13 = vand.u32 4294901760, %v4560_v61 }
 0x4c8   : > { %v4562_v57 = vsub.f32 %v4560_v61, %v4561_v13 }
 0x4ca   : > { %v4563_v45 = vand.u32 4294901760, %v4562_v57  ;;  %v9220_v57 = vpack.c.bf16 %v10701_v15, %v10696_v0 }
 0x4cc   : > { %8461 = vmatmul.mubr.f32.vlgmr.msra.gmra.mrb[44].mxu1 %v4563_v45 }
 0x4cd   : > { %9177 = vmatpush3.bf16.msra.mxu1 %v9176_v29  ;;  %8475 = vmatprep.mubr.msk.f32.mxu1 %vm9369_vm1, %v11999_v4 }
 0x4ce   : > { %9178 = vmatprep.subr.bf16.mxu1 %v11930_v1 }
 0x4d1   : > { %9180 = vmatpush3.bf16.msra.mxu1 %v9179_v59  ;;  %v12058_v59 = vld [vmem:[#allocation33_spill] sm:$0xff] }
 0x4d2   : > { %9181 = vmatprep.subr.bf16.mxu1 %v11930_v1 }
 0x4d5   : > { %9183 = vmatpush3.bf16.msra.mxu1 %v9182_v55 }
 0x4d6   : > { %9184 = vmatprep.subr.bf16.mxu1 %v11930_v1 }
 0x4d8   : > { %8476 = vmatmul.mubr.f32.vlgmr.msra.gmra.mrb[44].mxu1 %v10989_v46 }
 0x4d9   : > { %9186 = vmatpush3.bf16.msra.mxu1 %v9185_v24  ;;  %8490 = vmatprep.mubr.msk.f32.mxu1 %vm9369_vm1, %v11999_v4  ;;  %v12059_v24 = vld [vmem:[#allocation34_spill] sm:$0xff] }
 0x4da   : > { %9187 = vmatprep.subr.bf16.mxu1 %v11930_v1 }
 0x4dd   : > { %9189 = vmatpush3.bf16.msra.mxu1 %v9188_v26 }
 0x4de   : > { %9190 = vmatprep.subr.bf16.mxu1 %v11930_v1 }
 0x4e1   : > { %9192 = vmatpush3.bf16.msra.mxu1 %v9191_v8  ;;  %v12060_v8 = vld [vmem:[#allocation35_spill] sm:$0xff] }
 0x4e2   : > { %9193 = vmatprep.subr.bf16.mxu1 %v11930_v1 }
 0x4e4   : > { %8491 = vmatmul.mubr.f32.vlgmr.msra.gmra.mrb[44].mxu1 %v4560_v61  ;;  %v11097_v61 = vld [vmem:[%s11758_s5 + $0x40] sm:$0xff] }
 0x4e5   : > { %9195 = vmatpush3.bf16.msra.mxu1 %v10951_v40  ;;  %8505 = vmatprep.mubr.msk.f32.mxu1 %vm9369_vm1, %v11999_v4 }
 0x4e6   : > { %9196 = vmatprep.subr.bf16.mxu1 %v11930_v1 }
 0x4e9   : > { %9198 = vmatpush3.bf16.msra.mxu1 %v10966_v43 }
 0x4ea   : > { %9199 = vmatprep.subr.bf16.mxu1 %v11930_v1 }
 0x4ed   : > { %9201 = vmatpush3.bf16.msra.mxu1 %v10974_v39 }
 0x4ee   : > { %9202 = vmatprep.subr.bf16.mxu1 %v11930_v1 }
 0x4f0   : > { %8506 = vmatmul.mubr.f32.vlgmr.msra.gmra.mrb[44].mxu1 %v4561_v13  ;;  %v11151_v13 = vld [vmem:[%s11758_s5 + $0x78] sm:$0xff] }
 0x4f1   : > { %9204 = vmatpush3.bf16.msra.mxu1 %v9203_v49  ;;  %8520 = vmatprep.mubr.msk.f32.mxu1 %vm9369_vm1, %v11999_v4 }
 0x4f2   : > { %9205 = vmatprep.subr.bf16.mxu1 %v11930_v1 }
 0x4f5   : > { %9207 = vmatpush3.bf16.msra.mxu1 %v9206_v54  ;;  %v12061_v54 = vld [vmem:[#allocation39_spill] sm:$0xff] }
 0x4f6   : > { %9208 = vmatprep.subr.bf16.mxu1 %v11930_v1 }
 0x4f9   : > { %9210 = vmatpush3.bf16.msra.mxu1 %v9209_v23 }
 0x4fa   : > { %9211 = vmatprep.subr.bf16.mxu1 %v11930_v1 }
 0x4fc   : > { %8521 = vmatmul.mubr.f32.vlgmr.msra.gmra.mrb[44].mxu1 %v10989_v46 }
 0x4fd   : > { %9213 = vmatpush3.bf16.msra.mxu1 %v10951_v40  ;;  %8535 = vmatprep.mubr.msk.f32.mxu1 %vm9369_vm1, %v11999_v4  ;;  %v5089_v40 = vsub.f32 %v5009_v18, %v5012_v47 }
 0x4fe   : > { %9214 = vmatprep.subr.bf16.mxu1 %v11930_v1 }
 0x4ff   : > { %v5090_v17 = vand.u32 4294901760, %v5089_v40 }
 0x501   : > { %9216 = vmatpush3.bf16.msra.mxu1 %v10966_v43  ;;  %v5091_v36 = vsub.f32 %v5089_v40, %v5090_v17 }
 0x502   : > { %9217 = vmatprep.subr.bf16.mxu1 %v11930_v1 }
 0x503   : > { %v5092_v22 = vand.u32 4294901760, %v5091_v36 }
 0x505   : > { %9219 = vmatpush3.bf16.msra.mxu1 %v10974_v39  ;;  %8544 = vmatpush3.msra.mxu0 %v5092_v22 }
 0x506   : > { %8538 = vmatprep.subr.mxu1 %v11999_v4  ;;  %8548 = vmatprep.subr.mxu0 %v11999_v4 }
 0x508   : > { %8536 = vmatmul.mubr.f32.vlgmr.msra.gmra.mrb[44].mxu1 %v10989_v46  ;;  %v11092_v46 = vld [vmem:[%s11758_s5 + $0x38] sm:$0xff] }
 0x509   : > { %8539 = vmatpush3.msra.mxu1 %v5012_v47  ;;  %8540 = vmatprep.mubr.msk.f32.mxu1 %vm9369_vm1, %v11999_v4 }
 0x56a   : > { %v4479_v1 = vpop.f32.mrb[42].mxu1 }
 0x56b   : > { %9354 = vrcp.f32 %v4479_v1  ;;  %v8447_v43 = vpop.f32.mrb[43].mxu1 }
 0x56c   : > { %v12065_v43 = vld [vmem:[#allocation54_spill] sm:$0xff] }
 0x575   : > { %v9355_v39 = vpop.eup %9354 }
 0x576   : > { %v4484_v9 = vmul.f32 %v9355_v39, %v10867_v50  ;;  %v500_v50 = vld [vmem:[%s11758_s5] sm:$0xff] }
 0x578   : > { %8568 = vmatprep.subr.mxu1 %v4484_v9 }
 0x5db   : > { %v4995_v32 = vpop.f32.mrb[44].mxu1 }
 0x5dc   : > { %v5006_v62 = vsel %vm5004_vm8, %v4995_v32, 0  ;;  %v8537_v60 = vpop.f32.mrb[45].mxu1 }
 0x5dd   : > { %v5077_v38 = vand.u32 4294901760, %v5006_v62 }
 0x5df   : > { %v5078_v10 = vsub.f32 %v5006_v62, %v5077_v38  ;;  %8546 = vmatmul.mubr.f32.vlgmr.msra.gmra.mrb[60].mxu0 %v5077_v38 }
 0x5e0   : > { %8549 = vmatpush3.msra.mxu0 %v5089_v40  ;;  %8550 = vmatprep.mubr.msk.f32.mxu0 %vm9369_vm1, %v11999_v4 }
 0x5e1   : > { %v5079_v48 = vand.u32 4294901760, %v5078_v10  ;;  %8553 = vmatprep.subr.mxu0 %v11999_v4 }
 0x5e3   : > { %v5080_v34 = vsub.f32 %v5078_v10, %v5079_v48 }
 0x5e5   : > { %v5081_v6 = vand.u32 4294901760, %v5080_v34  ;;  %v12067_v34 = vld [vmem:[#allocation62_spill] sm:$0xff] }
 0x5e7   : > { %8541 = vmatmul.mubr.f32.vlgmr.msra.gmra.mrb[46].mxu1 %v5081_v6  ;;  %8551 = vmatmul.mubr.f32.vlgmr.msra.gmra.mrb[60].mxu0 %v5078_v10 }
 0x5e8   : > { %8569 = vmatpush3.msra.mxu1 %v4484_v9  ;;  %8570 = vmatprep.mubr.msk.f32.mxu1 %vm5459_vm9, %v500_v50  ;;  %v12066_v9 = vld [vmem:[#allocation57_spill] sm:$0xff] }
 0x5e9   : > { %8554 = vmatpush3.msra.mxu0 %v5012_v47  ;;  %8555 = vmatprep.mubr.msk.f32.mxu0 %vm9369_vm1, %v11999_v4 }
 0x5ea   : > { %8558 = vmatprep.subr.mxu0 %v11999_v4  ;;  %9221 = vmatprep.subr.bf16.mxu1 %v9220_v57 }
 0x5eb   : > { %8571 = vmatmul.mubr.msk.f32.vlgmr.msra.gmra.mrb[48].mxu1 %vm5459_vm9, %v11044_v42 }
 0x5ec   : > { %8573 = vmatprep.mubr.msk.f32.mxu1 %vm5459_vm9, %v11051_v14  ;;  %9223 = vmatpush3.bf16.msra.mxu1 %v9220_v57 }
 0x5ef   : > { %8556 = vmatmul.mubr.f32.vlgmr.msra.gmra.mrb[60].mxu0 %v5079_v48  ;;  %8574 = vmatmul.mubr.msk.f32.gmra.mrb[50].mxu1 %vm5459_vm9, %v11061_v25 }
 0x5f0   : > { %8576 = vmatprep.mubr.msk.f32.mxu1 %vm5459_vm9, %v11066_v63  ;;  %8559 = vmatpush3.msra.mxu0 %v5090_v17  ;;  %v12064_v17 = vld [vmem:[#allocation49_spill] sm:$0xff] }
 0x5f1   : > { %8560 = vmatprep.mubr.msk.f32.mxu0 %vm9369_vm1, %v11999_v4  ;;  %8563 = vmatprep.subr.mxu0 %v11999_v4 }
 0x5f3   : > { %8577 = vmatmul.mubr.msk.f32.gmra.mrb[52].mxu1 %vm5459_vm9, %v11075_v31 }
 0x5f4   : > { %8579 = vmatprep.mubr.msk.f32.mxu1 %vm5459_vm9, %v11082_v3 }
 0x5f7   : > { %8561 = vmatmul.mubr.f32.vlgmr.msra.gmra.mrb[60].mxu0 %v5077_v38  ;;  %8580 = vmatmul.mubr.msk.f32.gmra.mrb[54].mxu1 %vm5459_vm9, %v11092_v46 }
 0x5f8   : > { %8582 = vmatprep.mubr.msk.f32.mxu1 %vm5459_vm9, %v11097_v61  ;;  %8564 = vmatpush3.msra.mxu0 %v5012_v47  ;;  %v12063_v47 = vld [vmem:[#allocation46_spill] sm:$0xff] }
 0x5f9   : > { %8565 = vmatprep.mubr.msk.f32.mxu0 %vm9369_vm1, %v11999_v4 }
 0x5fb   : > { %8583 = vmatmul.mubr.msk.f32.gmra.mrb[56].mxu1 %vm5459_vm9, %v11106_v12 }
 0x5fc   : > { %8585 = vmatprep.mubr.msk.f32.mxu1 %vm5459_vm9, %v11113_v35 }
 0x5ff   : > { %8566 = vmatmul.mubr.f32.vlgmr.msra.gmra.mrb[60].mxu0 %v5077_v38  ;;  %8586 = vmatmul.mubr.msk.f32.gmra.mrb[58].mxu1 %vm5459_vm9, %v11122_v7 }
 0x600   : > { %8588 = vmatprep.mubr.msk.f32.mxu1 %vm5459_vm9, %v11127_v52  ;;  %8596 = vmatprep.mubr.msk.f32.mxu0 %vm5459_vm9, %v500_v50  ;;  %v12068_v50 = vld [vmem:[#allocation65_spill] sm:$0xff] }
 0x603   : > { %8589 = vmatmul.mubr.msk.f32.gmra.mrb[60].mxu1 %vm5459_vm9, %v11136_v37 }
 0x604   : > { %8591 = vmatprep.mubr.msk.f32.mxu1 %vm5459_vm9, %v11142_v28 }
 0x607   : > { %8592 = vmatmul.mubr.msk.f32.gmra.mrb[62].mxu1 %vm5459_vm9, %v11151_v13 }
 0x6ba   : > { %v5083_v29 = vpop.f32.mrb[46].mxu1 }
 0x6bb   : > { %v8542_v30 = vpop.f32.mrb[47].mxu1 }
 0x6be   : > { %v8572_v53 = vpop.f32.mrb[48].mxu1 }
 0x6bf   : > { %v5574_v21 = vpop.f32.mrb[49].mxu1  ;;  %v5799_v44 = vmul.f32 %v8572_v53, %v12058_v59 }
 0x6c0   : > { %v5798_v45 = vmul.f32 %v12057_v2, %v5574_v21  ;;  %v12069_v21 = vld [vmem:[#allocation71_spill] sm:$0xff] }
 0x6c2   : > { %v8575_v51 = vpop.f32.mrb[50].mxu1  ;;  %8624 = vmatprep.mubr.msk.f32.mxu1 %vm3553_vm2, %v5798_v45 }
 0x6c3   : > { %v5584_v55 = vpop.f32.mrb[51].mxu1  ;;  %8625 = vmatmul.mubr.msk.f32.vlgmr.msra.gmra.mrb[64].mxu1 %vm3553_vm2, %v5799_v44  ;;  %v5801_v0 = vmul.f32 %v8575_v51, %v12060_v8  ;;  %v12071_v51 = vld [vmem:[#allocation81_spill] sm:$0xff] }
 0x6c4   : > { %v5800_v26 = vmul.f32 %v12059_v24, %v5584_v55  ;;  %v12072_v24 = vld [vmem:[#allocation85_spill] sm:$0xff] }
 0x6c6   : > { %v8578_v15 = vpop.f32.mrb[52].mxu1  ;;  %8627 = vmatprep.mubr.msk.f32.mxu1 %vm3553_vm2, %v5800_v26 }
 0x6c7   : > { %v5594_v49 = vpop.f32.mrb[53].mxu1  ;;  %8628 = vmatmul.mubr.msk.f32.gmra.mrb[66].mxu1 %vm3553_vm2, %v5801_v0  ;;  %v5803_v19 = vmul.f32 %v8578_v15, %v12062_v27  ;;  %v546_v15 = vld [vmem:[%s11763_s10 + $0x90] sm:$0xff] }
 0x6c8   : > { %v5802_v23 = vmul.f32 %v12061_v54, %v5594_v49 }
 0x6ca   : > { %v8581_v5 = vpop.f32.mrb[54].mxu1  ;;  %8630 = vmatprep.mubr.msk.f32.mxu1 %vm3553_vm2, %v5802_v23 }
 0x6cb   : > { %v5604_v18 = vpop.f32.mrb[55].mxu1  ;;  %8631 = vmatmul.mubr.msk.f32.gmra.mrb[68].mxu1 %vm3553_vm2, %v5803_v19  ;;  %v5805_v36 = vmul.f32 %v8581_v5, %v12064_v17  ;;  %v547_v19 = vld [vmem:[%s11763_s10 + $0x98] sm:$0xff]  ;;  %v532_v5 = vld [vmem:[%s11763_s10 + $0x20] sm:$0xff] }
 0x6cc   : > { %v5804_v40 = vmul.f32 %v12063_v47, %v5604_v18 }
 0x6ce   : > { %v8584_v22 = vpop.f32.mrb[56].mxu1  ;;  %8633 = vmatprep.mubr.msk.f32.mxu1 %vm3553_vm2, %v5804_v40 }
 0x6cf   : > { %v5614_v1 = vpop.f32.mrb[57].mxu1  ;;  %8634 = vmatmul.mubr.msk.f32.gmra.mrb[70].mxu1 %vm3553_vm2, %v5805_v36  ;;  %v5807_v32 = vmul.f32 %v8584_v22, %v12066_v9  ;;  %v533_v36 = vld [vmem:[%s11763_s10 + $0x28] sm:$0xff]  ;;  %v548_v22 = vld [vmem:[%s11763_s10 + $0xa0] sm:$0xff] }
 0x6d0   : > { %v5806_v39 = vmul.f32 %v12065_v43, %v5614_v1 }
 0x6d2   : > { %v5453_v62 = vpop.f32.mrb[60].mxu0  ;;  %v8587_v60 = vpop.f32.mrb[58].mxu1  ;;  %8636 = vmatprep.mubr.msk.f32.mxu1 %vm3553_vm2, %v5806_v39 }
 0x6d3   : > { %v9240_v38 = vadd.f32 %v5453_v62, %v5083_v29  ;;  %v8567_v10 = vpop.f32.mrb[61].mxu0  ;;  %v5624_v48 = vpop.f32.mrb[59].mxu1  ;;  %8637 = vmatmul.mubr.msk.f32.gmra.mrb[72].mxu1 %vm3553_vm2, %v5807_v32  ;;  %v5809_v57 = vmul.f32 %v8587_v60, %v12068_v50  ;;  %v12070_v29 = vld [vmem:[#allocation75_spill] sm:$0xff]  ;;  %v534_v62 = vld [vmem:[%s11763_s10 + $0x30] sm:$0xff] }
 0x6d4   : > { %v5808_v6 = vmul.f32 %v12067_v34, %v5624_v48  ;;  %v549_v32 = vld [vmem:[%s11763_s10 + $0xa8] sm:$0xff]  ;;  %v535_v34 = vld [vmem:[%s11763_s10 + $0x38] sm:$0xff] }
 0x6d5   : > { %9356 = vrcp.f32 %v9240_v38 }
 0x6d6   : > { %v8590_v30 = vpop.f32.mrb[60].mxu1  ;;  %8639 = vmatprep.mubr.msk.f32.mxu1 %vm3553_vm2, %v5808_v6  ;;  %v550_v6 = vld [vmem:[%s11763_s10 + $0xb0] sm:$0xff] }
 0x6d7   : > { %v5634_v53 = vpop.f32.mrb[61].mxu1  ;;  %8640 = vmatmul.mubr.msk.f32.gmra.mrb[74].mxu1 %vm3553_vm2, %v5809_v57  ;;  %v5811_v45 = vmul.f32 %v8590_v30, %v12070_v29 }
 0x6d8   : > { %v5810_v2 = vmul.f32 %v12069_v21, %v5634_v53  ;;  %v551_v21 = vld [vmem:[%s11763_s10 + $0xb8] sm:$0xff] }
 0x6da   : > { %v8593_v59 = vpop.f32.mrb[62].mxu1  ;;  %8642 = vmatprep.mubr.msk.f32.mxu1 %vm3553_vm2, %v5810_v2  ;;  %v536_v2 = vld [vmem:[%s11763_s10 + $0x40] sm:$0xff] }
 0x6db   : > { %v5644_v44 = vpop.f32.mrb[63].mxu1  ;;  %8643 = vmatmul.mubr.msk.f32.gmra.mrb[76].mxu1 %vm3553_vm2, %v5811_v45  ;;  %v5813_v26 = vmul.f32 %v8593_v59, %v12072_v24  ;;  %v12073_v24 = vld [vmem:[#allocation40_spill] sm:$0xff] }
 0x6dc   : > { %v5812_v55 = vmul.f32 %v12071_v51, %v5644_v44  ;;  %v537_v44 = vld [vmem:[%s11763_s10 + $0x48] sm:$0xff]  ;;  %v552_v51 = vld [vmem:[%s11763_s10 + $0xc0] sm:$0xff] }
 0x6de   : > { %8645 = vmatprep.mubr.msk.f32.mxu1 %vm3553_vm2, %v5812_v55 }
 0x6df   : > { %v9357_v8 = vpop.eup %9356  ;;  %8646 = vmatmul.mubr.msk.f32.gmra.mrb[78].mxu1 %vm3553_vm2, %v5813_v26 }
 0x6e0   : > { %v5458_v0 = vmul.f32 %v9357_v8, %v10983_v33  ;;  %6398 = vmatprep.mubr.f32.mxu1 %v11999_v4  ;;  %v527_v33 = vld [vmem:[%s11762_s9 + $0x8] sm:$0xff] }
 0x6e1   : > { %7112 = vmatprep.subr.msk.mxu1 %vm4034_vm4, %v527_v33 }
 0x6e2   : > { %8594 = vmatprep.subr.mxu0 %v5458_v0  ;;  %6870 = vst.msk [vmem:[%s499_s30] sm:$0xff] %vm2506_vm3, %v5458_v0 }
 0x6e3   : > { %8595 = vmatpush3.msra.mxu0 %v5458_v0 }
 0x6e4   : > { %8597 = vmatmul.mubr.msk.f32.vlgmr.msra.gmra.mrb[62].mxu0 %vm5459_vm9, %v11044_v42  ;;  %v11234_v42 = vld [vmem:[%s11762_s9] sm:$0xff] }
 0x6e5   : > { %8599 = vmatprep.mubr.msk.f32.mxu0 %vm5459_vm9, %v11051_v14  ;;  %7113 = vmatpush1.msk.msra.mxu1 %vm4034_vm4, %v11234_v42  ;;  %v9224_v14 = vpack.c.bf16 %v10934_v11, %v10929_v58  ;;  %v529_v11 = vld [vmem:[%s11763_s10 + $0x8] sm:$0xff]  ;;  %v6591_v0 = vrot.slane %v11234_v42, 2 }
 0x6e7   : > { %9225 = vmatprep.subr.bf16.mxu0 %v9224_v14 }
 0x6e8   : > { %8600 = vmatmul.mubr.msk.f32.gmra.mrb[64].mxu0 %vm5459_vm9, %v11061_v25  ;;  %v9228_v25 = vpack.c.bf16 %v10949_v20, %v10944_v56  ;;  %v544_v56 = vld [vmem:[%s11763_s10 + $0x80] sm:$0xff] }
 0x6e9   : > { %8602 = vmatprep.mubr.msk.f32.mxu0 %vm5459_vm9, %v11066_v63  ;;  %9227 = vmatpush3.bf16.msra.mxu0 %v9224_v14  ;;  %v6592_v63 = vrot.slane %v527_v33, 2  ;;  %v12074_v33 = vld [vmem:[#allocation37_spill] sm:$0xff] }
 0x6ea   : > { %9229 = vmatprep.subr.bf16.mxu0 %v9228_v25 }
 0x6ec   : > { %8603 = vmatmul.mubr.msk.f32.gmra.mrb[66].mxu0 %vm5459_vm9, %v11075_v31  ;;  %v9232_v31 = vpack.c.bf16 %v10963_v41, %v10958_v16 }
 0x6ed   : > { %8605 = vmatprep.mubr.msk.f32.mxu0 %vm5459_vm9, %v11082_v3  ;;  %9231 = vmatpush3.bf16.msra.mxu0 %v9228_v25  ;;  %v528_v3 = vld [vmem:[%s11763_s10] sm:$0xff] }
 0x6ee   : > { %9233 = vmatprep.subr.bf16.mxu0 %v9232_v31 }
 0x6f0   : > { %8606 = vmatmul.mubr.msk.f32.gmra.mrb[68].mxu0 %vm5459_vm9, %v11092_v46 }
 0x6f1   : > { %8608 = vmatprep.mubr.msk.f32.mxu0 %vm5459_vm9, %v11097_v61  ;;  %9235 = vmatpush3.bf16.msra.mxu0 %v9232_v31  ;;  %v553_v31 = vld [vmem:[%s11763_s10 + $0xc8] sm:$0xff] }
 0x6f2   : > { %7130 = vmatprep.subr.msk.mxu0 %vm5008_vm7, %v6592_v63 }
 0x6f4   : > { %8609 = vmatmul.mubr.msk.f32.gmra.mrb[70].mxu0 %vm5459_vm9, %v11106_v12  ;;  %v545_v12 = vld [vmem:[%s11763_s10 + $0x88] sm:$0xff] }
 0x6f5   : > { %8611 = vmatprep.mubr.msk.f32.mxu0 %vm5459_vm9, %v11113_v35  ;;  %v530_v35 = vld [vmem:[%s11763_s10 + $0x10] sm:$0xff] }
 0x6f8   : > { %8612 = vmatmul.mubr.msk.f32.gmra.mrb[72].mxu0 %vm5459_vm9, %v11122_v7 }
 0x6f9   : > { %8614 = vmatprep.mubr.msk.f32.mxu0 %vm5459_vm9, %v11127_v52 }
 0x6fc   : > { %8615 = vmatmul.mubr.msk.f32.gmra.mrb[74].mxu0 %vm5459_vm9, %v11136_v37 }
 0x6fd   : > { %8617 = vmatprep.mubr.msk.f32.mxu0 %vm5459_vm9, %v11142_v28 }
 0x700   : > { %8618 = vmatmul.mubr.msk.f32.gmra.mrb[76].mxu0 %vm5459_vm9, %v11151_v13  ;;  %v531_v13 = vld [vmem:[%s11763_s10 + $0x18] sm:$0xff] }
 0x796   : > { %v8626_v58 = vpop.f32.mrb[64].mxu1 }
 0x797   : > { %v5928_v20 = vpop.f32.mrb[65].mxu1  ;;  %v6217_v16 = vmul.f32 %v8626_v58, %v529_v11  ;;  %v12075_v11 = vld [vmem:[#allocation48_spill] sm:$0xff] }
 0x798   : > { %v6216_v46 = vmul.f32 %v5928_v20, %v528_v3  ;;  %v538_v3 = vld [vmem:[%s11763_s10 + $0x50] sm:$0xff] }
 0x799   : > { %v6233_v52 = vadd.f32 %v6217_v16, %v545_v12  ;;  %v12076_v20 = vld [vmem:[#allocation44_spill] sm:$0xff] }
 0x79a   : > { %v6232_v41 = vadd.f32 %v6216_v46, %v544_v56  ;;  %v8629_v61 = vpop.f32.mrb[66].mxu1  ;;  %v554_v12 = vld [vmem:[%s11763_s10 + $0xd0] sm:$0xff] }
 0x79b   : > { %v5938_v7 = vpop.f32.mrb[67].mxu1  ;;  %v6219_v54 = vmul.f32 %v8629_v61, %v531_v13  ;;  %v539_v61 = vld [vmem:[%s11763_s10 + $0x58] sm:$0xff] }
 0x79c   : > { %7114 = vmatmul.mubr.msk.f32.vlgmr.msra.gmra.mrb[80].mxu1 %vm4030_vm5, %v6232_v41  ;;  %v6218_v37 = vmul.f32 %v5938_v7, %v530_v35  ;;  %v12077_v7 = vld [vmem:[#allocation56_spill] sm:$0xff] }
 0x79d   : > { %6404 = vmatprep.mubr.f32.mxu1 %v11999_v4  ;;  %v6235_v47 = vadd.f32 %v6219_v54, %v547_v19  ;;  %v555_v54 = vld [vmem:[%s11763_s10 + $0xd8] sm:$0xff]  ;;  %v12079_v19 = vld [vmem:[#allocation64_spill] sm:$0xff] }
 0x79e   : > { %v8632_v28 = vpop.f32.mrb[68].mxu1  ;;  %v6234_v23 = vadd.f32 %v6218_v37, %v546_v15 }
 0x79f   : > { %v5948_v49 = vpop.f32.mrb[69].mxu1  ;;  %v6221_v43 = vmul.f32 %v8632_v28, %v533_v36  ;;  %v12078_v28 = vld [vmem:[#allocation52_spill] sm:$0xff] }
 0x7a0   : > { %7115 = vmatmul.mubr.msk.f32.gmra.mrb[82].mxu1 %vm4030_vm5, %v6233_v52  ;;  %v6220_v40 = vmul.f32 %v5948_v49, %v532_v5 }
 0x7a1   : > { %6410 = vmatprep.mubr.f32.mxu1 %v11999_v4  ;;  %v6237_v38 = vadd.f32 %v6221_v43, %v549_v32 }
 0x7a2   : > { %v8635_v27 = vpop.f32.mrb[70].mxu1  ;;  %v6236_v39 = vadd.f32 %v6220_v40, %v548_v22  ;;  %v541_v22 = vld [vmem:[%s11763_s10 + $0x68] sm:$0xff] }
 0x7a3   : > { %v5958_v18 = vpop.f32.mrb[71].mxu1  ;;  %v6223_v57 = vmul.f32 %v8635_v27, %v535_v34  ;;  %v557_v34 = vld [vmem:[%s11763_s10 + $0xe8] sm:$0xff] }
 0x7a4   : > { %7116 = vmatmul.mubr.msk.f32.gmra.mrb[84].mxu1 %vm4030_vm5, %v6234_v23  ;;  %v6222_v10 = vmul.f32 %v5958_v18, %v534_v62  ;;  %v540_v23 = vld [vmem:[%s11763_s10 + $0x60] sm:$0xff]  ;;  %v12082_v62 = vld [vmem:[#allocation68_spill] sm:$0xff] }
 0x7a5   : > { %6416 = vmatprep.mubr.f32.mxu1 %v11999_v4  ;;  %v6239_v45 = vadd.f32 %v6223_v57, %v551_v21  ;;  %v12083_v57 = vld [vmem:[#allocation84_spill] sm:$0xff] }
 0x7a6   : > { %v8638_v17 = vpop.f32.mrb[72].mxu1  ;;  %v6238_v30 = vadd.f32 %v6222_v10, %v550_v6  ;;  %v542_v6 = vld [vmem:[%s11763_s10 + $0x70] sm:$0xff] }
 0x7a7   : > { %v5968_v1 = vpop.f32.mrb[73].mxu1  ;;  %v6225_v25 = vmul.f32 %v8638_v17, %v537_v44  ;;  %v543_v44 = vld [vmem:[%s11763_s10 + $0x78] sm:$0xff] }
 0x7a8   : > { %7117 = vmatmul.mubr.msk.f32.gmra.mrb[86].mxu1 %vm4030_vm5, %v6235_v47  ;;  %v6224_v59 = vmul.f32 %v5968_v1, %v536_v2  ;;  %v12080_v47 = vld [vmem:[#allocation60_spill] sm:$0xff]  ;;  %v556_v1 = vld [vmem:[%s11763_s10 + $0xe0] sm:$0xff] }
 0x7a9   : > { %6422 = vmatprep.mubr.f32.mxu1 %v11999_v4  ;;  %v6241_v16 = vadd.f32 %v6225_v25, %v553_v31  ;;  %v559_v25 = vld [vmem:[%s11763_s10 + $0xf8] sm:$0xff]  ;;  %v12087_v31 = vld [vmem:[#allocation100_spill] sm:$0xff] }
 0x7aa   : > { %v8641_v9 = vpop.f32.mrb[74].mxu1  ;;  %v6240_v63 = vadd.f32 %v6224_v59, %v552_v51  ;;  %v558_v51 = vld [vmem:[%s11763_s10 + $0xf0] sm:$0xff] }
 0x7ab   : > { %v5978_v60 = vpop.f32.mrb[75].mxu1  ;;  %v6227_v15 = vmul.f32 %v8641_v9, %v539_v61 }
 0x7ac   : > { %7118 = vmatmul.mubr.msk.f32.gmra.mrb[88].mxu1 %vm4030_vm5, %v6236_v39  ;;  %v6226_v41 = vmul.f32 %v5978_v60, %v538_v3  ;;  %v12081_v39 = vld [vmem:[#allocation73_spill] sm:$0xff] }
 0x7ad   : > { %6428 = vmatprep.mubr.f32.mxu1 %v11999_v4  ;;  %v6243_v17 = vadd.f32 %v6227_v15, %v555_v54  ;;  %v12091_v15 = vld [vmem:[#allocation5_spill] sm:$0xff] }
 0x7ae   : > { %v11294_v48 = vpop.f32.mrb[76].mxu1  ;;  %v6242_v49 = vadd.f32 %v6226_v41, %v554_v12  ;;  %v9359_v41 = vld [vmem:[%s9562_s19 + $0x8] sm:$0xff] }
 0x7af   : > { %v5988_v50 = vpop.f32.mrb[77].mxu1 }
 0x7b0   : > { %7119 = vmatmul.mubr.msk.f32.gmra.mrb[90].mxu1 %vm4030_vm5, %v6237_v38  ;;  %v6228_v36 = vmul.f32 %v5988_v50, %v540_v23  ;;  %v6229_v38 = vmul.f32 %v11294_v48, %v541_v22  ;;  %v12084_v48 = vld [vmem:[#allocation78_spill] sm:$0xff]  ;;  %v12092_v23 = vld [vmem:[#allocation4_spill] sm:$0xff]  ;;  %v12095_v22 = vld [vmem:[#allocation9_spill] sm:$0xff] }
 0x7b1   : > { %6434 = vmatprep.mubr.f32.mxu1 %v11999_v4 }
 0x7b2   : > { %v11304_v53 = vpop.f32.mrb[78].mxu1  ;;  %v6244_v10 = vadd.f32 %v6228_v36, %v556_v1 }
 0x7b3   : > { %v11312_v29 = vpop.f32.mrb[79].mxu1 }
 0x7b4   : > { %7120 = vmatmul.mubr.msk.f32.gmra.mrb[92].mxu1 %vm4030_vm5, %v6238_v30  ;;  %v6230_v59 = vmul.f32 %v11312_v29, %v542_v6 }
 0x7b5   : > { %6440 = vmatprep.mubr.f32.mxu1 %v11999_v4 }
 0x7b7   : > { %v8598_v55 = vpop.f32.mrb[62].mxu0 }
 0x7b8   : > { %v6008_v26 = vmul.f32 %v8598_v55, %v12073_v24  ;;  %v5719_v8 = vpop.f32.mrb[63].mxu0  ;;  %7121 = vmatmul.mubr.msk.f32.gmra.mrb[94].mxu1 %vm4030_vm5, %v6239_v45  ;;  %v6245_v45 = vadd.f32 %v6229_v38, %v557_v34  ;;  %v12085_v24 = vld [vmem:[#allocation95_spill] sm:$0xff] }
 0x7b9   : > { %v6007_v14 = vmul.f32 %v5719_v8, %v12074_v33  ;;  %6446 = vmatprep.mubr.f32.mxu1 %v11999_v4  ;;  %v6231_v33 = vmul.f32 %v11304_v53, %v543_v44 }
 0x7bb   : > { %v8601_v58 = vpop.f32.mrb[64].mxu0  ;;  %8660 = vmatprep.mubr.msk.f32.mxu0 %vm2506_vm3, %v6007_v14  ;;  %v6246_v14 = vadd.f32 %v6230_v59, %v558_v51  ;;  %v12102_v51 = vld [vmem:[#allocation14_spill] sm:$0xff] }
 0x7bc   : > { %v6010_v56 = vmul.f32 %v8601_v58, %v12075_v11  ;;  %v5729_v42 = vpop.f32.mrb[65].mxu0  ;;  %8661 = vmatmul.mubr.msk.f32.vlgmr.msra.gmra.mrb[78].mxu0 %vm2506_vm3, %v6008_v26  ;;  %7122 = vmatmul.mubr.msk.f32.gmra.mrb[96].mxu1 %vm4030_vm5, %v6240_v63  ;;  %v12088_v11 = vld [vmem:[#allocation98_spill] sm:$0xff] }
 0x7bd   : > { %v6009_v46 = vmul.f32 %v5729_v42, %v12076_v20  ;;  %6452 = vmatprep.mubr.f32.mxu1 %v11999_v4  ;;  %7131 = vmatpush1.msk.msra.mxu0 %vm5008_vm7, %v6591_v0  ;;  %v12086_v0 = vld [vmem:[#allocation90_spill] sm:$0xff] }
 0x7be   : > { %v9358_v20 = vld [vmem:[%s9562_s19] sm:$0xff] }
 0x7bf   : > { %v8604_v35 = vpop.f32.mrb[66].mxu0  ;;  %8663 = vmatprep.mubr.msk.f32.mxu0 %vm2506_vm3, %v6009_v46 }
 0x7c0   : > { %v6012_v52 = vmul.f32 %v8604_v35, %v12077_v7  ;;  %v5739_v37 = vpop.f32.mrb[67].mxu0  ;;  %8664 = vmatmul.mubr.msk.f32.gmra.mrb[80].mxu0 %vm2506_vm3, %v6010_v56  ;;  %7123 = vmatmul.mubr.msk.f32.gmra.mrb[98].mxu1 %vm4030_vm5, %v6241_v16  ;;  %v6247_v56 = vadd.f32 %v6231_v33, %v559_v25  ;;  %v12089_v35 = vld [vmem:[#allocation3_spill] sm:$0xff] }
 0x7c1   : > { %v6011_v13 = vmul.f32 %v5739_v37, %v12078_v28  ;;  %6458 = vmatprep.mubr.f32.mxu1 %v11999_v4  ;;  %v12090_v37 = vld [vmem:[#allocation2_spill] sm:$0xff] }
 0x7c3   : > { %v8607_v27 = vpop.f32.mrb[68].mxu0  ;;  %8666 = vmatprep.mubr.msk.f32.mxu0 %vm2506_vm3, %v6011_v13 }
 0x7c4   : > { %v6014_v5 = vmul.f32 %v8607_v27, %v12079_v19  ;;  %v5749_v18 = vpop.f32.mrb[69].mxu0  ;;  %8667 = vmatmul.mubr.msk.f32.gmra.mrb[82].mxu0 %vm2506_vm3, %v6012_v52  ;;  %7124 = vmatmul.mubr.msk.f32.gmra.mrb[100].mxu1 %vm4030_vm5, %v6242_v49 }
 0x7c5   : > { %v6013_v40 = vmul.f32 %v5749_v18, %v12080_v47  ;;  %6464 = vmatprep.mubr.f32.mxu1 %v11999_v4 }
 0x7c7   : > { %v8610_v43 = vpop.f32.mrb[70].mxu0  ;;  %8669 = vmatprep.mubr.msk.f32.mxu0 %vm2506_vm3, %v6013_v40  ;;  %v12094_v40 = vld [vmem:[#allocation6_spill] sm:$0xff] }
 0x7c8   : > { %v6016_v9 = vmul.f32 %v8610_v43, %v12081_v39  ;;  %v5759_v32 = vpop.f32.mrb[71].mxu0  ;;  %8670 = vmatmul.mubr.msk.f32.gmra.mrb[84].mxu0 %vm2506_vm3, %v6014_v5  ;;  %7125 = vmatmul.mubr.msk.f32.gmra.mrb[102].mxu1 %vm4030_vm5, %v6243_v17  ;;  %v12093_v5 = vld [vmem:[#allocation7_spill] sm:$0xff]  ;;  %v12096_v39 = vld [vmem:[#allocation8_spill] sm:$0xff] }
 0x7c9   : > { %v6015_v60 = vmul.f32 %v5759_v32, %v12082_v62  ;;  %6470 = vmatprep.mubr.f32.mxu1 %v11999_v4  ;;  %v12097_v62 = vld [vmem:[#allocation11_spill] sm:$0xff] }
 0x7cb   : > { %v8613_v50 = vpop.f32.mrb[72].mxu0  ;;  %8672 = vmatprep.mubr.msk.f32.mxu0 %vm2506_vm3, %v6015_v60 }
 0x7cc   : > { %v6018_v30 = vmul.f32 %v8613_v50, %v12083_v57  ;;  %v5769_v21 = vpop.f32.mrb[73].mxu0  ;;  %8673 = vmatmul.mubr.msk.f32.gmra.mrb[86].mxu0 %vm2506_vm3, %v6016_v9  ;;  %7126 = vmatmul.mubr.msk.f32.gmra.mrb[104].mxu1 %vm4030_vm5, %v6244_v10  ;;  %v12098_v10 = vld [vmem:[#allocation10_spill] sm:$0xff]  ;;  %v12099_v50 = vld [vmem:[#allocation13_spill] sm:$0xff] }
 0x7cd   : > { %v6017_v2 = vmul.f32 %v5769_v21, %v12084_v48  ;;  %6476 = vmatprep.mubr.f32.mxu1 %v11999_v4  ;;  %v12100_v21 = vld [vmem:[#allocation12_spill] sm:$0xff] }
 0x7cf   : > { %v8616_v55 = vpop.f32.mrb[74].mxu0  ;;  %8675 = vmatprep.mubr.msk.f32.mxu0 %vm2506_vm3, %v6017_v2 }
 0x7d0   : > { %v6020_v26 = vmul.f32 %v8616_v55, %v12085_v24  ;;  %v5779_v8 = vpop.f32.mrb[75].mxu0  ;;  %8676 = vmatmul.mubr.msk.f32.gmra.mrb[88].mxu0 %vm2506_vm3, %v6018_v30  ;;  %7127 = vmatmul.mubr.msk.f32.gmra.mrb[106].mxu1 %vm4030_vm5, %v6245_v45  ;;  %v12101_v45 = vld [vmem:[#allocation15_spill] sm:$0xff]  ;;  %v560_v24 = vld [vmem:[%s11763_s10 + $0x100] sm:$0xff] }
 0x7d1   : > { %v6019_v29 = vmul.f32 %v5779_v8, %v12086_v0  ;;  %6482 = vmatprep.mubr.f32.mxu1 %v11999_v4  ;;  %v561_v0 = vld [vmem:[%s11763_s10 + $0x108] sm:$0xff] }
 0x7d3   : > { %v8619_v63 = vpop.f32.mrb[76].mxu0  ;;  %8678 = vmatprep.mubr.msk.f32.mxu0 %vm2506_vm3, %v6019_v29  ;;  %v12103_v29 = vld [vmem:[#allocation17_spill] sm:$0xff] }
 0x7d4   : > { %v6022_v3 = vmul.f32 %v8619_v63, %v12087_v31  ;;  %v5789_v58 = vpop.f32.mrb[77].mxu0  ;;  %8679 = vmatmul.mubr.msk.f32.gmra.mrb[90].mxu0 %vm2506_vm3, %v6020_v26  ;;  %7128 = vmatmul.mubr.msk.f32.gmra.mrb[108].mxu1 %vm4030_vm5, %v6246_v14  ;;  %v576_v14 = vld [vmem:[%s11763_s10 + $0x180] sm:$0xff] }
 0x7d5   : > { %v6021_v53 = vmul.f32 %v5789_v58, %v12088_v11  ;;  %6488 = vmatprep.mubr.f32.mxu1 %v11999_v4 }
 0x7d7   : > { %8681 = vmatprep.mubr.msk.f32.mxu0 %vm2506_vm3, %v6021_v53 }
 0x7d8   : > { %8682 = vmatmul.mubr.msk.f32.gmra.mrb[92].mxu0 %vm2506_vm3, %v6022_v3  ;;  %7129 = vmatmul.mubr.msk.f32.gmra.mrb[110].mxu1 %vm4030_vm5, %v6247_v56  ;;  %v12104_v3 = vld [vmem:[#allocation16_spill] sm:$0xff] }
 0x7d9   : > { %6709 = vmatprep.mubr.f32.mxu0 %v11999_v4 }
 0x86f   : > { %v6400_v42 = vpop.f32.mrb[80].mxu1 }
 0x870   : > { %v6495_v46 = vadd.f32 %v9358_v20, %v6400_v42  ;;  %v6402_v16 = vpop.f32.mrb[81].mxu1  ;;  %v577_v20 = vld [vmem:[%s11763_s10 + $0x188] sm:$0xff] }
 0x871   : > { %v6496_v61 = vadd.f32 %v9359_v41, %v6402_v16  ;;  %v562_v41 = vld [vmem:[%s11763_s10 + $0x110] sm:$0xff] }
 0x872   : > { %6527 = vst [vmem:[%s11420_s18] sm:$0xff] %v6495_v46  ;;  %v12105_v46 = vld [vmem:[#allocation19_spill] sm:$0xff] }
 0x873   : > { %6528 = vst [vmem:[%s11420_s18 + $0x8] sm:$0xff] %v6496_v61  ;;  %v6406_v12 = vpop.f32.mrb[82].mxu1 }
 0x874   : > { %v6497_v7 = vadd.f32 %v6406_v12, %v12089_v35  ;;  %v6408_v52 = vpop.f32.mrb[83].mxu1  ;;  %v12106_v35 = vld [vmem:[#allocation18_spill] sm:$0xff] }
 0x875   : > { %v6498_v28 = vadd.f32 %v6408_v52, %v12090_v37 }
 0x876   : > { %6529 = vst [vmem:[%s11420_s18 + $0x10] sm:$0xff] %v6497_v7 }
 0x877   : > { %6530 = vst [vmem:[%s11420_s18 + $0x18] sm:$0xff] %v6498_v28  ;;  %v6412_v13 = vpop.f32.mrb[84].mxu1 }
 0x878   : > { %v6499_v49 = vadd.f32 %v6412_v13, %v12091_v15  ;;  %v6414_v54 = vpop.f32.mrb[85].mxu1  ;;  %v563_v15 = vld [vmem:[%s11763_s10 + $0x118] sm:$0xff] }
 0x879   : > { %v6500_v27 = vadd.f32 %v6414_v54, %v12092_v23  ;;  %v12107_v54 = vld [vmem:[#allocation21_spill] sm:$0xff] }
 0x87a   : > { %6531 = vst [vmem:[%s11420_s18 + $0x20] sm:$0xff] %v6499_v49  ;;  %v578_v49 = vld [vmem:[%s11763_s10 + $0x190] sm:$0xff] }
 0x87b   : > { %6532 = vst [vmem:[%s11420_s18 + $0x28] sm:$0xff] %v6500_v27  ;;  %v6418_v19 = vpop.f32.mrb[86].mxu1 }
 0x87c   : > { %v6501_v18 = vadd.f32 %v6418_v19, %v12093_v5  ;;  %v6420_v47 = vpop.f32.mrb[87].mxu1  ;;  %v12108_v5 = vld [vmem:[#allocation20_spill] sm:$0xff] }
 0x87d   : > { %v6502_v17 = vadd.f32 %v6420_v47, %v12094_v40 }
 0x87e   : > { %6533 = vst [vmem:[%s11420_s18 + $0x30] sm:$0xff] %v6501_v18 }
 0x87f   : > { %6534 = vst [vmem:[%s11420_s18 + $0x38] sm:$0xff] %v6502_v17  ;;  %v6424_v36 = vpop.f32.mrb[88].mxu1 }
 0x880   : > { %v6503_v1 = vadd.f32 %v6424_v36, %v12095_v22  ;;  %v6426_v43 = vpop.f32.mrb[89].mxu1  ;;  %v579_v22 = vld [vmem:[%s11763_s10 + $0x198] sm:$0xff] }
 0x881   : > { %v6504_v9 = vadd.f32 %v6426_v43, %v12096_v39  ;;  %v12109_v43 = vld [vmem:[#allocation23_spill] sm:$0xff] }
 0x882   : > { %6535 = vst [vmem:[%s11420_s18 + $0x40] sm:$0xff] %v6503_v1  ;;  %v564_v1 = vld [vmem:[%s11763_s10 + $0x120] sm:$0xff] }
 0x883   : > { %6536 = vst [vmem:[%s11420_s18 + $0x48] sm:$0xff] %v6504_v9  ;;  %v6430_v32 = vpop.f32.mrb[90].mxu1 }
 0x884   : > { %v6505_v60 = vadd.f32 %v6430_v32, %v12097_v62  ;;  %v6432_v38 = vpop.f32.mrb[91].mxu1  ;;  %v12110_v62 = vld [vmem:[#allocation22_spill] sm:$0xff] }
 0x885   : > { %v6506_v34 = vadd.f32 %v6432_v38, %v12098_v10 }
 0x886   : > { %6537 = vst [vmem:[%s11420_s18 + $0x50] sm:$0xff] %v6505_v60 }
 0x887   : > { %6538 = vst [vmem:[%s11420_s18 + $0x58] sm:$0xff] %v6506_v34  ;;  %v6436_v6 = vpop.f32.mrb[92].mxu1 }
 0x888   : > { %v6507_v57 = vadd.f32 %v6436_v6, %v12099_v50  ;;  %v6438_v30 = vpop.f32.mrb[93].mxu1  ;;  %v565_v50 = vld [vmem:[%s11763_s10 + $0x128] sm:$0xff] }
 0x889   : > { %v6508_v48 = vadd.f32 %v6438_v30, %v12100_v21  ;;  %v12111_v30 = vld [vmem:[#allocation25_spill] sm:$0xff] }
 0x88a   : > { %6539 = vst [vmem:[%s11420_s18 + $0x60] sm:$0xff] %v6507_v57  ;;  %v580_v57 = vld [vmem:[%s11763_s10 + $0x1a0] sm:$0xff] }
 0x88b   : > { %6540 = vst [vmem:[%s11420_s18 + $0x68] sm:$0xff] %v6508_v48  ;;  %v6442_v2 = vpop.f32.mrb[94].mxu1 }
 0x88c   : > { %v6509_v59 = vadd.f32 %v6442_v2, %v12101_v45  ;;  %v6444_v44 = vpop.f32.mrb[95].mxu1  ;;  %v12112_v45 = vld [vmem:[#allocation24_spill] sm:$0xff] }
 0x88d   : > { %v6510_v55 = vadd.f32 %v6444_v44, %v12102_v51 }
 0x88e   : > { %6541 = vst [vmem:[%s11420_s18 + $0x70] sm:$0xff] %v6509_v59 }
 0x88f   : > { %6542 = vst [vmem:[%s11420_s18 + $0x78] sm:$0xff] %v6510_v55  ;;  %v8662_v26 = vpop.f32.mrb[78].mxu0  ;;  %v6448_v8 = vpop.f32.mrb[96].mxu1 }
 0x890   : > { %v6511_v33 = vadd.f32 %v6448_v8, %v12103_v29  ;;  %v6137_v25 = vpop.f32.mrb[79].mxu0  ;;  %v6450_v63 = vpop.f32.mrb[97].mxu1  ;;  %v6249_v11 = vmul.f32 %v8662_v26, %v561_v0  ;;  %v581_v26 = vld [vmem:[%s11763_s10 + $0x1a8] sm:$0xff]  ;;  %v566_v8 = vld [vmem:[%s11763_s10 + $0x130] sm:$0xff] }
 0x891   : > { %v6248_v31 = vmul.f32 %v6137_v25, %v560_v24  ;;  %v6512_v58 = vadd.f32 %v6450_v63, %v12104_v3  ;;  %v12113_v0 = vld [vmem:[#allocation27_spill] sm:$0xff]  ;;  %v12114_v25 = vld [vmem:[#allocation26_spill] sm:$0xff] }
 0x892   : > { %6543 = vst [vmem:[%s11420_s18 + $0x80] sm:$0xff] %v6511_v33  ;;  %v6265_v52 = vadd.f32 %v6249_v11, %v577_v20 }
 0x893   : > { %v6264_v53 = vadd.f32 %v6248_v31, %v576_v14  ;;  %6544 = vst [vmem:[%s11420_s18 + $0x88] sm:$0xff] %v6512_v58  ;;  %v8665_v56 = vpop.f32.mrb[80].mxu0  ;;  %v6454_v42 = vpop.f32.mrb[98].mxu1 }
 0x894   : > { %v6513_v16 = vadd.f32 %v6454_v42, %v12105_v46  ;;  %v6147_v61 = vpop.f32.mrb[81].mxu0  ;;  %v6456_v12 = vpop.f32.mrb[99].mxu1  ;;  %v6251_v47 = vmul.f32 %v8665_v56, %v563_v15  ;;  %v582_v56 = vld [vmem:[%s11763_s10 + $0x1b0] sm:$0xff]  ;;  %v12115_v42 = vld [vmem:[#allocation29_spill] sm:$0xff] }
 0x895   : > { %v6514_v7 = vadd.f32 %v6456_v12, %v12106_v35  ;;  %7132 = vmatmul.mubr.msk.f32.vlgmr.msra.gmra.mrb[94].mxu0 %vm5004_vm8, %v6264_v53  ;;  %v6250_v37 = vmul.f32 %v6147_v61, %v562_v41  ;;  %v567_v53 = vld [vmem:[%s11763_s10 + $0x138] sm:$0xff]  ;;  %v12116_v41 = vld [vmem:[#allocation28_spill] sm:$0xff] }
 0x896   : > { %6545 = vst [vmem:[%s11420_s18 + $0x90] sm:$0xff] %v6513_v16  ;;  %6715 = vmatprep.mubr.f32.mxu0 %v11999_v4  ;;  %v6267_v38 = vadd.f32 %v6251_v47, %v579_v22  ;;  %v584_v47 = vld [vmem:[%s11763_s10 + $0x1c0] sm:$0xff]  ;;  %v570_v22 = vld [vmem:[%s11763_s10 + $0x150] sm:$0xff] }
 0x897   : > { %6546 = vst [vmem:[%s11420_s18 + $0x98] sm:$0xff] %v6514_v7  ;;  %v8668_v28 = vpop.f32.mrb[82].mxu0  ;;  %v6460_v13 = vpop.f32.mrb[100].mxu1  ;;  %v6266_v40 = vadd.f32 %v6250_v37, %v578_v49  ;;  %v583_v37 = vld [vmem:[%s11763_s10 + $0x1b8] sm:$0xff] }
 0x898   : > { %v6515_v23 = vadd.f32 %v6460_v13, %v12107_v54  ;;  %v6157_v27 = vpop.f32.mrb[83].mxu0  ;;  %v6462_v19 = vpop.f32.mrb[101].mxu1  ;;  %v6253_v44 = vmul.f32 %v8668_v28, %v565_v50  ;;  %v568_v28 = vld [vmem:[%s11763_s10 + $0x140] sm:$0xff]  ;;  %v12117_v13 = vld [vmem:[#allocation31_spill] sm:$0xff] }
 0x899   : > { %v6516_v18 = vadd.f32 %v6462_v19, %v12108_v5  ;;  %7133 = vmatmul.mubr.msk.f32.gmra.mrb[96].mxu0 %vm5004_vm8, %v6265_v52  ;;  %v6252_v10 = vmul.f32 %v6157_v27, %v564_v1  ;;  %v588_v50 = vld [vmem:[%s11763_s10 + $0x1e0] sm:$0xff] }
 0x89a   : > { %6547 = vst [vmem:[%s11420_s18 + $0xa0] sm:$0xff] %v6515_v23  ;;  %6721 = vmatprep.mubr.f32.mxu0 %v11999_v4  ;;  %v6269_v31 = vadd.f32 %v6253_v44, %v581_v26  ;;  %v12118_v23 = vld [vmem:[#allocation30_spill] sm:$0xff]  ;;  %v590_v44 = vld [vmem:[%s11763_s10 + $0x1f0] sm:$0xff] }
 0x89b   : > { %6548 = vst [vmem:[%s11420_s18 + $0xa8] sm:$0xff] %v6516_v18  ;;  %v8671_v17 = vpop.f32.mrb[84].mxu0  ;;  %v6466_v36 = vpop.f32.mrb[102].mxu1  ;;  %v6268_v51 = vadd.f32 %v6252_v10, %v580_v57  ;;  %v569_v18 = vld [vmem:[%s11763_s10 + $0x148] sm:$0xff] }
 0x89c   : > { %v6517_v39 = vadd.f32 %v6466_v36, %v12109_v43  ;;  %v6167_v9 = vpop.f32.mrb[85].mxu0  ;;  %v6468_v32 = vpop.f32.mrb[103].mxu1  ;;  %v6255_v12 = vmul.f32 %v8671_v17, %v567_v53  ;;  %v585_v36 = vld [vmem:[%s11763_s10 + $0x1c8] sm:$0xff]  ;;  %v6571_v53 = vld [vmem:[%s9594_s28 + $0x60] sm:$0xff] }
 0x89d   : > { %v6518_v60 = vadd.f32 %v6468_v32, %v12110_v62  ;;  %7134 = vmatmul.mubr.msk.f32.gmra.mrb[98].mxu0 %vm5004_vm8, %v6266_v40  ;;  %v6254_v3 = vmul.f32 %v6167_v9, %v566_v8  ;;  %v586_v9 = vld [vmem:[%s11763_s10 + $0x1d0] sm:$0xff]  ;;  %v6559_v8 = vld [vmem:[%s9594_s28] sm:$0xff] }
 0x89e   : > { %6549 = vst [vmem:[%s11420_s18 + $0xb0] sm:$0xff] %v6517_v39  ;;  %6727 = vmatprep.mubr.f32.mxu0 %v11999_v4  ;;  %v6271_v19 = vadd.f32 %v6255_v12, %v583_v37  ;;  %v571_v39 = vld [vmem:[%s11763_s10 + $0x158] sm:$0xff]  ;;  %v11644_v12 = vld [vmem:[%s9594_s28 + $0xa0] sm:$0xff] }
 0x89f   : > { %6550 = vst [vmem:[%s11420_s18 + $0xb8] sm:$0xff] %v6518_v60  ;;  %v8674_v34 = vpop.f32.mrb[86].mxu0  ;;  %v6472_v6 = vpop.f32.mrb[104].mxu1  ;;  %v6270_v35 = vadd.f32 %v6254_v3, %v582_v56  ;;  %v587_v60 = vld [vmem:[%s11763_s10 + $0x1d8] sm:$0xff]  ;;  %v6568_v3 = vld [vmem:[%s9594_s28 + $0x48] sm:$0xff]  ;;  %v11656_v37 = vld [vmem:[%s9594_s28 + $0xc0] sm:$0xff] }
 0x8a0   : > { %v6519_v21 = vadd.f32 %v6472_v6, %v12111_v30  ;;  %v6177_v48 = vpop.f32.mrb[87].mxu0  ;;  %v6474_v2 = vpop.f32.mrb[105].mxu1  ;;  %v6257_v40 = vmul.f32 %v8674_v34, %v569_v18  ;;  %v573_v6 = vld [vmem:[%s11763_s10 + $0x168] sm:$0xff] }
 0x8a1   : > { %v6520_v59 = vadd.f32 %v6474_v2, %v12112_v45  ;;  %7135 = vmatmul.mubr.msk.f32.gmra.mrb[100].mxu0 %vm5004_vm8, %v6267_v38  ;;  %v6256_v5 = vmul.f32 %v6177_v48, %v568_v28  ;;  %v572_v38 = vld [vmem:[%s11763_s10 + $0x160] sm:$0xff]  ;;  %v574_v48 = vld [vmem:[%s11763_s10 + $0x170] sm:$0xff]  ;;  %v6572_v56 = vld [vmem:[%s9594_s28 + $0x68] sm:$0xff] }
 0x8a2   : > { %6551 = vst [vmem:[%s11420_s18 + $0xc0] sm:$0xff] %v6519_v21  ;;  %6733 = vmatprep.mubr.f32.mxu0 %v11999_v4  ;;  %v6273_v1 = vadd.f32 %v6257_v40, %v585_v36  ;;  %v589_v21 = vld [vmem:[%s11763_s10 + $0x1e8] sm:$0xff] }
 0x8a3   : > { %6552 = vst [vmem:[%s11420_s18 + $0xc8] sm:$0xff] %v6520_v59  ;;  %v8677_v55 = vpop.f32.mrb[88].mxu0  ;;  %v6478_v24 = vpop.f32.mrb[106].mxu1  ;;  %v6272_v17 = vadd.f32 %v6256_v5, %v584_v47  ;;  %v575_v59 = vld [vmem:[%s11763_s10 + $0x178] sm:$0xff]  ;;  %v11659_v28 = vld [vmem:[%s9594_s28 + $0xc8] sm:$0xff] }
 0x8a4   : > { %v6521_v29 = vadd.f32 %v6478_v24, %v12113_v0  ;;  %v6187_v33 = vpop.f32.mrb[89].mxu0  ;;  %v6480_v14 = vpop.f32.mrb[107].mxu1  ;;  %v6259_v32 = vmul.f32 %v8677_v55, %v571_v39  ;;  %v591_v24 = vld [vmem:[%s11763_s10 + $0x1f8] sm:$0xff]  ;;  %v6560_v0 = vld [vmem:[%s9594_s28 + $0x8] sm:$0xff] }
 0x8a5   : > { %v6522_v63 = vadd.f32 %v6480_v14, %v12114_v25  ;;  %7136 = vmatmul.mubr.msk.f32.gmra.mrb[102].mxu0 %vm5004_vm8, %v6268_v51  ;;  %v6258_v43 = vmul.f32 %v6187_v33, %v570_v22  ;;  %v6562_v33 = vld [vmem:[%s9594_s28 + $0x18] sm:$0xff]  ;;  %v6563_v14 = vld [vmem:[%s9594_s28 + $0x20] sm:$0xff]  ;;  %v6564_v25 = vld [vmem:[%s9594_s28 + $0x28] sm:$0xff] }
 0x8a6   : > { %6553 = vst [vmem:[%s11420_s18 + $0xd0] sm:$0xff] %v6521_v29  ;;  %6739 = vmatprep.mubr.f32.mxu0 %v11999_v4  ;;  %v6275_v10 = vadd.f32 %v6259_v32, %v587_v60  ;;  %v6561_v29 = vld [vmem:[%s9594_s28 + $0x10] sm:$0xff] }
 0x8a7   : > { %6554 = vst [vmem:[%s11420_s18 + $0xd8] sm:$0xff] %v6522_v63  ;;  %v8680_v58 = vpop.f32.mrb[90].mxu0  ;;  %v6484_v11 = vpop.f32.mrb[108].mxu1  ;;  %v6274_v62 = vadd.f32 %v6258_v43, %v586_v9  ;;  %v6565_v63 = vld [vmem:[%s9594_s28 + $0x30] sm:$0xff] }
 0x8a8   : > { %v6523_v20 = vadd.f32 %v6484_v11, %v12115_v42  ;;  %v6197_v46 = vpop.f32.mrb[91].mxu0  ;;  %v6486_v16 = vpop.f32.mrb[109].mxu1  ;;  %v6261_v57 = vmul.f32 %v8680_v58, %v573_v6  ;;  %v6569_v58 = vld [vmem:[%s9594_s28 + $0x50] sm:$0xff]  ;;  %v6570_v11 = vld [vmem:[%s9594_s28 + $0x58] sm:$0xff] }
 0x8a9   : > { %v6524_v61 = vadd.f32 %v6486_v16, %v12116_v41  ;;  %7137 = vmatmul.mubr.msk.f32.gmra.mrb[104].mxu0 %vm5004_vm8, %v6269_v31  ;;  %v6260_v34 = vmul.f32 %v6197_v46, %v572_v38  ;;  %v6567_v31 = vld [vmem:[%s9594_s28 + $0x40] sm:$0xff]  ;;  %v6573_v42 = vld [vmem:[%s9594_s28 + $0x70] sm:$0xff]  ;;  %v11635_v16 = vld [vmem:[%s9594_s28 + $0x88] sm:$0xff] }
 0x8aa   : > { %6555 = vst [vmem:[%s11420_s18 + $0xe0] sm:$0xff] %v6523_v20  ;;  %6745 = vmatprep.mubr.f32.mxu0 %v11999_v4  ;;  %v6277_v2 = vadd.f32 %v6261_v57, %v589_v21  ;;  %v11629_v20 = vld [vmem:[%s9594_s28 + $0x78] sm:$0xff]  ;;  %v11632_v46 = vld [vmem:[%s9594_s28 + $0x80] sm:$0xff]  ;;  %v11638_v41 = vld [vmem:[%s9594_s28 + $0x90] sm:$0xff] }
 0x8ab   : > { %6556 = vst [vmem:[%s11420_s18 + $0xe8] sm:$0xff] %v6524_v61  ;;  %v8683_v7 = vpop.f32.mrb[92].mxu0  ;;  %v6490_v52 = vpop.f32.mrb[110].mxu1  ;;  %v6276_v30 = vadd.f32 %v6260_v34, %v588_v50  ;;  %v11641_v61 = vld [vmem:[%s9594_s28 + $0x98] sm:$0xff] }
 0x8ac   : > { %v6525_v15 = vadd.f32 %v6490_v52, %v12117_v13  ;;  %v6207_v49 = vpop.f32.mrb[93].mxu0  ;;  %v6492_v54 = vpop.f32.mrb[111].mxu1  ;;  %v6263_v51 = vmul.f32 %v8683_v7, %v575_v59  ;;  %v11650_v7 = vld [vmem:[%s9594_s28 + $0xb0] sm:$0xff]  ;;  %v11653_v52 = vld [vmem:[%s9594_s28 + $0xb8] sm:$0xff] }
 0x8ad   : > { %v6526_v27 = vadd.f32 %v6492_v54, %v12118_v23  ;;  %7138 = vmatmul.mubr.msk.f32.gmra.mrb[106].mxu0 %vm5004_vm8, %v6270_v35  ;;  %v6262_v45 = vmul.f32 %v6207_v49, %v574_v48  ;;  %v11647_v35 = vld [vmem:[%s9594_s28 + $0xa8] sm:$0xff]  ;;  %v11662_v13 = vld [vmem:[%s9594_s28 + $0xd0] sm:$0xff]  ;;  %v11668_v49 = vld [vmem:[%s9594_s28 + $0xe0] sm:$0xff] }
 0x8ae   : > { %6557 = vst [vmem:[%s11420_s18 + $0xf0] sm:$0xff] %v6525_v15  ;;  %6751 = vmatprep.mubr.f32.mxu0 %v11999_v4  ;;  %v6279_v26 = vadd.f32 %v6263_v51, %v591_v24  ;;  %v11665_v15 = vld [vmem:[%s9594_s28 + $0xd8] sm:$0xff]  ;;  %v11677_v23 = vld [vmem:[%s9594_s28 + $0xe8] sm:$0xff] }
 0x8af   : > { %6558 = vst [vmem:[%s11420_s18 + $0xf8] sm:$0xff] %v6526_v27  ;;  %v6278_v55 = vadd.f32 %v6262_v45, %v590_v44  ;;  %v11680_v27 = vld [vmem:[%s9594_s28 + $0xf0] sm:$0xff] }
 0x8b1   : > { %7139 = vmatmul.mubr.msk.f32.gmra.mrb[108].mxu0 %vm5004_vm8, %v6271_v19  ;;  %v11683_v19 = vld [vmem:[%s9594_s28 + $0xf8] sm:$0xff] }
 0x8b2   : > { %6757 = vmatprep.mubr.f32.mxu0 %v11999_v4 }
 0x8b5   : > { %7140 = vmatmul.mubr.msk.f32.gmra.mrb[110].mxu0 %vm5004_vm8, %v6272_v17 }
 0x8b6   : > { %6763 = vmatprep.mubr.f32.mxu0 %v11999_v4 }
 0x8b9   : > { %7141 = vmatmul.mubr.msk.f32.gmra.mrb[112].mxu0 %vm5004_vm8, %v6273_v1 }
 0x8ba   : > { %6769 = vmatprep.mubr.f32.mxu0 %v11999_v4 }
 0x8bd   : > { %7142 = vmatmul.mubr.msk.f32.gmra.mrb[114].mxu0 %vm5004_vm8, %v6274_v62 }
 0x8be   : > { %6775 = vmatprep.mubr.f32.mxu0 %v11999_v4 }
 0x8c1   : > { %7143 = vmatmul.mubr.msk.f32.gmra.mrb[116].mxu0 %vm5004_vm8, %v6275_v10 }
 0x8c2   : > { %6781 = vmatprep.mubr.f32.mxu0 %v11999_v4 }
 0x8c5   : > { %7144 = vmatmul.mubr.msk.f32.gmra.mrb[118].mxu0 %vm5004_vm8, %v6276_v30 }
 0x8c6   : > { %6787 = vmatprep.mubr.f32.mxu0 %v11999_v4 }
 0x8c9   : > { %7145 = vmatmul.mubr.msk.f32.gmra.mrb[120].mxu0 %vm5004_vm8, %v6277_v2 }
 0x8ca   : > { %6793 = vmatprep.mubr.f32.mxu0 %v11999_v4 }
 0x8cd   : > { %7146 = vmatmul.mubr.msk.f32.gmra.mrb[122].mxu0 %vm5004_vm8, %v6278_v55 }
 0x8ce   : > { %6799 = vmatprep.mubr.f32.mxu0 %v11999_v4  ;;  %v6566_v4 = vld [vmem:[%s9594_s28 + $0x38] sm:$0xff] }
 0x8d1   : > { %7147 = vmatmul.mubr.msk.f32.gmra.mrb[124].mxu0 %vm5004_vm8, %v6279_v26 }
 0x968   : > { %v6711_v54 = vpop.f32.mrb[94].mxu0 }
 0x969   : > { %v6806_v5 = vadd.f32 %v6711_v54, %v6559_v8  ;;  %v6713_v18 = vpop.f32.mrb[95].mxu0 }
 0x96a   : > { %v6807_v47 = vadd.f32 %v6713_v18, %v6560_v0 }
 0x96b   : > { %6838 = vst [vmem:[%s11674_s14] sm:$0xff] %v6806_v5 }
 0x96c   : > { %v6717_v40 = vpop.f32.mrb[96].mxu0  ;;  %6839 = vst.msk [vmem:[%s11674_s14 + $0x8] sm:$0xff] %vm857_vm0, %v6807_v47 }
 0x96d   : > { %v6808_v17 = vadd.f32 %v6717_v40, %v6561_v29  ;;  %v6719_v36 = vpop.f32.mrb[97].mxu0 }
 0x96e   : > { %v6809_v22 = vadd.f32 %v6719_v36, %v6562_v33 }
 0x96f   : > { %6840 = vst [vmem:[%s11674_s14 + $0x10] sm:$0xff] %v6808_v17 }
 0x970   : > { %v6723_v1 = vpop.f32.mrb[98].mxu0  ;;  %6841 = vst.msk [vmem:[%s11674_s14 + $0x18] sm:$0xff] %vm857_vm0, %v6809_v22 }
 0x971   : > { %v6810_v43 = vadd.f32 %v6723_v1, %v6563_v14  ;;  %v6725_v39 = vpop.f32.mrb[99].mxu0 }
 0x972   : > { %v6811_v9 = vadd.f32 %v6725_v39, %v6564_v25 }
 0x973   : > { %6842 = vst [vmem:[%s11674_s14 + $0x20] sm:$0xff] %v6810_v43 }
 0x974   : > { %v6729_v32 = vpop.f32.mrb[100].mxu0  ;;  %6843 = vst.msk [vmem:[%s11674_s14 + $0x28] sm:$0xff] %vm857_vm0, %v6811_v9 }
 0x975   : > { %v6812_v62 = vadd.f32 %v6729_v32, %v6565_v63  ;;  %v6731_v60 = vpop.f32.mrb[101].mxu0 }
 0x976   : > { %v6813_v38 = vadd.f32 %v6731_v60, %v6566_v4 }
 0x977   : > { %6844 = vst [vmem:[%s11674_s14 + $0x30] sm:$0xff] %v6812_v62 }
 0x978   : > { %v6735_v10 = vpop.f32.mrb[102].mxu0  ;;  %6845 = vst.msk [vmem:[%s11674_s14 + $0x38] sm:$0xff] %vm857_vm0, %v6813_v38 }
 0x979   : > { %v6814_v34 = vadd.f32 %v6735_v10, %v6567_v31  ;;  %v6737_v6 = vpop.f32.mrb[103].mxu0 }
 0x97a   : > { %v6815_v50 = vadd.f32 %v6737_v6, %v6568_v3 }
 0x97b   : > { %6846 = vst [vmem:[%s11674_s14 + $0x40] sm:$0xff] %v6814_v34 }
 0x97c   : > { %v6741_v57 = vpop.f32.mrb[104].mxu0  ;;  %6847 = vst.msk [vmem:[%s11674_s14 + $0x48] sm:$0xff] %vm857_vm0, %v6815_v50 }
 0x97d   : > { %v6816_v30 = vadd.f32 %v6741_v57, %v6569_v58  ;;  %v6743_v21 = vpop.f32.mrb[105].mxu0 }
 0x97e   : > { %v6817_v48 = vadd.f32 %v6743_v21, %v6570_v11 }
 0x97f   : > { %6848 = vst [vmem:[%s11674_s14 + $0x50] sm:$0xff] %v6816_v30 }
 0x980   : > { %v6747_v2 = vpop.f32.mrb[106].mxu0  ;;  %6849 = vst.msk [vmem:[%s11674_s14 + $0x58] sm:$0xff] %vm857_vm0, %v6817_v48 }
 0x981   : > { %v6818_v45 = vadd.f32 %v6747_v2, %v6571_v53  ;;  %v6749_v59 = vpop.f32.mrb[107].mxu0 }
 0x982   : > { %v6819_v44 = vadd.f32 %v6749_v59, %v6572_v56 }
 0x983   : > { %6850 = vst [vmem:[%s11674_s14 + $0x60] sm:$0xff] %v6818_v45 }
 0x984   : > { %v6753_v51 = vpop.f32.mrb[108].mxu0  ;;  %6851 = vst.msk [vmem:[%s11674_s14 + $0x68] sm:$0xff] %vm857_vm0, %v6819_v44 }
 0x985   : > { %v6820_v55 = vadd.f32 %v6753_v51, %v6573_v42  ;;  %v6755_v24 = vpop.f32.mrb[109].mxu0 }
 0x986   : > { %v6821_v26 = vadd.f32 %v6755_v24, %v11629_v20 }
 0x987   : > { %6852 = vst [vmem:[%s11674_s14 + $0x70] sm:$0xff] %v6820_v55 }
 0x988   : > { %v6759_v8 = vpop.f32.mrb[110].mxu0  ;;  %6853 = vst.msk [vmem:[%s11674_s14 + $0x78] sm:$0xff] %vm857_vm0, %v6821_v26 }
 0x989   : > { %v6822_v0 = vadd.f32 %v6759_v8, %v11632_v46  ;;  %v6761_v29 = vpop.f32.mrb[111].mxu0 }
 0x98a   : > { %v6823_v33 = vadd.f32 %v6761_v29, %v11635_v16 }
 0x98b   : > { %6854 = vst [vmem:[%s11674_s14 + $0x80] sm:$0xff] %v6822_v0 }
 0x98c   : > { %v6765_v14 = vpop.f32.mrb[112].mxu0  ;;  %6855 = vst.msk [vmem:[%s11674_s14 + $0x88] sm:$0xff] %vm857_vm0, %v6823_v33 }
 0x98d   : > { %v6824_v25 = vadd.f32 %v6765_v14, %v11638_v41  ;;  %v6767_v63 = vpop.f32.mrb[113].mxu0 }
 0x98e   : > { %v6825_v4 = vadd.f32 %v6767_v63, %v11641_v61 }
 0x98f   : > { %6856 = vst [vmem:[%s11674_s14 + $0x90] sm:$0xff] %v6824_v25 }
 0x990   : > { %v6771_v31 = vpop.f32.mrb[114].mxu0  ;;  %6857 = vst.msk [vmem:[%s11674_s14 + $0x98] sm:$0xff] %vm857_vm0, %v6825_v4 }
 0x991   : > { %v6826_v3 = vadd.f32 %v6771_v31, %v11644_v12  ;;  %v6773_v58 = vpop.f32.mrb[115].mxu0 }
 0x992   : > { %v6827_v11 = vadd.f32 %v6773_v58, %v11647_v35 }
 0x993   : > { %6858 = vst [vmem:[%s11674_s14 + $0xa0] sm:$0xff] %v6826_v3 }
 0x994   : > { %v6777_v53 = vpop.f32.mrb[116].mxu0  ;;  %6859 = vst.msk [vmem:[%s11674_s14 + $0xa8] sm:$0xff] %vm857_vm0, %v6827_v11 }
 0x995   : > { %v6828_v56 = vadd.f32 %v6777_v53, %v11650_v7  ;;  %v6779_v42 = vpop.f32.mrb[117].mxu0 }
 0x996   : > { %v6829_v20 = vadd.f32 %v6779_v42, %v11653_v52 }
 0x997   : > { %6860 = vst [vmem:[%s11674_s14 + $0xb0] sm:$0xff] %v6828_v56 }
 0x998   : > { %v6783_v46 = vpop.f32.mrb[118].mxu0  ;;  %6861 = vst.msk [vmem:[%s11674_s14 + $0xb8] sm:$0xff] %vm857_vm0, %v6829_v20 }
 0x999   : > { %v6830_v16 = vadd.f32 %v6783_v46, %v11656_v37  ;;  %v6785_v41 = vpop.f32.mrb[119].mxu0 }
 0x99a   : > { %v6831_v61 = vadd.f32 %v6785_v41, %v11659_v28 }
 0x99b   : > { %6862 = vst [vmem:[%s11674_s14 + $0xc0] sm:$0xff] %v6830_v16 }
 0x99c   : > { %v6789_v12 = vpop.f32.mrb[120].mxu0  ;;  %6863 = vst.msk [vmem:[%s11674_s14 + $0xc8] sm:$0xff] %vm857_vm0, %v6831_v61 }
 0x99d   : > { %v6832_v35 = vadd.f32 %v6789_v12, %v11662_v13  ;;  %v6791_v7 = vpop.f32.mrb[121].mxu0 }
 0x99e   : > { %v6833_v52 = vadd.f32 %v6791_v7, %v11665_v15 }
 0x99f   : > { %6864 = vst [vmem:[%s11674_s14 + $0xd0] sm:$0xff] %v6832_v35 }
 0x9a0   : > { %v6795_v54 = vpop.f32.mrb[122].mxu0  ;;  %6865 = vst.msk [vmem:[%s11674_s14 + $0xd8] sm:$0xff] %vm857_vm0, %v6833_v52 }
 0x9a1   : > { %v6834_v37 = vadd.f32 %v6795_v54, %v11668_v49  ;;  %v6797_v5 = vpop.f32.mrb[123].mxu0 }
 0x9a2   : > { %v6835_v28 = vadd.f32 %v6797_v5, %v11677_v23 }
 0x9a3   : > { %6866 = vst [vmem:[%s11674_s14 + $0xe0] sm:$0xff] %v6834_v37 }
 0x9a4   : > { %v6801_v18 = vpop.f32.mrb[124].mxu0  ;;  %6867 = vst.msk [vmem:[%s11674_s14 + $0xe8] sm:$0xff] %vm857_vm0, %v6835_v28 }
 0x9a5   : > { %v6836_v47 = vadd.f32 %v6801_v18, %v11680_v27  ;;  %v6803_v13 = vpop.f32.mrb[125].mxu0 }
 0x9a6   : > { %v6837_v40 = vadd.f32 %v6803_v13, %v11683_v19 }
 0x9a7   : > { %6868 = vst [vmem:[%s11674_s14 + $0xf0] sm:$0xff] %v6836_v47 }
 0x9a8   : > { %6869 = vst.msk [vmem:[%s11674_s14 + $0xf8] sm:$0xff] %vm857_vm0, %v6837_v40 }
 0x9a9 PF: > { %s24_s25 = sadd.s32 1, %s9366_s25  }
 0x9aa   : > { %p21_p5 = scmp.ge.s32.totalorder %s24_s25, 6  }
 0x9ac   :  { %23 = sbr.rel (!%p21_p5) target bundleno = 1 (0x1), region = 122 }

</bundles_post_ra>
